<compile_context>
chip_gen: v7x
topology: tpu7x:2x2x1
jax: 0.10.0
libtpu: 0.0.40
codegen_flags: <defaults>
</compile_context>

<pallas_src>
import functools

import jax
import jax.numpy as jnp
from jax import lax
from jax.experimental import pallas as pl
from jax.experimental.pallas import tpu as pltpu

LANES = 128


def _pair(v):
    return (v, v) if isinstance(v, int) else tuple(v)


# ----------------------------------------------------------------------------
# Kernel 1: quantize + mix the weight, emitted as bf16 in (Cout_padded, K) layout
# ----------------------------------------------------------------------------
def mix_weight_kernel(thr_ref, sw_ref, w_ref, out_ref, *, bits):
    # thr_ref: (1,) f32 SMEM        per-tensor threshold (computed in wrapper)
    # sw_ref : (len(bits),) f32 SMEM  softmax(alpha_weight)
    # w_ref  : (128, K) f32 VMEM ; out_ref: (128, K) bf16 VMEM
    thr = thr_ref[0]
    w = w_ref[...]
    acc = jnp.zeros_like(w)
    for i, bit in enumerate(bits):                       # static unroll over bit-widths
        levels = float(2 ** (bit - 1) - 1)
        scale = jnp.where(thr > 0.0, thr / levels, 1.0)  # guard all-zero weight
        q = jnp.round(jnp.clip(w, -thr, thr) / scale) * scale
        acc = acc + sw_ref[i] * q
    out_ref[...] = acc.astype(out_ref.dtype)


def mix_weight_pallas(w_oc, sw_mix, thr, bits):
    coutp, k = w_oc.shape
    kernel = functools.partial(mix_weight_kernel, bits=tuple(bits))
    return pl.pallas_call(
        kernel,
        out_shape=jax.ShapeDtypeStruct((coutp, k), jnp.bfloat16),
        grid=(coutp // LANES,),
        in_specs=[
            pl.BlockSpec(memory_space=pltpu.MemorySpace.SMEM),   # threshold
            pl.BlockSpec(memory_space=pltpu.MemorySpace.SMEM),   # softmax(alpha)
            pl.BlockSpec((LANES, k), lambda i: (i, 0)),
        ],
        out_specs=pl.BlockSpec((LANES, k), lambda i: (i, 0)),
        compiler_params=pltpu.CompilerParams(dimension_semantics=("parallel",)),
    )(thr, sw_mix, w_oc)


# ----------------------------------------------------------------------------
# Kernel 2: fused im2col + matmul conv (no HBM patch materialization)
# ----------------------------------------------------------------------------
def conv_kernel(x_ref, w_ref, o_ref, *, kh, kw, cin, wp, q, dh, dw):
    # x_ref: (1, Cin, Hp*Wp) bf16   spatially-flattened padded image
    # w_ref: (tco, kh*kw*Cin) bf16  mixed quantized weight, cols ordered (kh,kw,Cin)
    # o_ref: (1, tco, Q) f32        channel-major output slab (strided rows stripped later)
    o_ref[0, :, :] = jnp.zeros(o_ref.shape[1:], dtype=o_ref.dtype)
    for i in range(kh):                                  # static unroll over taps
        for j in range(kw):
            xm = x_ref[0, :, pl.ds(i * dh * wp + j * dw, q)]       # (Cin, Q)
            wm = w_ref[:, pl.ds((i * kw + j) * cin, cin)]          # (tco, Cin)
            o_ref[0, :, :] += jnp.dot(wm, xm,
                                      preferred_element_type=jnp.float32)


def fused_conv_pallas(x_flat, w_mixed, *, kh, kw, cin, wp, q, dh, dw, tco):
    n, _, p = x_flat.shape
    coutp, k = w_mixed.shape
    n_co = coutp // tco
    kernel = functools.partial(conv_kernel, kh=kh, kw=kw, cin=cin, wp=wp, q=q,
                               dh=dh, dw=dw)
    cost = pl.CostEstimate(
        flops=2 * n * q * k * coutp,
        transcendentals=0,
        bytes_accessed=n * cin * p * 2 * n_co + coutp * k * 2 * n
                       + n * coutp * q * 4)
    return pl.pallas_call(
        kernel,
        out_shape=jax.ShapeDtypeStruct((n, coutp, q), jnp.float32),
        grid=(n, n_co),          # Cout tiles fastest -> the (bigger) image block is reused
        in_specs=[
            pl.BlockSpec((1, cin, p), lambda b, c: (b, 0, 0)),
            pl.BlockSpec((tco, k), lambda b, c: (c, 0)),
        ],
        out_specs=pl.BlockSpec((1, tco, q), lambda b, c: (b, c, 0)),
        compiler_params=pltpu.CompilerParams(
            dimension_semantics=("parallel", "parallel")),   # megacore-friendly
        cost_estimate=cost,
    )(x_flat, w_mixed)


# ----------------------------------------------------------------------------
# Forward wrapper (layout plumbing only; all heavy lifting in the two kernels)
# ----------------------------------------------------------------------------
def shared_mix_quant_conv2d(x, weight, alpha, bits,
                            stride=(1, 1), padding=(1, 1), dilation=(1, 1)):
    sh, sw = _pair(stride)
    ph, pw = _pair(padding)
    dh, dw = _pair(dilation)
    n, cin, h, w = x.shape
    cout, cin_w, kh, kw = weight.shape
    assert cin == cin_w
    k = kh * kw * cin
    coutp = ((cout + LANES - 1) // LANES) * LANES        # lane-dense padded Cout
    hp, wp = h + 2 * ph, w + 2 * pw
    hout = (hp - dh * (kh - 1) - 1) // sh + 1
    wout = (wp - dw * (kw - 1) - 1) // sw + 1
    q = (hout - 1) * sh * wp + (wout - 1) * sw + 1       # rows of the flat output slab

    # --- weight path (Pallas kernel 1) ---
    sw_mix = jax.nn.softmax(alpha)                       # F.softmax(alpha_weight, dim=0)
    thr = jnp.max(jnp.abs(weight)).reshape(1)            # per-tensor threshold
    w_oc = jnp.transpose(weight, (0, 2, 3, 1)).reshape(cout, k)   # cols = (kh,kw,Cin)
    w_oc = jnp.pad(w_oc, ((0, coutp - cout), (0, 0)))
    mixed = mix_weight_pallas(w_oc, sw_mix, thr, bits)            # (Coutp, K) bf16

    # --- activation path: pad + bf16 once, flatten spatially (no im2col) ---
    x_flat = jnp.pad(x, ((0, 0), (0, 0), (ph, ph), (pw, pw))).astype(jnp.bfloat16)
    x_flat = x_flat.reshape(n, cin, hp * wp)

    tco = 256 if coutp % 256 == 0 else LANES             # 256-wide tiles when possible
    z = fused_conv_pallas(x_flat, mixed, kh=kh, kw=kw, cin=cin, wp=wp, q=q,
                          dh=dh, dw=dw, tco=tco)          # (N, Coutp, Q) f32

    # --- strip padded rows/channels and apply stride (cheap XLA slicing) ---
    hq = (hout - 1) * sh + 1
    z = jnp.pad(z, ((0, 0), (0, 0), (0, hq * wp - q)))
    z = z.reshape(n, coutp, hq, wp)
    out = z[:, :cout, ::sh, : (wout - 1) * sw + 1 : sw]   # already NCHW
    return out


# ----------------------------------------------------------------------------
# Pure-JAX reference with matched numerics (bf16 operands, f32 accumulation)
# ----------------------------------------------------------------------------
def reference(x, weight, alpha, bits, stride, padding, dilation):
    sw_mix = jax.nn.softmax(alpha)
    thr = jnp.max(jnp.abs(weight))
    mixed = jnp.zeros_like(weight)
    for i, bit in enumerate(bits):
        levels = float(2 ** (bit - 1) - 1)
        scale = jnp.where(thr > 0.0, thr / levels, 1.0)
        q = jnp.round(jnp.clip(weight, -thr, thr) / scale) * scale
        mixed = mixed + sw_mix[i] * q
    return lax.conv_general_dilated(
        x.astype(jnp.bfloat16), mixed.astype(jnp.bfloat16),
        window_strides=stride,
        padding=[(padding[0], padding[0]), (padding[1], padding[1])],
        rhs_dilation=dilation,
        dimension_numbers=("NCHW", "OIHW", "NCHW"),
        preferred_element_type=jnp.float32)


if __name__ == "__main__":
    key = jax.random.PRNGKey(0)
    kx, kwt = jax.random.split(key)

    # Shapes consistent with the module: inplane=4, outplane=8, 3x3 conv,
    # stride=1, padding=1, bias=False, bits=(2, 4, 8).
    N, Cin, H, W = 2, 4, 16, 16
    Cout, Kh, Kw = 8, 3, 3
    bits = (2, 4, 8)

    x = jax.random.normal(kx, (N, Cin, H, W), dtype=jnp.float32)
    weight = 0.1 * jax.random.normal(kwt, (Cout, Cin, Kh, Kw), dtype=jnp.float32)
    alpha = jnp.full((len(bits),), 0.01, dtype=jnp.float32)   # alpha_weight.fill_(0.01)

    fwd = jax.jit(shared_mix_quant_conv2d,
                  static_argnames=("bits", "stride", "padding", "dilation"))
    out = fwd(x, weight, alpha, bits=bits,
              stride=(1, 1), padding=(1, 1), dilation=(1, 1))
    out = jax.block_until_ready(out)

    ref = reference(x, weight, alpha, bits, (1, 1), (1, 1), (1, 1))
    assert out.shape == (N, Cout, H, W), out.shape
    err = float(jnp.max(jnp.abs(out - ref)))
    assert jnp.allclose(out, ref, atol=2e-2, rtol=2e-2), err

    print("KERNEL_OK")
</pallas_src>

<mosaic_0001>
module attributes {stable_mosaic.version = 11 : i64} {
  func.func @mix_weight_kernel(%arg0: i32, %arg1: memref<1xf32, #tpu.memory_space<smem>>, %arg2: memref<3xf32, #tpu.memory_space<smem>>, %arg3: memref<128x36xf32, #tpu.memory_space<vmem>>, %arg4: memref<128x36xbf16, #tpu.memory_space<vmem>>) attributes {dimension_semantics = [#tpu.dimension_semantics<parallel>], iteration_bounds = array<i64: 1>, scalar_prefetch = 0 : i64, scratch_operands = 0 : i64, tpu.core_type = #tpu.core_type<tc>, window_params = [{transform_indices = @transform_0, window_bounds = array<i64: 1>}, {transform_indices = @transform_1, window_bounds = array<i64: 3>}, {transform_indices = @transform_2, window_bounds = array<i64: 128, 36>}, {transform_indices = @transform_3, window_bounds = array<i64: 128, 36>}]} {
    %c0 = arith.constant 0 : index
    %0 = memref.load %arg1[%c0] : memref<1xf32, #tpu.memory_space<smem>>
    %c0_0 = arith.constant 0 : index
    %c0_1 = arith.constant 0 : index
    %1 = vector.load %arg3[%c0_0, %c0_1] : memref<128x36xf32, #tpu.memory_space<vmem>>, vector<128x36xf32>
    %cst = arith.constant 0.000000e+00 : f32
    %2 = vector.broadcast %cst : f32 to vector<128x36xf32>
    %cst_2 = arith.constant 0.000000e+00 : f32
    %3 = arith.cmpf ogt, %0, %cst_2 : f32
    %cst_3 = arith.constant 1.000000e+00 : f32
    %4 = arith.divf %0, %cst_3 : f32
    %cst_4 = arith.constant 1.000000e+00 : f32
    %5 = arith.select %3, %4, %cst_4 : f32
    %cst_5 = arith.constant 0.000000e+00 : f32
    %6 = arith.subf %cst_5, %0 : f32
    %7 = vector.broadcast %6 : f32 to vector<128x36xf32>
    %8 = arith.maximumf %7, %1 : vector<128x36xf32>
    %9 = vector.broadcast %0 : f32 to vector<128x36xf32>
    %10 = arith.minimumf %9, %8 : vector<128x36xf32>
    %11 = vector.broadcast %5 : f32 to vector<128x36xf32>
    %12 = arith.divf %10, %11 : vector<128x36xf32>
    %13 = math.roundeven %12 : vector<128x36xf32>
    %14 = vector.broadcast %5 : f32 to vector<128x36xf32>
    %15 = arith.mulf %13, %14 : vector<128x36xf32>
    %c0_6 = arith.constant 0 : index
    %16 = memref.load %arg2[%c0_6] : memref<3xf32, #tpu.memory_space<smem>>
    %17 = vector.broadcast %16 : f32 to vector<128x36xf32>
    %18 = arith.mulf %17, %15 : vector<128x36xf32>
    %19 = arith.addf %2, %18 : vector<128x36xf32>
    %cst_7 = arith.constant 0.000000e+00 : f32
    %20 = arith.cmpf ogt, %0, %cst_7 : f32
    %cst_8 = arith.constant 7.000000e+00 : f32
    %21 = arith.divf %0, %cst_8 : f32
    %cst_9 = arith.constant 1.000000e+00 : f32
    %22 = arith.select %20, %21, %cst_9 : f32
    %cst_10 = arith.constant 0.000000e+00 : f32
    %23 = arith.subf %cst_10, %0 : f32
    %24 = vector.broadcast %23 : f32 to vector<128x36xf32>
    %25 = arith.maximumf %24, %1 : vector<128x36xf32>
    %26 = vector.broadcast %0 : f32 to vector<128x36xf32>
    %27 = arith.minimumf %26, %25 : vector<128x36xf32>
    %28 = vector.broadcast %22 : f32 to vector<128x36xf32>
    %29 = arith.divf %27, %28 : vector<128x36xf32>
    %30 = math.roundeven %29 : vector<128x36xf32>
    %31 = vector.broadcast %22 : f32 to vector<128x36xf32>
    %32 = arith.mulf %30, %31 : vector<128x36xf32>
    %c1 = arith.constant 1 : index
    %33 = memref.load %arg2[%c1] : memref<3xf32, #tpu.memory_space<smem>>
    %34 = vector.broadcast %33 : f32 to vector<128x36xf32>
    %35 = arith.mulf %34, %32 : vector<128x36xf32>
    %36 = arith.addf %19, %35 : vector<128x36xf32>
    %cst_11 = arith.constant 0.000000e+00 : f32
    %37 = arith.cmpf ogt, %0, %cst_11 : f32
    %cst_12 = arith.constant 1.270000e+02 : f32
    %38 = arith.divf %0, %cst_12 : f32
    %cst_13 = arith.constant 1.000000e+00 : f32
    %39 = arith.select %37, %38, %cst_13 : f32
    %cst_14 = arith.constant 0.000000e+00 : f32
    %40 = arith.subf %cst_14, %0 : f32
    %41 = vector.broadcast %40 : f32 to vector<128x36xf32>
    %42 = arith.maximumf %41, %1 : vector<128x36xf32>
    %43 = vector.broadcast %0 : f32 to vector<128x36xf32>
    %44 = arith.minimumf %43, %42 : vector<128x36xf32>
    %45 = vector.broadcast %39 : f32 to vector<128x36xf32>
    %46 = arith.divf %44, %45 : vector<128x36xf32>
    %47 = math.roundeven %46 : vector<128x36xf32>
    %48 = vector.broadcast %39 : f32 to vector<128x36xf32>
    %49 = arith.mulf %47, %48 : vector<128x36xf32>
    %c2 = arith.constant 2 : index
    %50 = memref.load %arg2[%c2] : memref<3xf32, #tpu.memory_space<smem>>
    %51 = vector.broadcast %50 : f32 to vector<128x36xf32>
    %52 = arith.mulf %51, %49 : vector<128x36xf32>
    %53 = arith.addf %36, %52 : vector<128x36xf32>
    %54 = arith.truncf %53 : vector<128x36xf32> to vector<128x36xbf16>
    %c0_15 = arith.constant 0 : index
    %c0_16 = arith.constant 0 : index
    %55 = vector.load %arg4[%c0_15, %c0_16] : memref<128x36xbf16, #tpu.memory_space<vmem>>, vector<128x36xbf16>
    tpu.vector_store %arg4[%c0_15, %c0_16], %54 {strides = array<i32>} : memref<128x36xbf16, #tpu.memory_space<vmem>>, vector<128x36xbf16>,
    return
  }
  func.func @transform_0(%arg0: i32) -> i32 {
    %c0_i32 = arith.constant 0 : i32
    %c0_i32_0 = arith.constant 0 : i32
    return %c0_i32 : i32
  }
  func.func @transform_1(%arg0: i32) -> i32 {
    %c0_i32 = arith.constant 0 : i32
    %c0_i32_0 = arith.constant 0 : i32
    return %c0_i32 : i32
  }
  func.func @transform_2(%arg0: i32) -> (i32, i32) {
    %c0_i32 = arith.constant 0 : i32
    %c0_i32_0 = arith.constant 0 : i32
    return %arg0, %c0_i32 : i32, i32
  }
  func.func @transform_3(%arg0: i32) -> (i32, i32) {
    %c0_i32 = arith.constant 0 : i32
    %c0_i32_0 = arith.constant 0 : i32
    return %arg0, %c0_i32 : i32, i32
  }
}

module attributes {stable_mosaic.version = 11 : i64} {
  func.func @conv_kernel(%arg0: i32, %arg1: i32, %arg2: memref<1x4x324xbf16, #tpu.memory_space<vmem>>, %arg3: memref<128x36xbf16, #tpu.memory_space<vmem>>, %arg4: memref<1x128x286xf32, #tpu.memory_space<vmem>>) attributes {dimension_semantics = [#tpu.dimension_semantics<parallel>, #tpu.dimension_semantics<parallel>], iteration_bounds = array<i64: 2, 1>, scalar_prefetch = 0 : i64, scratch_operands = 0 : i64, tpu.core_type = #tpu.core_type<tc>, window_params = [{transform_indices = @transform_0, window_bounds = array<i64: 1, 4, 324>}, {transform_indices = @transform_1, window_bounds = array<i64: 128, 36>}, {transform_indices = @transform_2, window_bounds = array<i64: 1, 128, 286>}]} {
    %cst = arith.constant 0.000000e+00 : f32
    %0 = vector.broadcast %cst : f32 to vector<128x286xf32>
    %c0 = arith.constant 0 : index
    %c0_0 = arith.constant 0 : index
    %c0_1 = arith.constant 0 : index
    %1 = vector.load %arg4[%c0, %c0_0, %c0_1] : memref<1x128x286xf32, #tpu.memory_space<vmem>>, vector<1x128x286xf32>
    %2 = vector.shape_cast %1 : vector<1x128x286xf32> to vector<128x286xf32>
    %3 = vector.shape_cast %0 : vector<128x286xf32> to vector<1x128x286xf32>
    tpu.vector_store %arg4[%c0, %c0_0, %c0_1], %3 {strides = array<i32>} : memref<1x128x286xf32, #tpu.memory_space<vmem>>, vector<1x128x286xf32>,
    %c0_2 = arith.constant 0 : index
    %c0_3 = arith.constant 0 : index
    %c0_4 = arith.constant 0 : index
    %4 = vector.load %arg2[%c0_2, %c0_3, %c0_4] : memref<1x4x324xbf16, #tpu.memory_space<vmem>>, vector<1x4x286xbf16>
    %5 = vector.shape_cast %4 : vector<1x4x286xbf16> to vector<4x286xbf16>
    %c0_5 = arith.constant 0 : index
    %c0_6 = arith.constant 0 : index
    %6 = vector.load %arg3[%c0_5, %c0_6] : memref<128x36xbf16, #tpu.memory_space<vmem>>, vector<128x4xbf16>
    %c0_7 = arith.constant 0 : index
    %c0_8 = arith.constant 0 : index
    %c0_9 = arith.constant 0 : index
    %7 = vector.load %arg4[%c0_7, %c0_8, %c0_9] : memref<1x128x286xf32, #tpu.memory_space<vmem>>, vector<1x128x286xf32>
    %8 = vector.shape_cast %7 : vector<1x128x286xf32> to vector<128x286xf32>
    %cst_10 = arith.constant dense<0.000000e+00> : vector<128x286xf32>
    %9 = tpu.matmul %6, %5, %cst_10 {dimension_numbers = #tpu.dot_dimension_numbers<[1], [0], [0], [1], [0, 0, 1, 1], [], []>} : vector<128x4xbf16>, vector<4x286xbf16>, vector<128x286xf32> -> vector<128x286xf32>
    %10 = arith.addf %8, %9 : vector<128x286xf32>
    %c0_11 = arith.constant 0 : index
    %c0_12 = arith.constant 0 : index
    %c0_13 = arith.constant 0 : index
    %11 = vector.load %arg4[%c0_11, %c0_12, %c0_13] : memref<1x128x286xf32, #tpu.memory_space<vmem>>, vector<1x128x286xf32>
    %12 = vector.shape_cast %11 : vector<1x128x286xf32> to vector<128x286xf32>
    %13 = vector.shape_cast %10 : vector<128x286xf32> to vector<1x128x286xf32>
    tpu.vector_store %arg4[%c0_11, %c0_12, %c0_13], %13 {strides = array<i32>} : memref<1x128x286xf32, #tpu.memory_space<vmem>>, vector<1x128x286xf32>,
    %c0_14 = arith.constant 0 : index
    %c0_15 = arith.constant 0 : index
    %c1 = arith.constant 1 : index
    %14 = vector.load %arg2[%c0_14, %c0_15, %c1] : memref<1x4x324xbf16, #tpu.memory_space<vmem>>, vector<1x4x286xbf16>
    %15 = vector.shape_cast %14 : vector<1x4x286xbf16> to vector<4x286xbf16>
    %c0_16 = arith.constant 0 : index
    %c4 = arith.constant 4 : index
    %16 = vector.load %arg3[%c0_16, %c4] : memref<128x36xbf16, #tpu.memory_space<vmem>>, vector<128x4xbf16>
    %c0_17 = arith.constant 0 : index
    %c0_18 = arith.constant 0 : index
    %c0_19 = arith.constant 0 : index
    %17 = vector.load %arg4[%c0_17, %c0_18, %c0_19] : memref<1x128x286xf32, #tpu.memory_space<vmem>>, vector<1x128x286xf32>
    %18 = vector.shape_cast %17 : vector<1x128x286xf32> to vector<128x286xf32>
    %cst_20 = arith.constant dense<0.000000e+00> : vector<128x286xf32>
    %19 = tpu.matmul %16, %15, %cst_20 {dimension_numbers = #tpu.dot_dimension_numbers<[1], [0], [0], [1], [0, 0, 1, 1], [], []>} : vector<128x4xbf16>, vector<4x286xbf16>, vector<128x286xf32> -> vector<128x286xf32>
    %20 = arith.addf %18, %19 : vector<128x286xf32>
    %c0_21 = arith.constant 0 : index
    %c0_22 = arith.constant 0 : index
    %c0_23 = arith.constant 0 : index
    %21 = vector.load %arg4[%c0_21, %c0_22, %c0_23] : memref<1x128x286xf32, #tpu.memory_space<vmem>>, vector<1x128x286xf32>
    %22 = vector.shape_cast %21 : vector<1x128x286xf32> to vector<128x286xf32>
    %23 = vector.shape_cast %20 : vector<128x286xf32> to vector<1x128x286xf32>
    tpu.vector_store %arg4[%c0_21, %c0_22, %c0_23], %23 {strides = array<i32>} : memref<1x128x286xf32, #tpu.memory_space<vmem>>, vector<1x128x286xf32>,
    %c0_24 = arith.constant 0 : index
    %c0_25 = arith.constant 0 : index
    %c2 = arith.constant 2 : index
    %24 = vector.load %arg2[%c0_24, %c0_25, %c2] : memref<1x4x324xbf16, #tpu.memory_space<vmem>>, vector<1x4x286xbf16>
    %25 = vector.shape_cast %24 : vector<1x4x286xbf16> to vector<4x286xbf16>
    %c0_26 = arith.constant 0 : index
    %c8 = arith.constant 8 : index
    %26 = vector.load %arg3[%c0_26, %c8] : memref<128x36xbf16, #tpu.memory_space<vmem>>, vector<128x4xbf16>
    %c0_27 = arith.constant 0 : index
    %c0_28 = arith.constant 0 : index
    %c0_29 = arith.constant 0 : index
    %27 = vector.load %arg4[%c0_27, %c0_28, %c0_29] : memref<1x128x286xf32, #tpu.memory_space<vmem>>, vector<1x128x286xf32>
    %28 = vector.shape_cast %27 : vector<1x128x286xf32> to vector<128x286xf32>
    %cst_30 = arith.constant dense<0.000000e+00> : vector<128x286xf32>
    %29 = tpu.matmul %26, %25, %cst_30 {dimension_numbers = #tpu.dot_dimension_numbers<[1], [0], [0], [1], [0, 0, 1, 1], [], []>} : vector<128x4xbf16>, vector<4x286xbf16>, vector<128x286xf32> -> vector<128x286xf32>
    %30 = arith.addf %28, %29 : vector<128x286xf32>
    %c0_31 = arith.constant 0 : index
    %c0_32 = arith.constant 0 : index
    %c0_33 = arith.constant 0 : index
    %31 = vector.load %arg4[%c0_31, %c0_32, %c0_33] : memref<1x128x286xf32, #tpu.memory_space<vmem>>, vector<1x128x286xf32>
    %32 = vector.shape_cast %31 : vector<1x128x286xf32> to vector<128x286xf32>
    %33 = vector.shape_cast %30 : vector<128x286xf32> to vector<1x128x286xf32>
    tpu.vector_store %arg4[%c0_31, %c0_32, %c0_33], %33 {strides = array<i32>} : memref<1x128x286xf32, #tpu.memory_space<vmem>>, vector<1x128x286xf32>,
    %c0_34 = arith.constant 0 : index
    %c0_35 = arith.constant 0 : index
    %c18 = arith.constant 18 : index
    %34 = vector.load %arg2[%c0_34, %c0_35, %c18] : memref<1x4x324xbf16, #tpu.memory_space<vmem>>, vector<1x4x286xbf16>
    %35 = vector.shape_cast %34 : vector<1x4x286xbf16> to vector<4x286xbf16>
    %c0_36 = arith.constant 0 : index
    %c12 = arith.constant 12 : index
    %36 = vector.load %arg3[%c0_36, %c12] : memref<128x36xbf16, #tpu.memory_space<vmem>>, vector<128x4xbf16>
    %c0_37 = arith.constant 0 : index
    %c0_38 = arith.constant 0 : index
    %c0_39 = arith.constant 0 : index
    %37 = vector.load %arg4[%c0_37, %c0_38, %c0_39] : memref<1x128x286xf32, #tpu.memory_space<vmem>>, vector<1x128x286xf32>
    %38 = vector.shape_cast %37 : vector<1x128x286xf32> to vector<128x286xf32>
    %cst_40 = arith.constant dense<0.000000e+00> : vector<128x286xf32>
    %39 = tpu.matmul %36, %35, %cst_40 {dimension_numbers = #tpu.dot_dimension_numbers<[1], [0], [0], [1], [0, 0, 1, 1], [], []>} : vector<128x4xbf16>, vector<4x286xbf16>, vector<128x286xf32> -> vector<128x286xf32>
    %40 = arith.addf %38, %39 : vector<128x286xf32>
    %c0_41 = arith.constant 0 : index
    %c0_42 = arith.constant 0 : index
    %c0_43 = arith.constant 0 : index
    %41 = vector.load %arg4[%c0_41, %c0_42, %c0_43] : memref<1x128x286xf32, #tpu.memory_space<vmem>>, vector<1x128x286xf32>
    %42 = vector.shape_cast %41 : vector<1x128x286xf32> to vector<128x286xf32>
    %43 = vector.shape_cast %40 : vector<128x286xf32> to vector<1x128x286xf32>
    tpu.vector_store %arg4[%c0_41, %c0_42, %c0_43], %43 {strides = array<i32>} : memref<1x128x286xf32, #tpu.memory_space<vmem>>, vector<1x128x286xf32>,
    %c0_44 = arith.constant 0 : index
    %c0_45 = arith.constant 0 : index
    %c19 = arith.constant 19 : index
    %44 = vector.load %arg2[%c0_44, %c0_45, %c19] : memref<1x4x324xbf16, #tpu.memory_space<vmem>>, vector<1x4x286xbf16>
    %45 = vector.shape_cast %44 : vector<1x4x286xbf16> to vector<4x286xbf16>
    %c0_46 = arith.constant 0 : index
    %c16 = arith.constant 16 : index
    %46 = vector.load %arg3[%c0_46, %c16] : memref<128x36xbf16, #tpu.memory_space<vmem>>, vector<128x4xbf16>
    %c0_47 = arith.constant 0 : index
    %c0_48 = arith.constant 0 : index
    %c0_49 = arith.constant 0 : index
    %47 = vector.load %arg4[%c0_47, %c0_48, %c0_49] : memref<1x128x286xf32, #tpu.memory_space<vmem>>, vector<1x128x286xf32>
    %48 = vector.shape_cast %47 : vector<1x128x286xf32> to vector<128x286xf32>
    %cst_50 = arith.constant dense<0.000000e+00> : vector<128x286xf32>
    %49 = tpu.matmul %46, %45, %cst_50 {dimension_numbers = #tpu.dot_dimension_numbers<[1], [0], [0], [1], [0, 0, 1, 1], [], []>} : vector<128x4xbf16>, vector<4x286xbf16>, vector<128x286xf32> -> vector<128x286xf32>
    %50 = arith.addf %48, %49 : vector<128x286xf32>
    %c0_51 = arith.constant 0 : index
    %c0_52 = arith.constant 0 : index
    %c0_53 = arith.constant 0 : index
    %51 = vector.load %arg4[%c0_51, %c0_52, %c0_53] : memref<1x128x286xf32, #tpu.memory_space<vmem>>, vector<1x128x286xf32>
    %52 = vector.shape_cast %51 : vector<1x128x286xf32> to vector<128x286xf32>
    %53 = vector.shape_cast %50 : vector<128x286xf32> to vector<1x128x286xf32>
    tpu.vector_store %arg4[%c0_51, %c0_52, %c0_53], %53 {strides = array<i32>} : memref<1x128x286xf32, #tpu.memory_space<vmem>>, vector<1x128x286xf32>,
    %c0_54 = arith.constant 0 : index
    %c0_55 = arith.constant 0 : index
    %c20 = arith.constant 20 : index
    %54 = vector.load %arg2[%c0_54, %c0_55, %c20] : memref<1x4x324xbf16, #tpu.memory_space<vmem>>, vector<1x4x286xbf16>
    %55 = vector.shape_cast %54 : vector<1x4x286xbf16> to vector<4x286xbf16>
    %c0_56 = arith.constant 0 : index
    %c20_57 = arith.constant 20 : index
    %56 = vector.load %arg3[%c0_56, %c20_57] : memref<128x36xbf16, #tpu.memory_space<vmem>>, vector<128x4xbf16>
    %c0_58 = arith.constant 0 : index
    %c0_59 = arith.constant 0 : index
    %c0_60 = arith.constant 0 : index
    %57 = vector.load %arg4[%c0_58, %c0_59, %c0_60] : memref<1x128x286xf32, #tpu.memory_space<vmem>>, vector<1x128x286xf32>
    %58 = vector.shape_cast %57 : vector<1x128x286xf32> to vector<128x286xf32>
    %cst_61 = arith.constant dense<0.000000e+00> : vector<128x286xf32>
    %59 = tpu.matmul %56, %55, %cst_61 {dimension_numbers = #tpu.dot_dimension_numbers<[1], [0], [0], [1], [0, 0, 1, 1], [], []>} : vector<128x4xbf16>, vector<4x286xbf16>, vector<128x286xf32> -> vector<128x286xf32>
    %60 = arith.addf %58, %59 : vector<128x286xf32>
    %c0_62 = arith.constant 0 : index
    %c0_63 = arith.constant 0 : index
    %c0_64 = arith.constant 0 : index
    %61 = vector.load %arg4[%c0_62, %c0_63, %c0_64] : memref<1x128x286xf32, #tpu.memory_space<vmem>>, vector<1x128x286xf32>
    %62 = vector.shape_cast %61 : vector<1x128x286xf32> to vector<128x286xf32>
    %63 = vector.shape_cast %60 : vector<128x286xf32> to vector<1x128x286xf32>
    tpu.vector_store %arg4[%c0_62, %c0_63, %c0_64], %63 {strides = array<i32>} : memref<1x128x286xf32, #tpu.memory_space<vmem>>, vector<1x128x286xf32>,
    %c0_65 = arith.constant 0 : index
    %c0_66 = arith.constant 0 : index
    %c36 = arith.constant 36 : index
    %64 = vector.load %arg2[%c0_65, %c0_66, %c36] : memref<1x4x324xbf16, #tpu.memory_space<vmem>>, vector<1x4x286xbf16>
    %65 = vector.shape_cast %64 : vector<1x4x286xbf16> to vector<4x286xbf16>
    %c0_67 = arith.constant 0 : index
    %c24 = arith.constant 24 : index
    %66 = vector.load %arg3[%c0_67, %c24] : memref<128x36xbf16, #tpu.memory_space<vmem>>, vector<128x4xbf16>
    %c0_68 = arith.constant 0 : index
    %c0_69 = arith.constant 0 : index
    %c0_70 = arith.constant 0 : index
    %67 = vector.load %arg4[%c0_68, %c0_69, %c0_70] : memref<1x128x286xf32, #tpu.memory_space<vmem>>, vector<1x128x286xf32>
    %68 = vector.shape_cast %67 : vector<1x128x286xf32> to vector<128x286xf32>
    %cst_71 = arith.constant dense<0.000000e+00> : vector<128x286xf32>
    %69 = tpu.matmul %66, %65, %cst_71 {dimension_numbers = #tpu.dot_dimension_numbers<[1], [0], [0], [1], [0, 0, 1, 1], [], []>} : vector<128x4xbf16>, vector<4x286xbf16>, vector<128x286xf32> -> vector<128x286xf32>
    %70 = arith.addf %68, %69 : vector<128x286xf32>
    %c0_72 = arith.constant 0 : index
    %c0_73 = arith.constant 0 : index
    %c0_74 = arith.constant 0 : index
    %71 = vector.load %arg4[%c0_72, %c0_73, %c0_74] : memref<1x128x286xf32, #tpu.memory_space<vmem>>, vector<1x128x286xf32>
    %72 = vector.shape_cast %71 : vector<1x128x286xf32> to vector<128x286xf32>
    %73 = vector.shape_cast %70 : vector<128x286xf32> to vector<1x128x286xf32>
    tpu.vector_store %arg4[%c0_72, %c0_73, %c0_74], %73 {strides = array<i32>} : memref<1x128x286xf32, #tpu.memory_space<vmem>>, vector<1x128x286xf32>,
    %c0_75 = arith.constant 0 : index
    %c0_76 = arith.constant 0 : index
    %c37 = arith.constant 37 : index
    %74 = vector.load %arg2[%c0_75, %c0_76, %c37] : memref<1x4x324xbf16, #tpu.memory_space<vmem>>, vector<1x4x286xbf16>
    %75 = vector.shape_cast %74 : vector<1x4x286xbf16> to vector<4x286xbf16>
    %c0_77 = arith.constant 0 : index
    %c28 = arith.constant 28 : index
    %76 = vector.load %arg3[%c0_77, %c28] : memref<128x36xbf16, #tpu.memory_space<vmem>>, vector<128x4xbf16>
    %c0_78 = arith.constant 0 : index
    %c0_79 = arith.constant 0 : index
    %c0_80 = arith.constant 0 : index
    %77 = vector.load %arg4[%c0_78, %c0_79, %c0_80] : memref<1x128x286xf32, #tpu.memory_space<vmem>>, vector<1x128x286xf32>
    %78 = vector.shape_cast %77 : vector<1x128x286xf32> to vector<128x286xf32>
    %cst_81 = arith.constant dense<0.000000e+00> : vector<128x286xf32>
    %79 = tpu.matmul %76, %75, %cst_81 {dimension_numbers = #tpu.dot_dimension_numbers<[1], [0], [0], [1], [0, 0, 1, 1], [], []>} : vector<128x4xbf16>, vector<4x286xbf16>, vector<128x286xf32> -> vector<128x286xf32>
    %80 = arith.addf %78, %79 : vector<128x286xf32>
    %c0_82 = arith.constant 0 : index
    %c0_83 = arith.constant 0 : index
    %c0_84 = arith.constant 0 : index
    %81 = vector.load %arg4[%c0_82, %c0_83, %c0_84] : memref<1x128x286xf32, #tpu.memory_space<vmem>>, vector<1x128x286xf32>
    %82 = vector.shape_cast %81 : vector<1x128x286xf32> to vector<128x286xf32>
    %83 = vector.shape_cast %80 : vector<128x286xf32> to vector<1x128x286xf32>
    tpu.vector_store %arg4[%c0_82, %c0_83, %c0_84], %83 {strides = array<i32>} : memref<1x128x286xf32, #tpu.memory_space<vmem>>, vector<1x128x286xf32>,
    %c0_85 = arith.constant 0 : index
    %c0_86 = arith.constant 0 : index
    %c38 = arith.constant 38 : index
    %84 = vector.load %arg2[%c0_85, %c0_86, %c38] : memref<1x4x324xbf16, #tpu.memory_space<vmem>>, vector<1x4x286xbf16>
    %85 = vector.shape_cast %84 : vector<1x4x286xbf16> to vector<4x286xbf16>
    %c0_87 = arith.constant 0 : index
    %c32 = arith.constant 32 : index
    %86 = vector.load %arg3[%c0_87, %c32] : memref<128x36xbf16, #tpu.memory_space<vmem>>, vector<128x4xbf16>
    %c0_88 = arith.constant 0 : index
    %c0_89 = arith.constant 0 : index
    %c0_90 = arith.constant 0 : index
    %87 = vector.load %arg4[%c0_88, %c0_89, %c0_90] : memref<1x128x286xf32, #tpu.memory_space<vmem>>, vector<1x128x286xf32>
    %88 = vector.shape_cast %87 : vector<1x128x286xf32> to vector<128x286xf32>
    %cst_91 = arith.constant dense<0.000000e+00> : vector<128x286xf32>
    %89 = tpu.matmul %86, %85, %cst_91 {dimension_numbers = #tpu.dot_dimension_numbers<[1], [0], [0], [1], [0, 0, 1, 1], [], []>} : vector<128x4xbf16>, vector<4x286xbf16>, vector<128x286xf32> -> vector<128x286xf32>
    %90 = arith.addf %88, %89 : vector<128x286xf32>
    %c0_92 = arith.constant 0 : index
    %c0_93 = arith.constant 0 : index
    %c0_94 = arith.constant 0 : index
    %91 = vector.load %arg4[%c0_92, %c0_93, %c0_94] : memref<1x128x286xf32, #tpu.memory_space<vmem>>, vector<1x128x286xf32>
    %92 = vector.shape_cast %91 : vector<1x128x286xf32> to vector<128x286xf32>
    %93 = vector.shape_cast %90 : vector<128x286xf32> to vector<1x128x286xf32>
    tpu.vector_store %arg4[%c0_92, %c0_93, %c0_94], %93 {strides = array<i32>} : memref<1x128x286xf32, #tpu.memory_space<vmem>>, vector<1x128x286xf32>,
    return
  }
  func.func @transform_0(%arg0: i32, %arg1: i32) -> (i32, i32, i32) {
    %c0_i32 = arith.constant 0 : i32
    %c0_i32_0 = arith.constant 0 : i32
    %c0_i32_1 = arith.constant 0 : i32
    return %arg0, %c0_i32, %c0_i32_0 : i32, i32, i32
  }
  func.func @transform_1(%arg0: i32, %arg1: i32) -> (i32, i32) {
    %c0_i32 = arith.constant 0 : i32
    %c0_i32_0 = arith.constant 0 : i32
    return %arg1, %c0_i32 : i32, i32
  }
  func.func @transform_2(%arg0: i32, %arg1: i32) -> (i32, i32, i32) {
    %c0_i32 = arith.constant 0 : i32
    %c0_i32_0 = arith.constant 0 : i32
    return %arg0, %arg1, %c0_i32 : i32, i32, i32
  }
}

</mosaic_0001>

<bundles_post_ra>
// kernel: shared_mix_quant_conv2d.2
= control target key start
LH: loop header
LB: loop body
LE: loop exit
PB: predicated region body
PF: predicated region fallthrough
CT: control target
= control target key end

     0   :  { %9 = vsyncpa [#allocation4], 0  ;;  %s954_s0 = inlined_call_operand.<no memory space> [shape: f32[1], index: 0, kind: input, shape index: {}]   ;;  %s955_s1 = inlined_call_operand.vmem [shape: f32[3], index: 1, kind: input, shape index: {}]   ;;  %s956_s2 = inlined_call_operand.vmem [shape: f32[128,36], index: 2, kind: input, shape index: {}]   ;;  %s957_s3 = inlined_call_operand.vmem [shape: bf16[128,36], index: 3, kind: output, shape index: {}]  }
   0x1   :  { %s18_s14 = sshll.u32 %s955_s1, 4  ;;  %s19_s14 = int_to_ptr.vmem [resolvable:$true] %s18_s14 }
   0x2   :  { %s517_s15 = scalar_lea.vmem %s19_s14, 16  ;;  %p522_p1 = scmp.lt.s32.totalorder %s19_s14, %s19_s14 }
   0x3   :  { %p518_p0 = scmp.ne.s32.totalorder %s19_s14, %s517_s15  ;;  %p523_p2 = scmp.lt.s32.totalorder %s517_s15, %s517_s15 }
   0x5   :  { %p524_p3 = por %p523_p2, %p522_p1 }
   0x7   :  { %p525_p4 = pnand %p524_p3, %p518_p0 }
   0x9   :  { %528 = shalt.err (!%p525_p4)
}
   0xa   :  { %s531_s16 = smov [#allocation3]  }
   0xb   :  { %21 = dma.vmem_to_smem %s19_s14, 16, %s531_s16, [#allocation4]  }
   0xc   :  { %529 = dma.done.wait [#allocation4], 16  }
   0xd   :  { %530 = vsyncadd [#allocation4], 4294967280 }
   0xe   :  { %27 = sfence }
   0xf   :  { %p45_p5 = scmp.gt.f32.partialorder %s954_s0, 0.0  ;;  %s47_s1 = ssub.f32 0.0, %s954_s0  ;;  %v29_v0 = vld [vmem:[%s956_s2] sm:$0xff]  ;;  %v30_v2 = vld [vmem:[%s956_s2 + $0x8] sm:$0xff]  ;;  %v31_v3 = vld [vmem:[%s956_s2 + $0x10] sm:$0xff]  ;;  %v65_v8 = vstv %s954_s0  ;;  %vm406_vm0 = vcmask 289792  }
  0x10   :  { %s168_s25 = smul.f32 0.14285715, %s954_s0  ;;  %s589_s10 = sld [smem:[#allocation3]]  ;;  %v32_v6 = vld [vmem:[%s956_s2 + $0x18] sm:$0xff]  ;;  %v33_v7 = vld [vmem:[%s956_s2 + $0x20] sm:$0xff]  ;;  %v34_v11 = vld [vmem:[%s956_s2 + $0x28] sm:$0xff] }
  0x11   :  { %s46_s30 = scalar_select %p45_p5, %s954_s0, 1.0  ;;  %v574_v1 = vstv %s47_s1  ;;  %v35_v12 = vld [vmem:[%s956_s2 + $0x30] sm:$0xff]  ;;  %v36_v14 = vld [vmem:[%s956_s2 + $0x38] sm:$0xff]  ;;  %v37_v15 = vld [vmem:[%s956_s2 + $0x40] sm:$0xff] }
  0x12   :  { %s959_s25 = smov (!%p45_p5, %s168_s25), 1.0  ;;  %v49_v4 = vmax.f32 %v574_v1, %v29_v0  ;;  %s256_s13 = smul.f32 0.007874016, %s954_s0  ;;  %v50_v10 = vmax.f32 %v574_v1, %v30_v2  ;;  %v51_v13 = vmax.f32 %v574_v1, %v31_v3  ;;  %v52_v16 = vmax.f32 %v574_v1, %v32_v6  ;;  %v38_v18 = vld [vmem:[%s956_s2 + $0x48] sm:$0xff]  ;;  %v39_v19 = vld [vmem:[%s956_s2 + $0x50] sm:$0xff]  ;;  %v40_v20 = vld [vmem:[%s956_s2 + $0x58] sm:$0xff] }
  0x13   :  { %v587_v5 = vstv %s46_s30  ;;  %v604_v9 = vstv %s959_s25  ;;  %s606_s20 = sld [smem:[#allocation3 + $0x1]]  ;;  %s608_s1 = sld [smem:[#allocation3 + $0x2]]  ;;  %v53_v17 = vmax.f32 %v574_v1, %v33_v7  ;;  %v54_v23 = vmax.f32 %v574_v1, %v34_v11  ;;  %v41_v25 = vld [vmem:[%s956_s2 + $0x60] sm:$0xff]  ;;  %v42_v26 = vld [vmem:[%s956_s2 + $0x68] sm:$0xff] }
  0x14   :  { %511 = vrcp.f32 %v587_v5  ;;  %s961_s13 = smov (!%p45_p5, %s256_s13), 1.0  ;;  %v66_v21 = vmin.f32 %v65_v8, %v49_v4  ;;  %v55_v24 = vmax.f32 %v574_v1, %v35_v12  ;;  %v67_v27 = vmin.f32 %v65_v8, %v50_v10  ;;  %v43_v30 = vld [vmem:[%s956_s2 + $0x70] sm:$0xff]  ;;  %v44_v31 = vld [vmem:[%s956_s2 + $0x78] sm:$0xff] }
  0x15   :  { %513 = vrcp.f32 %v604_v9  ;;  %v640_v22 = vstv %s961_s13  ;;  %v56_v28 = vmax.f32 %v574_v1, %v36_v14  ;;  %v57_v29 = vmax.f32 %v574_v1, %v37_v15 }
  0x16   :  { %515 = vrcp.f32 %v640_v22  ;;  %v68_v32 = vmin.f32 %v65_v8, %v51_v13  ;;  %v58_v33 = vmax.f32 %v574_v1, %v38_v18  ;;  %v59_v34 = vmax.f32 %v574_v1, %v39_v19 }
  0x17   :  { %v60_v35 = vmax.f32 %v574_v1, %v40_v20  ;;  %v662_v36 = vmin.f32 %v65_v8, %v52_v16  ;;  %v664_v37 = vmin.f32 %v65_v8, %v53_v17  ;;  %v61_v38 = vmax.f32 %v574_v1, %v41_v25 }
  0x18   :  { %v62_v39 = vmax.f32 %v574_v1, %v42_v26  ;;  %v669_v40 = vstv %s589_s10  ;;  %v671_v41 = vmin.f32 %v65_v8, %v54_v23  ;;  %v63_v42 = vmax.f32 %v574_v1, %v43_v30 }
  0x19   :  { %v64_v43 = vmax.f32 %v574_v1, %v44_v31  ;;  %v676_v44 = vstv %s606_s20  ;;  %v678_v45 = vmin.f32 %v65_v8, %v55_v24  ;;  %v680_v46 = vmin.f32 %v65_v8, %v56_v28 }
  0x1a   :  { %v682_v47 = vmin.f32 %v65_v8, %v57_v29  ;;  %v685_v48 = vstv %s608_s1  ;;  %v687_v49 = vmin.f32 %v65_v8, %v58_v33  ;;  %v689_v50 = vmin.f32 %v65_v8, %v59_v34 }
  0x1b   :  { %v691_v51 = vmin.f32 %v65_v8, %v60_v35  ;;  %v695_v53 = vmin.f32 %v65_v8, %v61_v38  ;;  %v697_v54 = vmin.f32 %v65_v8, %v62_v39  ;;  %v699_v55 = vmin.f32 %v65_v8, %v63_v42 }
  0x1c   :  { %v701_v56 = vmin.f32 %v65_v8, %v64_v43 }
  0x1e   :  { %v693_v52 = vpop.eup %511 }
  0x1f   :  { %v703_v57 = vpop.eup %513  ;;  %v84_v58 = vmul.f32 %v693_v52, %v66_v21  ;;  %v85_v59 = vmul.f32 %v693_v52, %v67_v27  ;;  %v86_v60 = vmul.f32 %v693_v52, %v68_v32  ;;  %v87_v61 = vmul.f32 %v693_v52, %v662_v36 }
  0x20   :  { %v172_v62 = vmul.f32 %v703_v57, %v66_v21  ;;  %v173_v63 = vmul.f32 %v703_v57, %v67_v27  ;;  %v174_v0 = vmul.f32 %v703_v57, %v68_v32  ;;  %v175_v1 = vmul.f32 %v703_v57, %v662_v36  ;;  %v715_v7 = vpop.eup %515 }
  0x21   :  { %v462_v2 = vround.rtne.f32 %v84_v58  ;;  %v463_v3 = vround.rtne.f32 %v85_v59  ;;  %v464_v4 = vround.rtne.f32 %v86_v60  ;;  %v465_v6 = vround.rtne.f32 %v87_v61 }
  0x22   :  { %v478_v8 = vround.rtne.f32 %v172_v62  ;;  %v479_v10 = vround.rtne.f32 %v173_v63  ;;  %v480_v11 = vround.rtne.f32 %v174_v0  ;;  %v481_v12 = vround.rtne.f32 %v175_v1 }
  0x23   :  { %v116_v13 = vmul.f32 %v462_v2, %v587_v5  ;;  %v260_v14 = vmul.f32 %v715_v7, %v66_v21  ;;  %v117_v15 = vmul.f32 %v463_v3, %v587_v5  ;;  %v261_v16 = vmul.f32 %v715_v7, %v67_v27 }
  0x24   :  { %v204_v17 = vmul.f32 %v478_v8, %v604_v9  ;;  %v205_v18 = vmul.f32 %v479_v10, %v604_v9  ;;  %v118_v19 = vmul.f32 %v464_v4, %v587_v5  ;;  %v206_v20 = vmul.f32 %v480_v11, %v604_v9 }
  0x25   :  { %v134_v23 = vmul.f32 %v669_v40, %v116_v13  ;;  %v494_v24 = vround.rtne.f32 %v260_v14  ;;  %v135_v25 = vmul.f32 %v669_v40, %v117_v15  ;;  %v495_v26 = vround.rtne.f32 %v261_v16 }
  0x26   :  { %v222_v21 = vmul.f32 %v676_v44, %v204_v17  ;;  %v223_v28 = vmul.f32 %v676_v44, %v205_v18  ;;  %v136_v27 = vmul.f32 %v669_v40, %v118_v19  ;;  %v224_v29 = vmul.f32 %v676_v44, %v206_v20 }
  0x27   :  { %v292_v30 = vmul.f32 %v494_v24, %v640_v22  ;;  %v293_v31 = vmul.f32 %v495_v26, %v640_v22  ;;  %v262_v33 = vmul.f32 %v715_v7, %v68_v32  ;;  %v119_v34 = vmul.f32 %v465_v6, %v587_v5 }
  0x28   :  { %v238_v35 = vadd.f32 %v222_v21, %v134_v23  ;;  %v239_v38 = vadd.f32 %v223_v28, %v135_v25  ;;  %v240_v39 = vadd.f32 %v224_v29, %v136_v27  ;;  %v207_v42 = vmul.f32 %v481_v12, %v604_v9 }
  0x29   :  { %v310_v43 = vmul.f32 %v685_v48, %v292_v30  ;;  %v311_v58 = vmul.f32 %v685_v48, %v293_v31  ;;  %v496_v59 = vround.rtne.f32 %v262_v33  ;;  %v137_v60 = vmul.f32 %v669_v40, %v119_v34 }
  0x2a   :  { %v225_v61 = vmul.f32 %v676_v44, %v207_v42  ;;  %v263_v62 = vmul.f32 %v715_v7, %v662_v36  ;;  %v88_v32 = vmul.f32 %v693_v52, %v664_v37  ;;  %v176_v63 = vmul.f32 %v703_v57, %v664_v37 }
  0x2b   :  { %v326_v0 = vadd.f32 %v310_v43, %v238_v35  ;;  %v327_v1 = vadd.f32 %v311_v58, %v239_v38  ;;  %v294_v2 = vmul.f32 %v496_v59, %v640_v22  ;;  %v264_v3 = vmul.f32 %v715_v7, %v664_v37 }
  0x2c   :  { %v241_v4 = vadd.f32 %v225_v61, %v137_v60  ;;  %v497_v6 = vround.rtne.f32 %v263_v62  ;;  %v466_v8 = vround.rtne.f32 %v88_v32  ;;  %v482_v10 = vround.rtne.f32 %v176_v63 }
  0x2d   :  { %v446_v11 = vpack.c.bf16 %v326_v0, %v326_v0  ;;  %v447_v12 = vpack.c.bf16 %v327_v1, %v327_v1  ;;  %v312_v36 = vmul.f32 %v685_v48, %v294_v2  ;;  %v498_v13 = vround.rtne.f32 %v264_v3 }
  0x2e   :  { %v295_v14 = vmul.f32 %v497_v6, %v640_v22  ;;  %v120_v15 = vmul.f32 %v466_v8, %v587_v5  ;;  %v208_v16 = vmul.f32 %v482_v10, %v604_v9  ;;  %v89_v17 = vmul.f32 %v693_v52, %v671_v41 }
  0x2f   :  { %407 = vst.msk [vmem:[%s957_s3] sm:$0xf] %vm406_vm0, %v446_v11  ;;  %408 = vst.msk [vmem:[%s957_s3 + $0x4] sm:$0xf] %vm406_vm0, %v447_v12  ;;  %v328_v37 = vadd.f32 %v312_v36, %v240_v39  ;;  %v296_v18 = vmul.f32 %v498_v13, %v640_v22  ;;  %v177_v19 = vmul.f32 %v703_v57, %v671_v41 }
  0x30   :  { %v265_v20 = vmul.f32 %v715_v7, %v671_v41  ;;  %v313_v23 = vmul.f32 %v685_v48, %v295_v14  ;;  %v138_v24 = vmul.f32 %v669_v40, %v120_v15  ;;  %v226_v25 = vmul.f32 %v676_v44, %v208_v16 }
  0x31   :  { %v467_v26 = vround.rtne.f32 %v89_v17  ;;  %v448_v21 = vpack.c.bf16 %v328_v37, %v328_v37  ;;  %v314_v28 = vmul.f32 %v685_v48, %v296_v18  ;;  %v483_v27 = vround.rtne.f32 %v177_v19 }
  0x32   :  { %v499_v29 = vround.rtne.f32 %v265_v20  ;;  %v329_v30 = vadd.f32 %v313_v23, %v241_v4  ;;  %v242_v31 = vadd.f32 %v226_v25, %v138_v24  ;;  %v90_v34 = vmul.f32 %v693_v52, %v678_v45 }
  0x33   :  { %v121_v33 = vmul.f32 %v467_v26, %v587_v5  ;;  %409 = vst.msk [vmem:[%s957_s3 + $0x8] sm:$0xf] %vm406_vm0, %v448_v21  ;;  %v209_v41 = vmul.f32 %v483_v27, %v604_v9  ;;  %v178_v38 = vmul.f32 %v703_v57, %v678_v45  ;;  %v266_v39 = vmul.f32 %v715_v7, %v678_v45 }
  0x34   :  { %v297_v35 = vmul.f32 %v499_v29, %v640_v22  ;;  %v449_v42 = vpack.c.bf16 %v329_v30, %v329_v30  ;;  %v330_v43 = vadd.f32 %v314_v28, %v242_v31  ;;  %v468_v59 = vround.rtne.f32 %v90_v34 }
  0x35   :  { %v139_v58 = vmul.f32 %v669_v40, %v121_v33  ;;  %v227_v60 = vmul.f32 %v676_v44, %v209_v41  ;;  %v484_v62 = vround.rtne.f32 %v178_v38  ;;  %v500_v32 = vround.rtne.f32 %v266_v39 }
  0x36   :  { %v315_v61 = vmul.f32 %v685_v48, %v297_v35  ;;  %410 = vst.msk [vmem:[%s957_s3 + $0xc] sm:$0xf] %vm406_vm0, %v449_v42  ;;  %v450_v63 = vpack.c.bf16 %v330_v43, %v330_v43  ;;  %v122_v0 = vmul.f32 %v468_v59, %v587_v5  ;;  %v91_v45 = vmul.f32 %v693_v52, %v680_v46 }
  0x37   :  { %v179_v1 = vmul.f32 %v703_v57, %v680_v46  ;;  %v243_v2 = vadd.f32 %v227_v60, %v139_v58  ;;  %v210_v3 = vmul.f32 %v484_v62, %v604_v9  ;;  %v298_v4 = vmul.f32 %v500_v32, %v640_v22 }
  0x38   :  { %v267_v6 = vmul.f32 %v715_v7, %v680_v46  ;;  %411 = vst.msk [vmem:[%s957_s3 + $0x10] sm:$0xf] %vm406_vm0, %v450_v63  ;;  %v140_v8 = vmul.f32 %v669_v40, %v122_v0  ;;  %v469_v10 = vround.rtne.f32 %v91_v45  ;;  %v92_v12 = vmul.f32 %v693_v52, %v682_v47 }
  0x39   :  { %v485_v11 = vround.rtne.f32 %v179_v1  ;;  %v331_v36 = vadd.f32 %v315_v61, %v243_v2  ;;  %v228_v13 = vmul.f32 %v676_v44, %v210_v3  ;;  %v316_v14 = vmul.f32 %v685_v48, %v298_v4 }
  0x3a   :  { %v501_v15 = vround.rtne.f32 %v267_v6  ;;  %v123_v46 = vmul.f32 %v469_v10, %v587_v5  ;;  %v470_v17 = vround.rtne.f32 %v92_v12  ;;  %v180_v37 = vmul.f32 %v703_v57, %v682_v47 }
  0x3b   :  { %v211_v16 = vmul.f32 %v485_v11, %v604_v9  ;;  %v451_v18 = vpack.c.bf16 %v331_v36, %v331_v36  ;;  %v244_v19 = vadd.f32 %v228_v13, %v140_v8  ;;  %v268_v23 = vmul.f32 %v715_v7, %v682_v47 }
  0x3c   :  { %v299_v20 = vmul.f32 %v501_v15, %v640_v22  ;;  %v141_v24 = vmul.f32 %v669_v40, %v123_v46  ;;  %v124_v26 = vmul.f32 %v470_v17, %v587_v5  ;;  %v486_v21 = vround.rtne.f32 %v180_v37 }
  0x3d   :  { %v229_v25 = vmul.f32 %v676_v44, %v211_v16  ;;  %412 = vst.msk [vmem:[%s957_s3 + $0x14] sm:$0xf] %vm406_vm0, %v451_v18  ;;  %v332_v28 = vadd.f32 %v316_v14, %v244_v19  ;;  %v502_v29 = vround.rtne.f32 %v268_v23  ;;  %v93_v30 = vmul.f32 %v693_v52, %v687_v49 }
  0x3e   :  { %v317_v27 = vmul.f32 %v685_v48, %v299_v20  ;;  %v142_v31 = vmul.f32 %v669_v40, %v124_v26  ;;  %v212_v33 = vmul.f32 %v486_v21, %v604_v9  ;;  %v181_v34 = vmul.f32 %v703_v57, %v687_v49 }
  0x3f   :  { %v245_v47 = vadd.f32 %v229_v25, %v141_v24  ;;  %v452_v41 = vpack.c.bf16 %v332_v28, %v332_v28  ;;  %v300_v35 = vmul.f32 %v502_v29, %v640_v22  ;;  %v471_v38 = vround.rtne.f32 %v93_v30 }
  0x40   :  { %v269_v39 = vmul.f32 %v715_v7, %v687_v49  ;;  %v230_v43 = vmul.f32 %v676_v44, %v212_v33  ;;  %v487_v58 = vround.rtne.f32 %v181_v34  ;;  %v94_v59 = vmul.f32 %v693_v52, %v689_v50 }
  0x41   :  { %v333_v42 = vadd.f32 %v317_v27, %v245_v47  ;;  %413 = vst.msk [vmem:[%s957_s3 + $0x18] sm:$0xf] %vm406_vm0, %v452_v41  ;;  %v318_v60 = vmul.f32 %v685_v48, %v300_v35  ;;  %v125_v61 = vmul.f32 %v471_v38, %v587_v5  ;;  %v182_v49 = vmul.f32 %v703_v57, %v689_v50 }
  0x42   :  { %v503_v62 = vround.rtne.f32 %v269_v39  ;;  %v246_v63 = vadd.f32 %v230_v43, %v142_v31  ;;  %v213_v0 = vmul.f32 %v487_v58, %v604_v9  ;;  %v472_v45 = vround.rtne.f32 %v94_v59 }
  0x43   :  { %v453_v32 = vpack.c.bf16 %v333_v42, %v333_v42  ;;  %v143_v1 = vmul.f32 %v669_v40, %v125_v61  ;;  %v488_v3 = vround.rtne.f32 %v182_v49  ;;  %v270_v4 = vmul.f32 %v715_v7, %v689_v50 }
  0x44   :  { %v301_v2 = vmul.f32 %v503_v62, %v640_v22  ;;  %v334_v6 = vadd.f32 %v318_v60, %v246_v63  ;;  %v231_v8 = vmul.f32 %v676_v44, %v213_v0  ;;  %v126_v10 = vmul.f32 %v472_v45, %v587_v5 }
  0x45   :  { %414 = vst.msk [vmem:[%s957_s3 + $0x1c] sm:$0xf] %vm406_vm0, %v453_v32  ;;  %v95_v11 = vmul.f32 %v693_v52, %v691_v51  ;;  %v214_v36 = vmul.f32 %v488_v3, %v604_v9  ;;  %v504_v13 = vround.rtne.f32 %v270_v4  ;;  %v183_v50 = vmul.f32 %v703_v57, %v691_v51 }
  0x46   :  { %v319_v12 = vmul.f32 %v685_v48, %v301_v2  ;;  %v454_v14 = vpack.c.bf16 %v334_v6, %v334_v6  ;;  %v247_v15 = vadd.f32 %v231_v8, %v143_v1  ;;  %v144_v46 = vmul.f32 %v669_v40, %v126_v10 }
  0x47   :  { %v473_v16 = vround.rtne.f32 %v95_v11  ;;  %v232_v17 = vmul.f32 %v676_v44, %v214_v36  ;;  %v302_v37 = vmul.f32 %v504_v13, %v640_v22  ;;  %v489_v18 = vround.rtne.f32 %v183_v50 }
  0x48   :  { %v271_v19 = vmul.f32 %v715_v7, %v691_v51  ;;  %415 = vst.msk [vmem:[%s957_s3 + $0x20] sm:$0xf] %vm406_vm0, %v454_v14  ;;  %v335_v20 = vadd.f32 %v319_v12, %v247_v15  ;;  %v96_v24 = vmul.f32 %v693_v52, %v695_v53  ;;  %v184_v25 = vmul.f32 %v703_v57, %v695_v53 }
  0x49   :  { %v127_v23 = vmul.f32 %v473_v16, %v587_v5  ;;  %v248_v26 = vadd.f32 %v232_v17, %v144_v46  ;;  %v320_v21 = vmul.f32 %v685_v48, %v302_v37  ;;  %v215_v28 = vmul.f32 %v489_v18, %v604_v9 }
  0x4a   :  { %v505_v51 = vround.rtne.f32 %v271_v19  ;;  %v455_v27 = vpack.c.bf16 %v335_v20, %v335_v20  ;;  %v474_v30 = vround.rtne.f32 %v96_v24  ;;  %v490_v47 = vround.rtne.f32 %v184_v25 }
  0x4b   :  { %v145_v29 = vmul.f32 %v669_v40, %v127_v23  ;;  %v336_v31 = vadd.f32 %v320_v21, %v248_v26  ;;  %v233_v33 = vmul.f32 %v676_v44, %v215_v28  ;;  %v272_v41 = vmul.f32 %v715_v7, %v695_v53 }
  0x4c   :  { %v303_v34 = vmul.f32 %v505_v51, %v640_v22  ;;  %416 = vst.msk [vmem:[%s957_s3 + $0x24] sm:$0xf] %vm406_vm0, %v455_v27  ;;  %v128_v35 = vmul.f32 %v474_v30, %v587_v5  ;;  %v216_v38 = vmul.f32 %v490_v47, %v604_v9  ;;  %v97_v39 = vmul.f32 %v693_v52, %v697_v54 }
  0x4d   :  { %v185_v42 = vmul.f32 %v703_v57, %v697_v54  ;;  %v456_v43 = vpack.c.bf16 %v336_v31, %v336_v31  ;;  %v249_v58 = vadd.f32 %v233_v33, %v145_v29  ;;  %v506_v53 = vround.rtne.f32 %v272_v41 }
  0x4e   :  { %v321_v59 = vmul.f32 %v685_v48, %v303_v34  ;;  %v146_v60 = vmul.f32 %v669_v40, %v128_v35  ;;  %v234_v61 = vmul.f32 %v676_v44, %v216_v38  ;;  %v475_v62 = vround.rtne.f32 %v97_v39 }
  0x4f   :  { %v491_v49 = vround.rtne.f32 %v185_v42  ;;  %417 = vst.msk [vmem:[%s957_s3 + $0x28] sm:$0xf] %vm406_vm0, %v456_v43  ;;  %v304_v63 = vmul.f32 %v506_v53, %v640_v22  ;;  %v273_v0 = vmul.f32 %v715_v7, %v697_v54  ;;  %v98_v45 = vmul.f32 %v693_v52, %v699_v55 }
  0x50   :  { %v337_v32 = vadd.f32 %v321_v59, %v249_v58  ;;  %v250_v1 = vadd.f32 %v234_v61, %v146_v60  ;;  %v129_v2 = vmul.f32 %v475_v62, %v587_v5  ;;  %v186_v4 = vmul.f32 %v703_v57, %v699_v55 }
  0x51   :  { %v217_v3 = vmul.f32 %v491_v49, %v604_v9  ;;  %v322_v8 = vmul.f32 %v685_v48, %v304_v63  ;;  %v507_v10 = vround.rtne.f32 %v273_v0  ;;  %v476_v11 = vround.rtne.f32 %v98_v45 }
  0x52   :  { %v457_v6 = vpack.c.bf16 %v337_v32, %v337_v32  ;;  %v147_v12 = vmul.f32 %v669_v40, %v129_v2  ;;  %v492_v36 = vround.rtne.f32 %v186_v4  ;;  %v274_v13 = vmul.f32 %v715_v7, %v699_v55 }
  0x53   :  { %v235_v54 = vmul.f32 %v676_v44, %v217_v3  ;;  %v338_v50 = vadd.f32 %v322_v8, %v250_v1  ;;  %v305_v14 = vmul.f32 %v507_v10, %v640_v22  ;;  %v130_v15 = vmul.f32 %v476_v11, %v587_v5 }
  0x54   :  { %418 = vst.msk [vmem:[%s957_s3 + $0x2c] sm:$0xf] %vm406_vm0, %v457_v6  ;;  %v99_v46 = vmul.f32 %v693_v52, %v701_v56  ;;  %v218_v17 = vmul.f32 %v492_v36, %v604_v9  ;;  %v508_v37 = vround.rtne.f32 %v274_v13  ;;  %v187_v55 = vmul.f32 %v703_v57, %v701_v56 }
  0x55   :  { %v251_v16 = vadd.f32 %v235_v54, %v147_v12  ;;  %v458_v18 = vpack.c.bf16 %v338_v50, %v338_v50  ;;  %v323_v19 = vmul.f32 %v685_v48, %v305_v14  ;;  %v148_v20 = vmul.f32 %v669_v40, %v130_v15 }
  0x56   :  { %v477_v23 = vround.rtne.f32 %v99_v46  ;;  %v236_v24 = vmul.f32 %v676_v44, %v218_v17  ;;  %v306_v25 = vmul.f32 %v508_v37, %v640_v22  ;;  %v493_v26 = vround.rtne.f32 %v187_v55 }
  0x57   :  { %v275_v52 = vmul.f32 %v715_v7, %v701_v56  ;;  %419 = vst.msk [vmem:[%s957_s3 + $0x30] sm:$0xf] %vm406_vm0, %v458_v18  ;;  %v339_v57 = vadd.f32 %v323_v19, %v251_v16 }
  0x58   :  { %v131_v21 = vmul.f32 %v477_v23, %v587_v5  ;;  %v252_v28 = vadd.f32 %v236_v24, %v148_v20  ;;  %v324_v51 = vmul.f32 %v685_v48, %v306_v25  ;;  %v219_v27 = vmul.f32 %v493_v26, %v604_v9 }
  0x59   :  { %v509_v29 = vround.rtne.f32 %v275_v52  ;;  %v459_v30 = vpack.c.bf16 %v339_v57, %v339_v57 }
  0x5a   :  { %v149_v47 = vmul.f32 %v669_v40, %v131_v21  ;;  %v340_v31 = vadd.f32 %v324_v51, %v252_v28  ;;  %v237_v56 = vmul.f32 %v676_v44, %v219_v27 }
  0x5b   :  { %v307_v7 = vmul.f32 %v509_v29, %v640_v22  ;;  %420 = vst.msk [vmem:[%s957_s3 + $0x34] sm:$0xf] %vm406_vm0, %v459_v30 }
  0x5c   :  { %v460_v5 = vpack.c.bf16 %v340_v31, %v340_v31  ;;  %v253_v33 = vadd.f32 %v237_v56, %v149_v47 }
  0x5d   :  { %v325_v34 = vmul.f32 %v685_v48, %v307_v7 }
  0x5e   :  { %421 = vst.msk [vmem:[%s957_s3 + $0x38] sm:$0xf] %vm406_vm0, %v460_v5 }
  0x5f   :  { %v341_v9 = vadd.f32 %v325_v34, %v253_v33 }
  0x61   :  { %v461_v40 = vpack.c.bf16 %v341_v9, %v341_v9 }
  0x63   :  { %422 = vst.msk [vmem:[%s957_s3 + $0x3c] sm:$0xf] %vm406_vm0, %v461_v40 }
  0x64   :  { %427 = vsyncpa [#allocation4], 1 }

// kernel: shared_mix_quant_conv2d.3
= control target key start
LH: loop header
LB: loop body
LE: loop exit
PB: predicated region body
PF: predicated region fallthrough
CT: control target
= control target key end

     0   :  { %s5364_s9 = smov 0   ;;  %s5366_s10 = smov 0   ;;  %s7473_s0 = inlined_call_operand.vmem [shape: bf16[2,4,324], index: 0, kind: input, shape index: {}]   ;;  %s7474_s1 = inlined_call_operand.vmem [shape: bf16[128,36], index: 1, kind: input, shape index: {}]   ;;  %s7475_s2 = inlined_call_operand.vmem [shape: f32[2,128,286], index: 2, kind: output, shape index: {}]  }
   0x1   :  { %s5368_s11 = smov 0  }
   0x2 LB: > { %s24_s12 = sadd.s32 1, %s5325_s10  ;;  %p4699_p0 = scmp.ge.s32.totalorder %s5329_s11, 1  ;;  %s5329_s11 = sphi %s5368_s11, %s12_s11   ;;  %s5325_s10 = sphi %s5366_s10, %s7483_s10   ;;  %s5321_s9 = sphi %s5364_s9, %s7482_s9  }
   0x3   : > { %p26_p1 = scmp.ge.s32.totalorder %s24_s12, 2  ;;  %p137_p2 = scmp.lt.s32.totalorder %s5329_s11, 3 }
   0x5   : > { %s7485_s12 = smov (%p26_p1, %s24_s12), 0  ;;  %p138_p3 = pnand %p4699_p0, %p137_p2 }
   0x7   : > { %141 = sbr.rel (%p138_p3) target bundleno = 741 (0x2e5), region = 28 }
   0xe   : > { %p169_p4 = scmp.lt.s32.totalorder %s5321_s9, 1  ;;  %v351_v0 = vlaneseq  ;;  %v5331_v1 = vmov 1983009808   ;;  %s5332_s17 = smov 127   ;;  %v5228_v11 = vld [vmem:[%s7474_s1] sm:$0xff]   ;;  %v7476_v12 = vmov 0  }
   0xf   : > { %v349_v2 = vunpack.c.l.s4 %v5331_v1  ;;  %430 = vmatprep.mubr.bf16.mxu0 %v7476_v12  ;;  %490 = vmatprep.mubr.bf16.mxu1 %v7476_v12  ;;  %v5229_v13 = vld [vmem:[%s7474_s1 + $0x8] sm:$0xff]   ;;  %s5334_s22 = smov 124   ;;  %v5230_v14 = vld [vmem:[%s7474_s1 + $0x10] sm:$0xff]   ;;  %vm388_vm0 = vcmask 1041408   ;;  %v5231_v18 = vld [vmem:[%s7474_s1 + $0x18] sm:$0xff]   ;;  %vm363_vm1 = vcmask 31744  }
  0x10   : > { %s7487_s9 = smov (!%p169_p4, %s5321_s9), 1  ;;  %v352_v3 = vshrl.u32 %v351_v0, 7  ;;  %v5232_v19 = vld [vmem:[%s7474_s1 + $0x20] sm:$0xff]   ;;  %v5233_v22 = vld [vmem:[%s7474_s1 + $0x28] sm:$0xff]   ;;  %v5431_v25 = vld [vmem:[%s7474_s1 + $0x30] sm:$0xff]   ;;  %s5335_s20 = smov 126  }
  0x11   : > { %v350_v4 = vunpack.c.0.s8 %v349_v2  ;;  %s5183_s13 = smul.u32 6, %s7487_s9  ;;  %v5246_v24 = vld [vmem:[%s7474_s1] sm:$0xff]   ;;  %v5234_v26 = vld [vmem:[%s7474_s1 + $0x30] sm:$0xff]   ;;  %v5235_v29 = vld [vmem:[%s7474_s1 + $0x38] sm:$0xff]   ;;  %s5336_s27 = smov 120   ;;  %vm848_vm2 = vcmask 1039360  }
  0x12   : > { %v5249_v32 = vld [vmem:[%s7474_s1 + $0x8] sm:$0xff]   ;;  %v5458_v34 = vld [vmem:[%s7474_s1 + $0x38] sm:$0xff]   ;;  %v5237_v36 = vld [vmem:[%s7474_s1] sm:$0xff]   ;;  %s5338_s30 = smov 116   ;;  %s5339_s18 = smov 109   ;;  %vm1334_vm3 = vcmask 1031168  }
  0x13   : > { %v5385_v5 = vsub.s32 %v350_v4, %v352_v3  ;;  %s5390_s16 = scalar_lea.vmem %s7473_s0, %s5183_s13  ;;  %v5238_v37 = vld [vmem:[%s7474_s1 + $0x8] sm:$0xff]   ;;  %v5251_v38 = vld [vmem:[%s7474_s1 + $0x10] sm:$0xff]   ;;  %v5240_v40 = vld [vmem:[%s7474_s1 + $0x18] sm:$0xff]   ;;  %s5341_s8 = smov 108   ;;  %vm1820_vm4 = vcmask 900096   ;;  %vm194_vm5 = vcmask 244736  }
  0x14   : > { %v704_v6 = vld [vmem:[%s5390_s16] sm:$0x3f]  ;;  %v5239_v39 = vld [vmem:[%s7474_s1 + $0x10] sm:$0xff]   ;;  %v5243_v42 = vld [vmem:[%s7474_s1 + $0x28] sm:$0xff]   ;;  %s5343_s7 = smov 104   ;;  %s5344_s25 = smov 91  }
  0x15   : > { %v833_v7 = vrot.slane %v704_v6, %v5385_v5  ;;  %v826_v8 = vcombine.high %v704_v6, %v704_v6  ;;  %v241_v15 = vld [vmem:[%s5390_s16] sm:$0x3f]  ;;  %v5252_v43 = vld [vmem:[%s7474_s1 + $0x18] sm:$0xff]   ;;  %v5242_v44 = vld [vmem:[%s7474_s1 + $0x30] sm:$0xff]   ;;  %s5184_s26 = smul.u32 384, %s7487_s9  ;;  %s5345_s5 = smov 100  }
  0x16   : > { %v347_v16 = vcombine.high %v241_v15, %v241_v15  ;;  %v354_v17 = vrot.slane %v241_v15, %v5385_v5  ;;  %v1190_v27 = vld [vmem:[%s5390_s16] sm:$0x3f]  ;;  %v5245_v46 = vld [vmem:[%s7474_s1 + $0x38] sm:$0xff]   ;;  %v5256_v51 = vld [vmem:[%s7474_s1 + $0x28] sm:$0xff]   ;;  %vm2306_vm6 = vcmask 891904   ;;  %vm2792_vm7 = vcmask 883712  }
  0x17   : > { %842 = vrot.lane.b32.xlu0 %v833_v7, %s5332_s17  ;;  %v841_v9 = vcombine.high %v833_v7, %v833_v7  ;;  %v840_v10 = vrot.slane %v826_v8, %v5385_v5  ;;  %v1319_v30 = vrot.slane %v1190_v27, %v5385_v5  ;;  %v1312_v31 = vcombine.high %v1190_v27, %v1190_v27  ;;  %v5241_v41 = vld [vmem:[%s7474_s1 + $0x20] sm:$0xff]   ;;  %v5254_v54 = vld [vmem:[%s7474_s1 + $0x8] sm:$0xff]   ;;  %v5257_v55 = vld [vmem:[%s7474_s1 + $0x10] sm:$0xff]   ;;  %s5722_s4 = scalar_lea.vmem %s7475_s2, %s5184_s26 }
  0x18   : > { %v362_v20 = vcombine.high %v354_v17, %v354_v17  ;;  %v390_v21 = vsel %vm388_vm0, %v354_v17, 0  ;;  %v361_v23 = vrot.slane %v347_v16, %v5385_v5  ;;  %v1676_v45 = vld [vmem:[%s5390_s16] sm:$0x3f]  ;;  %v5258_v56 = vld [vmem:[%s7474_s1 + $0x18] sm:$0xff]   ;;  %v5260_v58 = vld [vmem:[%s7474_s1 + $0x28] sm:$0xff]   ;;  %vm3278_vm8 = vcmask 752640  }
  0x19   : > { %846 = vrot.lane.b32.xlu1 %v840_v10, %s5332_s17  ;;  %v1327_v33 = vcombine.high %v1319_v30, %v1319_v30  ;;  %v1326_v35 = vrot.slane %v1312_v31, %v5385_v5  ;;  %v5255_v47 = vld [vmem:[%s7474_s1 + $0x20] sm:$0xff]   ;;  %v1805_v48 = vrot.slane %v1676_v45, %v5385_v5  ;;  %v1798_v49 = vcombine.high %v1676_v45, %v1676_v45  ;;  %v5261_v59 = vld [vmem:[%s7474_s1 + $0x30] sm:$0xff]   ;;  %v5262_v61 = vld [vmem:[%s7474_s1 + $0x38] sm:$0xff]  }
  0x1a   : > { %4710 = vmatprep.subr.msk.bf16.mxu0 %vm388_vm0, %v362_v20  ;;  %5172 = vmatprep.subr.msk.bf16.mxu1 %vm388_vm0, %v362_v20  ;;  %v396_v28 = vsel %vm388_vm0, %v361_v23, 0  ;;  %v5253_v53 = vld [vmem:[%s7474_s1] sm:$0xff]   ;;  %v5265_v3 = vld [vmem:[%s7474_s1 + $0x8] sm:$0xff]   ;;  %v5266_v4 = vld [vmem:[%s7474_s1 + $0x10] sm:$0xff]   ;;  %vm3764_vm9 = vcmask 744448   ;;  %vm4250_vm10 = vcmask 736256  }
  0x1b   : > { %844 = vrot.lane.b32.xlu0 %v841_v9, %s5332_s17  ;;  %399 = vmatpush1.bf16.msra.mxu0 %v390_v21  ;;  %v1813_v50 = vcombine.high %v1805_v48, %v1805_v48  ;;  %v1812_v52 = vrot.slane %v1798_v49, %v5385_v5  ;;  %v5259_v57 = vld [vmem:[%s7474_s1 + $0x20] sm:$0xff]   ;;  %v5267_v6 = vld [vmem:[%s7474_s1 + $0x18] sm:$0xff]   ;;  %v5270_v8 = vld [vmem:[%s7474_s1 + $0x28] sm:$0xff]  }
  0x1c   : > { %5173 = vmatpush1.bf16.msra.mxu1 %v390_v21  ;;  %v2162_v60 = vld [vmem:[%s5390_s16] sm:$0x3f]  ;;  %v5269_v9 = vld [vmem:[%s7474_s1 + $0x30] sm:$0xff]   ;;  %v5276_v20 = vld [vmem:[%s7474_s1 + $0x18] sm:$0xff]  }
  0x1d   : > { %809 = vrot.lane.b32.xlu1 %v5228_v11, %s5334_s22  ;;  %5174 = vmatprep.subr.msk.bf16.mxu1 %vm388_vm0, %v361_v23  ;;  %v2291_v62 = vrot.slane %v2162_v60, %v5385_v5  ;;  %v2284_v63 = vcombine.high %v2162_v60, %v2162_v60  ;;  %v5264_v2 = vld [vmem:[%s7474_s1] sm:$0xff]   ;;  %v5271_v11 = vld [vmem:[%s7474_s1 + $0x38] sm:$0xff]   ;;  %v5279_v23 = vld [vmem:[%s7474_s1 + $0x30] sm:$0xff]  }
  0x1e   : > { %4711 = vmatmul.mubr.msk.bf16.vlgmr.msra.gmra.mrb[0].mxu0 %vm363_vm1, %v5246_v24  ;;  %v5268_v7 = vld [vmem:[%s7474_s1 + $0x20] sm:$0xff]   ;;  %v5287_v49 = vld [vmem:[%s7474_s1 + $0x30] sm:$0xff]  }
  0x1f   : > { %811 = vrot.lane.b32.xlu0 %v5229_v13, %s5334_s22  ;;  %4717 = vmatmul.mubr.msk.bf16.vlgmr.msra.gmra.mrb[0].mxu1 %vm363_vm1, %v5431_v25  ;;  %v2299_v0 = vcombine.high %v2291_v62, %v2291_v62  ;;  %v2298_v1 = vrot.slane %v2284_v63, %v5385_v5  ;;  %v2648_v10 = vld [vmem:[%s5390_s16] sm:$0x3f] }
  0x20   : > { %440 = vmatprep.mubr.bf16.mxu0 %v7476_v12  ;;  %500 = vmatprep.mubr.bf16.mxu1 %v7476_v12  ;;  %v2777_v13 = vrot.slane %v2648_v10, %v5385_v5  ;;  %v5273_v17 = vld [vmem:[%s7474_s1] sm:$0xff]  }
  0x21   : > { %813 = vrot.lane.b32.xlu1 %v5230_v14, %s5334_s22  ;;  %5011 = vmatpush3.bf16.msra.mxu1 %v396_v28  ;;  %v2770_v14 = vcombine.high %v2648_v10, %v2648_v10  ;;  %v5277_v21 = vld [vmem:[%s7474_s1 + $0x20] sm:$0xff]  }
  0x22   : > { %v2785_v15 = vcombine.high %v2777_v13, %v2777_v13 }
  0x23   : > { %815 = vrot.lane.b32.xlu0 %v5231_v18, %s5334_s22  ;;  %v2784_v16 = vrot.slane %v2770_v14, %v5385_v5  ;;  %v5274_v18 = vld [vmem:[%s7474_s1 + $0x8] sm:$0xff]  }
  0x25   : > { %817 = vrot.lane.b32.xlu1 %v5232_v19, %s5334_s22  ;;  %v5275_v19 = vld [vmem:[%s7474_s1 + $0x10] sm:$0xff]  }
  0x26   : > { %4712 = vmatmul.mubr.msk.bf16.gmra.mrb[4].mxu0 %vm363_vm1, %v5249_v32 }
  0x27   : > { %819 = vrot.lane.b32.xlu0 %v5233_v22, %s5334_s22  ;;  %4718 = vmatmul.mubr.msk.bf16.gmra.mrb[4].mxu1 %vm363_vm1, %v5458_v34  ;;  %v5278_v22 = vld [vmem:[%s7474_s1 + $0x28] sm:$0xff]  }
  0x28   : > { %450 = vmatprep.mubr.bf16.mxu0 %v7476_v12  ;;  %5012 = vmatprep.mubr.msk.bf16.mxu1 %vm363_vm1, %v5246_v24  ;;  %v3134_v24 = vld [vmem:[%s5390_s16] sm:$0x3f] }
  0x29   : > { %821 = vrot.lane.b32.xlu1 %v5234_v26, %s5334_s22  ;;  %v3263_v26 = vrot.slane %v3134_v24, %v5385_v5  ;;  %v3256_v27 = vcombine.high %v3134_v24, %v3134_v24  ;;  %v5293_v24 = vld [vmem:[%s7474_s1 + $0x10] sm:$0xff]  }
  0x2b   : > { %823 = vrot.lane.b32.xlu0 %v5235_v29, %s5334_s22  ;;  %s5337_s22 = smov 110   ;;  %v3271_v28 = vcombine.high %v3263_v26, %v3263_v26  ;;  %v3270_v29 = vrot.slane %v3256_v27, %v5385_v5 }
  0x2d   : > { %1328 = vrot.lane.b32.xlu1 %v1319_v30, %s5335_s20  ;;  %v5282_v30 = vld [vmem:[%s7474_s1] sm:$0xff]  }
  0x2e   : > { %4713 = vmatmul.mubr.msk.bf16.gmra.mrb[8].mxu0 %vm363_vm1, %v5251_v38 }
  0x2f   : > { %1330 = vrot.lane.b32.xlu0 %v1327_v33, %s5335_s20  ;;  %5013 = vmatmul.mubr.msk.bf16.vlgmr.msra.gmra.mrb[8].mxu1 %vm363_vm1, %v5249_v32  ;;  %v5283_v32 = vld [vmem:[%s7474_s1 + $0x8] sm:$0xff]  }
  0x30   : > { %460 = vmatprep.mubr.bf16.mxu0 %v7476_v12  ;;  %5016 = vmatprep.mubr.msk.bf16.mxu1 %vm363_vm1, %v5251_v38 }
  0x31   : > { %1332 = vrot.lane.b32.xlu1 %v1326_v35, %s5335_s20 }
  0x33   : > { %1295 = vrot.lane.b32.xlu0 %v5237_v36, %s5336_s27 }
  0x35   : > { %1297 = vrot.lane.b32.xlu1 %v5238_v37, %s5336_s27 }
  0x36   : > { %4714 = vmatmul.mubr.msk.bf16.gmra.mrb[12].mxu0 %vm363_vm1, %v5252_v43 }
  0x37   : > { %1299 = vrot.lane.b32.xlu0 %v5239_v39, %s5336_s27  ;;  %5017 = vmatmul.mubr.msk.bf16.gmra.mrb[12].mxu1 %vm363_vm1, %v5252_v43  ;;  %v5285_v43 = vld [vmem:[%s7474_s1 + $0x18] sm:$0xff]  }
  0x38   : > { %470 = vmatprep.mubr.bf16.mxu0 %v7476_v12  ;;  %5020 = vmatprep.mubr.msk.bf16.mxu1 %vm363_vm1, %v5255_v47 }
  0x39   : > { %1301 = vrot.lane.b32.xlu1 %v5240_v40, %s5336_s27 }
  0x3b   : > { %1303 = vrot.lane.b32.xlu0 %v5241_v41, %s5336_s27 }
  0x3d   : > { %1305 = vrot.lane.b32.xlu1 %v5243_v42, %s5336_s27 }
  0x3e   : > { %4715 = vmatmul.mubr.msk.bf16.gmra.mrb[16].mxu0 %vm363_vm1, %v5255_v47 }
  0x3f   : > { %1307 = vrot.lane.b32.xlu0 %v5242_v44, %s5336_s27  ;;  %5021 = vmatmul.mubr.msk.bf16.gmra.mrb[16].mxu1 %vm363_vm1, %v5256_v51  ;;  %v5286_v44 = vld [vmem:[%s7474_s1 + $0x20] sm:$0xff]  }
  0x40   : > { %480 = vmatprep.mubr.bf16.mxu0 %v7476_v12  ;;  %5024 = vmatprep.mubr.msk.bf16.mxu1 %vm363_vm1, %v5431_v25  ;;  %v5280_v25 = vld [vmem:[%s7474_s1 + $0x38] sm:$0xff]  }
  0x41   : > { %1309 = vrot.lane.b32.xlu1 %v5245_v46, %s5336_s27 }
  0x43   : > { %1814 = vrot.lane.b32.xlu0 %v1805_v48, %s5337_s22 }
  0x45   : > { %1816 = vrot.lane.b32.xlu1 %v1813_v50, %s5337_s22  ;;  %v5288_v50 = vld [vmem:[%s7474_s1 + $0x28] sm:$0xff]  }
  0x46   : > { %4716 = vmatmul.mubr.msk.bf16.gmra.mrb[20].mxu0 %vm363_vm1, %v5256_v51  ;;  %v3620_v51 = vld [vmem:[%s5390_s16] sm:$0x3f] }
  0x47   : > { %1818 = vrot.lane.b32.xlu0 %v1812_v52, %s5337_s22  ;;  %5025 = vmatmul.mubr.msk.bf16.gmra.mrb[20].mxu1 %vm363_vm1, %v5458_v34  ;;  %s5340_s22 = smov 112   ;;  %v5284_v34 = vld [vmem:[%s7474_s1 + $0x10] sm:$0xff]   ;;  %v3742_v60 = vcombine.high %v3620_v51, %v3620_v51 }
  0x48   : > { %916 = vmatprep.mubr.bf16.mxu1 %v7476_v12 }
  0x49   : > { %1781 = vrot.lane.b32.xlu1 %v5253_v53, %s5338_s30  ;;  %v3749_v53 = vrot.slane %v3620_v51, %v5385_v5 }
  0x4b   : > { %1783 = vrot.lane.b32.xlu0 %v5254_v54, %s5338_s30  ;;  %v5289_v54 = vld [vmem:[%s7474_s1 + $0x38] sm:$0xff]  }
  0x4d   : > { %1785 = vrot.lane.b32.xlu1 %v5257_v55, %s5338_s30 }
  0x4f   : > { %1787 = vrot.lane.b32.xlu0 %v5258_v56, %s5338_s30 }
  0x51   : > { %1789 = vrot.lane.b32.xlu1 %v5259_v57, %s5338_s30 }
  0x53   : > { %1791 = vrot.lane.b32.xlu0 %v5260_v58, %s5338_s30 }
  0x55   : > { %1793 = vrot.lane.b32.xlu1 %v5261_v59, %s5338_s30 }
  0x57   : > { %1795 = vrot.lane.b32.xlu0 %v5262_v61, %s5338_s30  ;;  %s5342_s30 = smov 92   ;;  %v3757_v61 = vcombine.high %v3749_v53, %v3749_v53 }
  0x59   : > { %2300 = vrot.lane.b32.xlu1 %v2291_v62, %s5339_s18 }
  0x5b   : > { %2302 = vrot.lane.b32.xlu0 %v2299_v0, %s5339_s18 }
  0x5d   : > { %2304 = vrot.lane.b32.xlu1 %v2298_v1, %s5339_s18  ;;  %v3756_v1 = vrot.slane %v3742_v60, %v5385_v5 }
  0x5f   : > { %2267 = vrot.lane.b32.xlu0 %v5264_v2, %s5340_s22 }
  0x61   : > { %2269 = vrot.lane.b32.xlu1 %v5265_v3, %s5340_s22 }
  0x63   : > { %2271 = vrot.lane.b32.xlu0 %v5266_v4, %s5340_s22 }
  0x65   : > { %2273 = vrot.lane.b32.xlu1 %v5267_v6, %s5340_s22 }
  0x67   : > { %2275 = vrot.lane.b32.xlu0 %v5268_v7, %s5340_s22 }
  0x69   : > { %2277 = vrot.lane.b32.xlu1 %v5270_v8, %s5340_s22 }
  0x6b   : > { %2279 = vrot.lane.b32.xlu0 %v5269_v9, %s5340_s22 }
  0x6d   : > { %2281 = vrot.lane.b32.xlu1 %v5271_v11, %s5340_s22 }
  0x6f   : > { %2786 = vrot.lane.b32.xlu0 %v2777_v13, %s5341_s8 }
  0x71   : > { %2788 = vrot.lane.b32.xlu1 %v2785_v15, %s5341_s8 }
  0x73   : > { %2790 = vrot.lane.b32.xlu0 %v2784_v16, %s5341_s8 }
  0x75   : > { %2753 = vrot.lane.b32.xlu1 %v5273_v17, %s5341_s8  ;;  %v5291_v17 = vld [vmem:[%s7474_s1] sm:$0xff]  }
  0x77   : > { %2755 = vrot.lane.b32.xlu0 %v5274_v18, %s5341_s8  ;;  %v5292_v18 = vld [vmem:[%s7474_s1 + $0x8] sm:$0xff]  }
  0x79   : > { %2757 = vrot.lane.b32.xlu1 %v5275_v19, %s5341_s8 }
  0x7b   : > { %2759 = vrot.lane.b32.xlu0 %v5276_v20, %s5341_s8 }
  0x7d   : > { %2761 = vrot.lane.b32.xlu1 %v5277_v21, %s5341_s8  ;;  %v5346_v21 = vmov 0.0  }
  0x7e   : > { %201 = vst.msk [vmem:[%s5722_s4 + $0x40] sm:$0xff] %vm194_vm5, %v5346_v21  ;;  %195 = vst.msk [vmem:[%s5722_s4 + $0x10] sm:$0xff] %vm194_vm5, %v5346_v21 }
  0x7f   : > { %2763 = vrot.lane.b32.xlu0 %v5278_v22, %s5341_s8  ;;  %198 = vst.msk [vmem:[%s5722_s4 + $0x28] sm:$0xff] %vm194_vm5, %v5346_v21  ;;  %204 = vst.msk [vmem:[%s5722_s4 + $0x58] sm:$0xff] %vm194_vm5, %v5346_v21 }
  0x80   : > { %207 = vst.msk [vmem:[%s5722_s4 + $0x70] sm:$0xff] %vm194_vm5, %v5346_v21  ;;  %210 = vst.msk [vmem:[%s5722_s4 + $0x88] sm:$0xff] %vm194_vm5, %v5346_v21 }
  0x81   : > { %2765 = vrot.lane.b32.xlu1 %v5279_v23, %s5341_s8  ;;  %213 = vst.msk [vmem:[%s5722_s4 + $0xa0] sm:$0xff] %vm194_vm5, %v5346_v21  ;;  %216 = vst.msk [vmem:[%s5722_s4 + $0xb8] sm:$0xff] %vm194_vm5, %v5346_v21 }
  0x82   : > { %219 = vst.msk [vmem:[%s5722_s4 + $0xd0] sm:$0xff] %vm194_vm5, %v5346_v21  ;;  %222 = vst.msk [vmem:[%s5722_s4 + $0xe8] sm:$0xff] %vm194_vm5, %v5346_v21 }
  0x83   : > { %2767 = vrot.lane.b32.xlu0 %v5280_v25, %s5341_s8  ;;  %225 = vst.msk [vmem:[%s5722_s4 + $0x100] sm:$0xff] %vm194_vm5, %v5346_v21  ;;  %228 = vst.msk [vmem:[%s5722_s4 + $0x118] sm:$0xff] %vm194_vm5, %v5346_v21  ;;  %v5294_v25 = vld [vmem:[%s7474_s1 + $0x18] sm:$0xff]  }
  0x84   : > { %231 = vst.msk [vmem:[%s5722_s4 + $0x130] sm:$0xff] %vm194_vm5, %v5346_v21  ;;  %234 = vst.msk [vmem:[%s5722_s4 + $0x148] sm:$0xff] %vm194_vm5, %v5346_v21 }
  0x85   : > { %3272 = vrot.lane.b32.xlu1 %v3263_v26, %s5342_s30  ;;  %237 = vst.msk [vmem:[%s5722_s4 + $0x160] sm:$0xff] %vm194_vm5, %v5346_v21  ;;  %240 = vst.msk [vmem:[%s5722_s4 + $0x178] sm:$0xff] %vm194_vm5, %v5346_v21 }
  0x87   : > { %3274 = vrot.lane.b32.xlu0 %v3271_v28, %s5342_s30 }
  0x89   : > { %v843_v31 = vpop.permute.xlu0 %842  ;;  %3276 = vrot.lane.b32.xlu1 %v3270_v29, %s5342_s30  ;;  %v5295_v29 = vld [vmem:[%s7474_s1 + $0x20] sm:$0xff]  }
  0x8b   : > { %v847_v33 = vpop.permute.xlu1 %846  ;;  %3239 = vrot.lane.b32.xlu0 %v5282_v30, %s5343_s7 }
  0x8c   : > { %5175 = vmatprep.subr.msk.bf16.mxu0 %vm388_vm0, %v847_v33  ;;  %v882_v35 = vsel %vm388_vm0, %v847_v33, 0 }
  0x8d   : > { %v845_v36 = vpop.permute.xlu0 %844  ;;  %5029 = vmatpush3.bf16.msra.mxu0 %v882_v35  ;;  %3241 = vrot.lane.b32.xlu1 %v5283_v32, %s5343_s7  ;;  %v5297_v32 = vld [vmem:[%s7474_s1 + $0x30] sm:$0xff]  }
  0x8e   : > { %v849_v37 = vsel %vm848_vm2, %v843_v31, %v845_v36  ;;  %v850_v38 = vsel %vm848_vm2, %v845_v36, %v847_v33  ;;  %v5296_v31 = vld [vmem:[%s7474_s1 + $0x28] sm:$0xff]  }
  0x8f   : > { %v876_v39 = vsel %vm388_vm0, %v849_v37, 0  ;;  %4735 = vmatprep.subr.msk.bf16.mxu1 %vm388_vm0, %v850_v38  ;;  %v810_v40 = vpop.permute.xlu1 %809  ;;  %3243 = vrot.lane.b32.xlu0 %v5284_v34, %s5343_s7  ;;  %v4106_v37 = vld [vmem:[%s5390_s16] sm:$0x3f]  ;;  %s5347_s16 = smov 90  }
  0x90   : > { %885 = vmatpush1.bf16.msra.mxu1 %v876_v39  ;;  %5030 = vmatprep.mubr.msk.bf16.mxu0 %vm363_vm1, %v810_v40  ;;  %v5298_v39 = vld [vmem:[%s7474_s1 + $0x38] sm:$0xff]  }
  0x91   : > { %v812_v41 = vpop.permute.xlu0 %811  ;;  %3245 = vrot.lane.b32.xlu1 %v5285_v43, %s5343_s7 }
  0x92   : > { %5031 = vmatmul.mubr.msk.bf16.vlgmr.msra.gmra.mrb[24].mxu0 %vm363_vm1, %v812_v41 }
  0x93   : > { %4736 = vmatmul.mubr.msk.bf16.vlgmr.msra.gmra.mrb[24].mxu1 %vm363_vm1, %v810_v40  ;;  %v814_v42 = vpop.permute.xlu1 %813  ;;  %3247 = vrot.lane.b32.xlu0 %v5286_v44, %s5343_s7  ;;  %v4235_v40 = vrot.slane %v4106_v37, %v5385_v5 }
  0x94   : > { %5034 = vmatprep.mubr.msk.bf16.mxu0 %vm363_vm1, %v814_v42  ;;  %926 = vmatprep.mubr.bf16.mxu1 %v7476_v12 }
  0x95   : > { %v816_v45 = vpop.permute.xlu0 %815  ;;  %3249 = vrot.lane.b32.xlu1 %v5288_v50, %s5343_s7  ;;  %v5300_v50 = vld [vmem:[%s7474_s1 + $0x8] sm:$0xff]  }
  0x97   : > { %v818_v46 = vpop.permute.xlu1 %817  ;;  %3251 = vrot.lane.b32.xlu0 %v5287_v49, %s5343_s7 }
  0x99   : > { %v5632_v47 = vpop.permute.xlu0 %819  ;;  %3253 = vrot.lane.b32.xlu1 %v5289_v54, %s5343_s7 }
  0x9a   : > { %5035 = vmatmul.mubr.msk.bf16.gmra.mrb[28].mxu0 %vm363_vm1, %v816_v45 }
  0x9b   : > { %4737 = vmatmul.mubr.msk.bf16.gmra.mrb[28].mxu1 %vm363_vm1, %v812_v41  ;;  %5038 = vmatprep.mubr.msk.bf16.mxu0 %vm363_vm1, %v818_v46  ;;  %v5637_v48 = vpop.permute.xlu1 %821  ;;  %v4228_v41 = vcombine.high %v4106_v37, %v4106_v37 }
  0x9c   : > { %936 = vmatprep.mubr.bf16.mxu1 %v7476_v12  ;;  %3758 = vrot.lane.b32.xlu0 %v3749_v53, %s5344_s25 }
  0x9d   : > { %v5647_v52 = vpop.permute.xlu0 %823  ;;  %3760 = vrot.lane.b32.xlu1 %v3757_v61, %s5344_s25  ;;  %v4242_v43 = vrot.slane %v4228_v41, %v5385_v5 }
  0x9f   : > { %v1329_v55 = vpop.permute.xlu1 %1328 }
  0xa0   : > { %3762 = vrot.lane.b32.xlu0 %v3756_v1, %s5344_s25  ;;  %s5348_s25 = smov 96  }
  0xa1   : > { %v1331_v56 = vpop.permute.xlu0 %1330  ;;  %3725 = vrot.lane.b32.xlu1 %v5291_v17, %s5345_s5 }
  0xa2   : > { %5039 = vmatmul.mubr.msk.bf16.gmra.mrb[32].mxu0 %vm363_vm1, %v5632_v47  ;;  %v1335_v57 = vsel %vm1334_vm3, %v1329_v55, %v1331_v56  ;;  %v5301_v55 = vld [vmem:[%s7474_s1 + $0x10] sm:$0xff]  }
  0xa3   : > { %4738 = vmatmul.mubr.msk.bf16.gmra.mrb[32].mxu1 %vm363_vm1, %v814_v42  ;;  %5042 = vmatprep.mubr.msk.bf16.mxu0 %vm363_vm1, %v5637_v48  ;;  %v1362_v58 = vsel %vm388_vm0, %v1335_v57, 0  ;;  %v1333_v59 = vpop.permute.xlu1 %1332  ;;  %v4243_v42 = vcombine.high %v4235_v40, %v4235_v40 }
  0xa4   : > { %946 = vmatprep.mubr.bf16.mxu1 %v7476_v12  ;;  %v1336_v62 = vsel %vm1334_vm3, %v1331_v56, %v1333_v59  ;;  %5176 = vmatprep.subr.msk.bf16.mxu1 %vm388_vm0, %v1333_v59  ;;  %v1368_v63 = vsel %vm388_vm0, %v1333_v59, 0 }
  0xa5   : > { %4760 = vmatprep.subr.msk.bf16.mxu0 %vm388_vm0, %v1336_v62  ;;  %v5666_v0 = vpop.permute.xlu0 %1295  ;;  %5047 = vmatpush3.bf16.msra.mxu1 %v1368_v63  ;;  %v5302_v63 = vld [vmem:[%s7474_s1 + $0x18] sm:$0xff]  }
  0xa6   : > { %1371 = vmatpush1.bf16.msra.mxu0 %v1362_v58  ;;  %3727 = vrot.lane.b32.xlu0 %v5292_v18, %s5345_s5 }
  0xa7   : > { %v5669_v2 = vpop.permute.xlu1 %1297  ;;  %3729 = vrot.lane.b32.xlu1 %v5293_v24, %s5345_s5 }
  0xa9   : > { %v5671_v3 = vpop.permute.xlu0 %1299 }
  0xaa   : > { %5043 = vmatmul.mubr.msk.bf16.gmra.mrb[36].mxu0 %vm363_vm1, %v5647_v52  ;;  %3731 = vrot.lane.b32.xlu0 %v5294_v25, %s5345_s5 }
  0xab   : > { %4739 = vmatmul.mubr.msk.bf16.gmra.mrb[36].mxu1 %vm363_vm1, %v816_v45  ;;  %1402 = vmatprep.mubr.bf16.mxu0 %v7476_v12  ;;  %v5677_v4 = vpop.permute.xlu1 %1301 }
  0xac   : > { %956 = vmatprep.mubr.bf16.mxu1 %v7476_v12  ;;  %3733 = vrot.lane.b32.xlu1 %v5295_v29, %s5345_s5 }
  0xad   : > { %v5680_v6 = vpop.permute.xlu0 %1303 }
  0xae   : > { %3735 = vrot.lane.b32.xlu0 %v5296_v31, %s5345_s5 }
  0xaf   : > { %v5682_v7 = vpop.permute.xlu1 %1305 }
  0xb0   : > { %3737 = vrot.lane.b32.xlu1 %v5297_v32, %s5345_s5  ;;  %v260_v32 = vld [vmem:[%s5722_s4 + $0x10] sm:$0xff] }
  0xb1   : > { %v5684_v8 = vpop.permute.xlu0 %1307 }
  0xb2   : > { %4761 = vmatmul.mubr.msk.bf16.vlgmr.msra.gmra.mrb[40].mxu0 %vm363_vm1, %v5666_v0  ;;  %3739 = vrot.lane.b32.xlu0 %v5298_v39, %s5345_s5 }
  0xb3   : > { %4740 = vmatmul.mubr.msk.bf16.gmra.mrb[40].mxu1 %vm363_vm1, %v818_v46  ;;  %1412 = vmatprep.mubr.bf16.mxu0 %v7476_v12  ;;  %v5690_v9 = vpop.permute.xlu1 %1309  ;;  %v5299_v46 = vld [vmem:[%s7474_s1] sm:$0xff]  }
  0xb4   : > { %966 = vmatprep.mubr.bf16.mxu1 %v7476_v12  ;;  %4244 = vrot.lane.b32.xlu1 %v4235_v40, %s5347_s16  ;;  %v263_v40 = vld [vmem:[%s5722_s4 + $0x28] sm:$0xff] }
  0xb5   : > { %v5693_v10 = vpop.permute.xlu0 %1814 }
  0xb6   : > { %4246 = vrot.lane.b32.xlu0 %v4243_v42, %s5347_s16 }
  0xb7   : > { %v5695_v11 = vpop.permute.xlu1 %1816 }
  0xb8   : > { %v1821_v34 = vsel %vm1820_vm4, %v5693_v10, %v5695_v11  ;;  %4248 = vrot.lane.b32.xlu1 %v4242_v43, %s5347_s16 }
  0xb9   : > { %v1819_v13 = vpop.permute.xlu0 %1818  ;;  %v1848_v38 = vsel %vm388_vm0, %v1821_v34, 0 }
  0xba   : > { %4762 = vmatmul.mubr.msk.bf16.gmra.mrb[44].mxu0 %vm363_vm1, %v5669_v2  ;;  %v1822_v14 = vsel %vm1820_vm4, %v5695_v11, %v1819_v13  ;;  %5177 = vmatprep.subr.msk.bf16.mxu0 %vm388_vm0, %v1819_v13  ;;  %v1854_v15 = vsel %vm388_vm0, %v1819_v13, 0 }
  0xbb   : > { %4741 = vmatmul.mubr.msk.bf16.gmra.mrb[44].mxu1 %vm363_vm1, %v5632_v47  ;;  %1422 = vmatprep.mubr.bf16.mxu0 %v7476_v12  ;;  %v5707_v16 = vpop.permute.xlu1 %1781 }
  0xbc   : > { %976 = vmatprep.mubr.bf16.mxu1 %v7476_v12  ;;  %4785 = vmatprep.subr.msk.bf16.mxu1 %vm388_vm0, %v1822_v14 }
  0xbd   : > { %5065 = vmatpush3.bf16.msra.mxu0 %v1854_v15  ;;  %v5717_v19 = vpop.permute.xlu0 %1783  ;;  %4211 = vrot.lane.b32.xlu0 %v5299_v46, %s5348_s25 }
  0xbe   : > { %4213 = vrot.lane.b32.xlu1 %v5300_v50, %s5348_s25 }
  0xbf   : > { %v5726_v20 = vpop.permute.xlu1 %1785 }
  0xc1   : > { %v5760_v22 = vpop.permute.xlu0 %1787  ;;  %4215 = vrot.lane.b32.xlu0 %v5301_v55, %s5348_s25  ;;  %v5305_v55 = vld [vmem:[%s7474_s1 + $0x30] sm:$0xff]  }
  0xc2   : > { %4763 = vmatmul.mubr.msk.bf16.gmra.mrb[48].mxu0 %vm363_vm1, %v5671_v3  ;;  %4217 = vrot.lane.b32.xlu1 %v5302_v63, %s5348_s25 }
  0xc3   : > { %4742 = vmatmul.mubr.msk.bf16.gmra.mrb[48].mxu1 %vm363_vm1, %v5637_v48  ;;  %1432 = vmatprep.mubr.bf16.mxu0 %v7476_v12  ;;  %v5767_v23 = vpop.permute.xlu1 %1789 }
  0xc4   : > { %986 = vmatprep.mubr.bf16.mxu1 %v7476_v12 }
  0xc5   : > { %v5776_v26 = vpop.permute.xlu0 %1791 }
  0xc7   : > { %v5780_v27 = vpop.permute.xlu1 %1793 }
  0xc9   : > { %v5782_v28 = vpop.permute.xlu0 %1795 }
  0xca   : > { %4764 = vmatmul.mubr.msk.bf16.gmra.mrb[52].mxu0 %vm363_vm1, %v5677_v4 }
  0xcb   : > { %4743 = vmatmul.mubr.msk.bf16.gmra.mrb[52].mxu1 %vm363_vm1, %v5647_v52  ;;  %1442 = vmatprep.mubr.bf16.mxu0 %v7476_v12  ;;  %v2301_v30 = vpop.permute.xlu1 %2300 }
  0xcc   : > { %5048 = vmatprep.mubr.msk.bf16.mxu1 %vm363_vm1, %v5666_v0 }
  0xcd   : > { %v2303_v33 = vpop.permute.xlu0 %2302 }
  0xce   : > { %v2307_v56 = vsel %vm2306_vm6, %v2301_v30, %v2303_v33  ;;  %v5304_v30 = vld [vmem:[%s7474_s1 + $0x28] sm:$0xff]  }
  0xcf   : > { %v2305_v35 = vpop.permute.xlu1 %2304  ;;  %v2334_v59 = vsel %vm388_vm0, %v2307_v56, 0  ;;  %4221 = vrot.lane.b32.xlu1 %v5304_v30, %s5348_s25 }
  0xd0   : > { %v2308_v36 = vsel %vm2306_vm6, %v2303_v33, %v2305_v35  ;;  %v2340_v60 = vsel %vm388_vm0, %v2305_v35, 0 }
  0xd1   : > { %4810 = vmatprep.subr.msk.bf16.mxu0 %vm388_vm0, %v2308_v36  ;;  %v5824_v44 = vpop.permute.xlu0 %2267  ;;  %v269_v36 = vld [vmem:[%s5722_s4 + $0x58] sm:$0xff] }
  0xd2   : > { %4765 = vmatmul.mubr.msk.bf16.gmra.mrb[56].mxu0 %vm363_vm1, %v5680_v6 }
  0xd3   : > { %5049 = vmatmul.mubr.msk.bf16.vlgmr.msra.gmra.mrb[56].mxu1 %vm363_vm1, %v5669_v2  ;;  %1452 = vmatprep.mubr.bf16.mxu0 %v7476_v12  ;;  %v5826_v45 = vpop.permute.xlu1 %2269 }
  0xd4   : > { %5052 = vmatprep.mubr.msk.bf16.mxu1 %vm363_vm1, %v5671_v3  ;;  %1857 = vmatpush1.bf16.msra.mxu1 %v1848_v38 }
  0xd5   : > { %5178 = vmatprep.subr.msk.bf16.mxu1 %vm388_vm0, %v2305_v35  ;;  %v5838_v5 = vpop.permute.xlu0 %2271 }
  0xd7   : > { %v5840_v47 = vpop.permute.xlu1 %2273 }
  0xd9   : > { %v5843_v48 = vpop.permute.xlu0 %2275 }
  0xda   : > { %4766 = vmatmul.mubr.msk.bf16.gmra.mrb[60].mxu0 %vm363_vm1, %v5682_v7 }
  0xdb   : > { %5053 = vmatmul.mubr.msk.bf16.gmra.mrb[60].mxu1 %vm363_vm1, %v5677_v4  ;;  %1462 = vmatprep.mubr.bf16.mxu0 %v7476_v12  ;;  %v5845_v49 = vpop.permute.xlu1 %2277 }
  0xdc   : > { %5056 = vmatprep.mubr.msk.bf16.mxu1 %vm363_vm1, %v5680_v6 }
  0xdd   : > { %v5857_v51 = vpop.permute.xlu0 %2279 }
  0xdf   : > { %v5859_v52 = vpop.permute.xlu1 %2281 }
  0xe1   : > { %v5864_v53 = vpop.permute.xlu0 %2786 }
  0xe2   : > { %4767 = vmatmul.mubr.msk.bf16.gmra.mrb[64].mxu0 %vm363_vm1, %v5684_v8 }
  0xe3   : > { %5057 = vmatmul.mubr.msk.bf16.gmra.mrb[64].mxu1 %vm363_vm1, %v5682_v7  ;;  %1472 = vmatprep.mubr.bf16.mxu0 %v7476_v12  ;;  %v5870_v54 = vpop.permute.xlu1 %2788 }
  0xe4   : > { %5060 = vmatprep.mubr.msk.bf16.mxu1 %vm363_vm1, %v5684_v8 }
  0xe5   : > { %v5880_v58 = vpop.permute.xlu0 %2790 }
  0xe6   : > { %v2794_v61 = vsel %vm2792_vm7, %v5870_v54, %v5880_v58  ;;  %v2826_v63 = vsel %vm388_vm0, %v5880_v58, 0 }
  0xe7   : > { %v5878_v57 = vpop.permute.xlu1 %2753 }
  0xe9   : > { %v5899_v0 = vpop.permute.xlu0 %2755 }
  0xea   : > { %4768 = vmatmul.mubr.msk.bf16.gmra.mrb[68].mxu0 %vm363_vm1, %v5690_v9 }
  0xeb   : > { %5061 = vmatmul.mubr.msk.bf16.gmra.mrb[68].mxu1 %vm363_vm1, %v5690_v9  ;;  %5066 = vmatprep.mubr.msk.bf16.mxu0 %vm363_vm1, %v5707_v16  ;;  %v5893_v62 = vpop.permute.xlu1 %2757  ;;  %v5303_v9 = vld [vmem:[%s7474_s1 + $0x20] sm:$0xff]  }
  0xec   : > { %1888 = vmatprep.mubr.bf16.mxu1 %v7476_v12  ;;  %4219 = vrot.lane.b32.xlu0 %v5303_v9, %s5348_s25 }
  0xed   : > { %v5905_v1 = vpop.permute.xlu0 %2759 }
  0xef   : > { %v5909_v3 = vpop.permute.xlu1 %2761 }
  0xf0   : > { %4223 = vrot.lane.b32.xlu0 %v5305_v55, %s5348_s25 }
  0xf1   : > { %v5907_v2 = vpop.f32.mrb[0].mxu0  ;;  %v5932_v14 = vpop.permute.xlu0 %2763 }
  0xf2   : > { %5067 = vmatmul.mubr.msk.bf16.vlgmr.msra.gmra.mrb[72].mxu0 %vm363_vm1, %v5717_v19  ;;  %v492_v4 = vpop.f32.mrb[0].mxu1  ;;  %v5913_v6 = vpop.f32.mrb[1].mxu0 }
  0xf3   : > { %4786 = vmatmul.mubr.msk.bf16.vlgmr.msra.gmra.mrb[72].mxu1 %vm363_vm1, %v5707_v16  ;;  %5070 = vmatprep.mubr.msk.bf16.mxu0 %vm363_vm1, %v5726_v20  ;;  %v494_v7 = vpop.f32.mrb[1].mxu1  ;;  %v5919_v8 = vpop.f32.mrb[2].mxu0  ;;  %692 = vst [vmem:[%s5722_s4 + $0x120] sm:$0xff] %v492_v4  ;;  %v272_v4 = vld [vmem:[%s5722_s4 + $0x70] sm:$0xff] }
  0xf4   : > { %1898 = vmatprep.mubr.bf16.mxu1 %v7476_v12  ;;  %2343 = vmatpush1.bf16.msra.mxu0 %v2334_v59  ;;  %v496_v10 = vpop.f32.mrb[2].mxu1  ;;  %v5925_v11 = vpop.f32.mrb[3].mxu0  ;;  %693 = vst [vmem:[%s5722_s4 + $0x128] sm:$0xff] %v494_v7 }
  0xf5   : > { %5083 = vmatpush3.bf16.msra.mxu1 %v2340_v60  ;;  %5179 = vmatprep.subr.msk.bf16.mxu0 %vm388_vm0, %v5880_v58  ;;  %v498_v13 = vpop.f32.mrb[3].mxu1  ;;  %695 = vst [vmem:[%s5722_s4 + $0x138] sm:$0xff] %v496_v10  ;;  %v5936_v16 = vpop.permute.xlu1 %2765  ;;  %v281_v10 = vld [vmem:[%s5722_s4 + $0xb8] sm:$0xff] }
  0xf6   : > { %4835 = vmatprep.subr.msk.bf16.mxu1 %vm388_vm0, %v2794_v61  ;;  %696 = vst [vmem:[%s5722_s4 + $0x140] sm:$0xff] %v498_v13  ;;  %v5960_v31 = vpop.permute.xlu0 %2767  ;;  %v278_v61 = vld [vmem:[%s5722_s4 + $0xa0] sm:$0xff] }
  0xf9   : > { %v5934_v15 = vpop.f32.mrb[4].mxu0  ;;  %v5965_v34 = vpop.permute.xlu1 %3272 }
  0xfa   : > { %5071 = vmatmul.mubr.msk.bf16.gmra.mrb[76].mxu0 %vm363_vm1, %v5760_v22  ;;  %v502_v17 = vpop.f32.mrb[4].mxu1  ;;  %v5940_v18 = vpop.f32.mrb[5].mxu0 }
  0xfb   : > { %4787 = vmatmul.mubr.msk.bf16.gmra.mrb[76].mxu1 %vm363_vm1, %v5717_v19  ;;  %5074 = vmatprep.mubr.msk.bf16.mxu0 %vm363_vm1, %v5767_v23  ;;  %v504_v19 = vpop.f32.mrb[5].mxu1  ;;  %v5946_v21 = vpop.f32.mrb[6].mxu0  ;;  %698 = vst [vmem:[%s5722_s4 + $0x150] sm:$0xff] %v502_v17 }
  0xfc   : > { %1908 = vmatprep.mubr.bf16.mxu1 %v7476_v12  ;;  %v506_v24 = vpop.f32.mrb[6].mxu1  ;;  %v5949_v25 = vpop.f32.mrb[7].mxu0  ;;  %699 = vst [vmem:[%s5722_s4 + $0x158] sm:$0xff] %v504_v19 }
  0xfd   : > { %v508_v29 = vpop.f32.mrb[7].mxu1  ;;  %701 = vst [vmem:[%s5722_s4 + $0x168] sm:$0xff] %v506_v24  ;;  %v5990_v59 = vpop.permute.xlu0 %3274  ;;  %v275_v24 = vld [vmem:[%s5722_s4 + $0x88] sm:$0xff] }
  0xfe   : > { %702 = vst [vmem:[%s5722_s4 + $0x170] sm:$0xff] %v508_v29  ;;  %v5992_v60 = vpop.permute.xlu1 %3276 }
  0xff   : > { %v3280_v17 = vsel %vm3278_vm8, %v5990_v59, %v5992_v60 }
 0x101   : > { %v5963_v33 = vpop.f32.mrb[8].mxu0 }
 0x102   : > { %5075 = vmatmul.mubr.msk.bf16.gmra.mrb[80].mxu0 %vm363_vm1, %v5776_v26  ;;  %v5014_v35 = vpop.f32.mrb[8].mxu1  ;;  %v5970_v37 = vpop.f32.mrb[9].mxu0 }
 0x103   : > { %4788 = vmatmul.mubr.msk.bf16.gmra.mrb[80].mxu1 %vm363_vm1, %v5726_v20  ;;  %5078 = vmatprep.mubr.msk.bf16.mxu0 %vm363_vm1, %v5780_v27  ;;  %v266_v20 = vld [vmem:[%s5722_s4 + $0x40] sm:$0xff]  ;;  %v545_v39 = vpop.f32.mrb[9].mxu1  ;;  %v5976_v41 = vpop.f32.mrb[10].mxu0 }
 0x104   : > { %1918 = vmatprep.mubr.bf16.mxu1 %v7476_v12  ;;  %v616_v38 = vadd.f32 %v5014_v35, %v266_v20  ;;  %v610_v42 = vadd.f32 %v545_v39, %v260_v32  ;;  %v5015_v43 = vpop.f32.mrb[10].mxu1  ;;  %v5979_v46 = vpop.f32.mrb[11].mxu0  ;;  %v290_v39 = vld [vmem:[%s5722_s4 + $0x100] sm:$0xff] }
 0x105   : > { %v548_v50 = vpop.f32.mrb[11].mxu1 }
 0x106   : > { %664 = vst.msk [vmem:[%s5722_s4 + $0x40] sm:$0xff] %vm194_vm5, %v616_v38  ;;  %658 = vst.msk [vmem:[%s5722_s4 + $0x10] sm:$0xff] %vm194_vm5, %v610_v42  ;;  %v613_v56 = vadd.f32 %v548_v50, %v263_v40  ;;  %v284_v40 = vld [vmem:[%s5722_s4 + $0xd0] sm:$0xff] }
 0x108   : > { %661 = vst.msk [vmem:[%s5722_s4 + $0x28] sm:$0xff] %vm194_vm5, %v613_v56 }
 0x109   : > { %v6001_v7 = vpop.f32.mrb[12].mxu0 }
 0x10a   : > { %5079 = vmatmul.mubr.msk.bf16.gmra.mrb[84].mxu0 %vm363_vm1, %v5782_v28  ;;  %v5018_v9 = vpop.f32.mrb[12].mxu1  ;;  %v6006_v13 = vpop.f32.mrb[13].mxu0 }
 0x10b   : > { %4789 = vmatmul.mubr.msk.bf16.gmra.mrb[84].mxu1 %vm363_vm1, %v5760_v22  ;;  %2374 = vmatprep.mubr.bf16.mxu0 %v7476_v12  ;;  %v619_v22 = vadd.f32 %v5015_v43, %v269_v36  ;;  %v628_v58 = vadd.f32 %v5018_v9, %v278_v61  ;;  %v561_v19 = vpop.f32.mrb[13].mxu1  ;;  %v6015_v29 = vpop.f32.mrb[14].mxu0  ;;  %v5306_v36 = vld [vmem:[%s7474_s1 + $0x38] sm:$0xff]   ;;  %v287_v61 = vld [vmem:[%s5722_s4 + $0xe8] sm:$0xff] }
 0x10c   : > { %1928 = vmatprep.mubr.bf16.mxu1 %v7476_v12  ;;  %v622_v30 = vadd.f32 %v561_v19, %v272_v4  ;;  %v5019_v20 = vpop.f32.mrb[14].mxu1  ;;  %v6018_v32 = vpop.f32.mrb[15].mxu0  ;;  %4225 = vrot.lane.b32.xlu1 %v5306_v36, %s5348_s25  ;;  %v302_v19 = vld [vmem:[%s5722_s4 + $0x160] sm:$0xff] }
 0x10d   : > { %667 = vst.msk [vmem:[%s5722_s4 + $0x58] sm:$0xff] %vm194_vm5, %v619_v22  ;;  %676 = vst.msk [vmem:[%s5722_s4 + $0xa0] sm:$0xff] %vm194_vm5, %v628_v58  ;;  %v564_v35 = vpop.f32.mrb[15].mxu1  ;;  %v293_v22 = vld [vmem:[%s5722_s4 + $0x118] sm:$0xff] }
 0x10e   : > { %670 = vst.msk [vmem:[%s5722_s4 + $0x70] sm:$0xff] %vm194_vm5, %v622_v30  ;;  %v625_v38 = vadd.f32 %v564_v35, %v275_v24  ;;  %v296_v24 = vld [vmem:[%s5722_s4 + $0x130] sm:$0xff] }
 0x110   : > { %673 = vst.msk [vmem:[%s5722_s4 + $0x88] sm:$0xff] %vm194_vm5, %v625_v38 }
 0x111   : > { %v6035_v42 = vpop.f32.mrb[16].mxu0 }
 0x112   : > { %4811 = vmatmul.mubr.msk.bf16.vlgmr.msra.gmra.mrb[88].mxu0 %vm363_vm1, %v5824_v44  ;;  %v5022_v43 = vpop.f32.mrb[16].mxu1  ;;  %v6040_v50 = vpop.f32.mrb[17].mxu0 }
 0x113   : > { %4790 = vmatmul.mubr.msk.bf16.gmra.mrb[88].mxu1 %vm363_vm1, %v5767_v23  ;;  %2384 = vmatprep.mubr.bf16.mxu0 %v7476_v12  ;;  %v631_v23 = vadd.f32 %v5019_v20, %v281_v10  ;;  %v640_v55 = vadd.f32 %v5022_v43, %v290_v39  ;;  %v577_v56 = vpop.f32.mrb[17].mxu1  ;;  %v299_v39 = vld [vmem:[%s5722_s4 + $0x148] sm:$0xff] }
 0x114   : > { %1938 = vmatprep.mubr.bf16.mxu1 %v7476_v12  ;;  %5101 = vmatpush3.bf16.msra.mxu0 %v2826_v63  ;;  %v6046_v63 = vpop.f32.mrb[18].mxu0  ;;  %v634_v4 = vadd.f32 %v577_v56, %v284_v40  ;;  %v5023_v9 = vpop.f32.mrb[18].mxu1 }
 0x115   : > { %4860 = vmatprep.subr.msk.bf16.mxu0 %vm388_vm0, %v3280_v17  ;;  %679 = vst.msk [vmem:[%s5722_s4 + $0xb8] sm:$0xff] %vm194_vm5, %v631_v23  ;;  %v6049_v10 = vpop.f32.mrb[19].mxu0  ;;  %688 = vst.msk [vmem:[%s5722_s4 + $0x100] sm:$0xff] %vm194_vm5, %v640_v55  ;;  %v580_v17 = vpop.f32.mrb[19].mxu1  ;;  %v305_v23 = vld [vmem:[%s5722_s4 + $0x178] sm:$0xff] }
 0x116   : > { %682 = vst.msk [vmem:[%s5722_s4 + $0xd0] sm:$0xff] %vm194_vm5, %v634_v4  ;;  %v637_v58 = vadd.f32 %v580_v17, %v287_v61  ;;  %v2793_v4 = vsel %vm2792_vm7, %v5864_v53, %v5870_v54 }
 0x118   : > { %685 = vst.msk [vmem:[%s5722_s4 + $0xe8] sm:$0xff] %vm194_vm5, %v637_v58 }
 0x119   : > { %v6061_v30 = vpop.f32.mrb[20].mxu0 }
 0x11a   : > { %4812 = vmatmul.mubr.msk.bf16.gmra.mrb[92].mxu0 %vm363_vm1, %v5826_v45  ;;  %v5026_v20 = vpop.f32.mrb[20].mxu1  ;;  %v6066_v35 = vpop.f32.mrb[21].mxu0 }
 0x11b   : > { %4791 = vmatmul.mubr.msk.bf16.gmra.mrb[92].mxu1 %vm363_vm1, %v5776_v26  ;;  %2394 = vmatprep.mubr.bf16.mxu0 %v7476_v12  ;;  %v643_v26 = vadd.f32 %v5023_v9, %v293_v22  ;;  %v652_v36 = vadd.f32 %v5026_v20, %v302_v19  ;;  %v593_v38 = vpop.f32.mrb[21].mxu1  ;;  %v6072_v40 = vpop.f32.mrb[22].mxu0  ;;  %v2820_v9 = vsel %vm388_vm0, %v2793_v4, 0 }
 0x11c   : > { %1948 = vmatprep.mubr.bf16.mxu1 %v7476_v12  ;;  %v646_v43 = vadd.f32 %v593_v38, %v296_v24  ;;  %v5027_v22 = vpop.f32.mrb[22].mxu1  ;;  %v6075_v55 = vpop.f32.mrb[23].mxu0 }
 0x11d   : > { %691 = vst.msk [vmem:[%s5722_s4 + $0x118] sm:$0xff] %vm194_vm5, %v643_v26  ;;  %700 = vst.msk [vmem:[%s5722_s4 + $0x160] sm:$0xff] %vm194_vm5, %v652_v36  ;;  %v655_v56 = vadd.f32 %v5027_v22, %v305_v23  ;;  %v596_v61 = vpop.f32.mrb[23].mxu1  ;;  %v729_v36 = vld [vmem:[%s5722_s4 + $0x40] sm:$0xff] }
 0x11e   : > { %694 = vst.msk [vmem:[%s5722_s4 + $0x130] sm:$0xff] %vm194_vm5, %v646_v43 }
 0x11f   : > { %703 = vst.msk [vmem:[%s5722_s4 + $0x178] sm:$0xff] %vm194_vm5, %v655_v56  ;;  %v723_v56 = vld [vmem:[%s5722_s4 + $0x10] sm:$0xff] }
 0x122   : > { %4813 = vmatmul.mubr.msk.bf16.gmra.mrb[96].mxu0 %vm363_vm1, %v5838_v5 }
 0x123   : > { %4792 = vmatmul.mubr.msk.bf16.gmra.mrb[96].mxu1 %vm363_vm1, %v5780_v27  ;;  %2404 = vmatprep.mubr.bf16.mxu0 %v7476_v12  ;;  %v649_v27 = vadd.f32 %v596_v61, %v299_v39 }
 0x124   : > { %1958 = vmatprep.mubr.bf16.mxu1 %v7476_v12 }
 0x125   : > { %697 = vst.msk [vmem:[%s5722_s4 + $0x148] sm:$0xff] %vm194_vm5, %v649_v27 }
 0x12a   : > { %4814 = vmatmul.mubr.msk.bf16.gmra.mrb[100].mxu0 %vm363_vm1, %v5840_v47 }
 0x12b   : > { %4793 = vmatmul.mubr.msk.bf16.gmra.mrb[100].mxu1 %vm363_vm1, %v5782_v28  ;;  %2414 = vmatprep.mubr.bf16.mxu0 %v7476_v12  ;;  %v6105_v28 = vpop.permute.xlu0 %3239 }
 0x12c   : > { %5084 = vmatprep.mubr.msk.bf16.mxu1 %vm363_vm1, %v5824_v44  ;;  %v6107_v44 = vpop.permute.xlu1 %3241 }
 0x132   : > { %4815 = vmatmul.mubr.msk.bf16.gmra.mrb[104].mxu0 %vm363_vm1, %v5843_v48 }
 0x133   : > { %5085 = vmatmul.mubr.msk.bf16.vlgmr.msra.gmra.mrb[104].mxu1 %vm363_vm1, %v5826_v45  ;;  %2424 = vmatprep.mubr.bf16.mxu0 %v7476_v12  ;;  %v6116_v45 = vpop.permute.xlu0 %3243 }
 0x134   : > { %5088 = vmatprep.mubr.msk.bf16.mxu1 %vm363_vm1, %v5838_v5  ;;  %2829 = vmatpush1.bf16.msra.mxu1 %v2820_v9  ;;  %v6118_v5 = vpop.permute.xlu1 %3245  ;;  %v732_v9 = vld [vmem:[%s5722_s4 + $0x58] sm:$0xff] }
 0x135   : > { %5180 = vmatprep.subr.msk.bf16.mxu1 %vm388_vm0, %v5992_v60 }
 0x137   : > { %v6120_v53 = vpop.permute.xlu0 %3247 }
 0x138   : > { %v6122_v54 = vpop.permute.xlu1 %3249 }
 0x13a   : > { %4816 = vmatmul.mubr.msk.bf16.gmra.mrb[108].mxu0 %vm363_vm1, %v5845_v49 }
 0x13b   : > { %5089 = vmatmul.mubr.msk.bf16.gmra.mrb[108].mxu1 %vm363_vm1, %v5840_v47  ;;  %2434 = vmatprep.mubr.bf16.mxu0 %v7476_v12  ;;  %v6131_v47 = vpop.permute.xlu0 %3251 }
 0x13c   : > { %5092 = vmatprep.mubr.msk.bf16.mxu1 %vm363_vm1, %v5843_v48  ;;  %v6133_v48 = vpop.permute.xlu1 %3253 }
 0x13f   : > { %v6137_v26 = vpop.permute.xlu0 %3758 }
 0x142   : > { %4817 = vmatmul.mubr.msk.bf16.gmra.mrb[112].mxu0 %vm363_vm1, %v5857_v51 }
 0x143   : > { %5093 = vmatmul.mubr.msk.bf16.gmra.mrb[112].mxu1 %vm363_vm1, %v5845_v49  ;;  %2444 = vmatprep.mubr.bf16.mxu0 %v7476_v12  ;;  %v6143_v49 = vpop.permute.xlu1 %3760  ;;  %v6151_v58 = vpop.permute.xlu0 %3762 }
 0x144   : > { %5096 = vmatprep.mubr.msk.bf16.mxu1 %vm363_vm1, %v5857_v51  ;;  %v3279_v51 = vsel %vm3278_vm8, %v5965_v34, %v5990_v59  ;;  %v3766_v34 = vsel %vm3764_vm9, %v6143_v49, %v6151_v58 }
 0x145   : > { %v3306_v19 = vsel %vm388_vm0, %v3279_v51, 0 }
 0x147   : > { %v6149_v17 = vpop.permute.xlu1 %3725 }
 0x14a   : > { %4818 = vmatmul.mubr.msk.bf16.gmra.mrb[116].mxu0 %vm363_vm1, %v5859_v52 }
 0x14b   : > { %5097 = vmatmul.mubr.msk.bf16.gmra.mrb[116].mxu1 %vm363_vm1, %v5859_v52  ;;  %5102 = vmatprep.mubr.msk.bf16.mxu0 %vm363_vm1, %v5878_v57  ;;  %v3312_v52 = vsel %vm388_vm0, %v5992_v60, 0  ;;  %v6165_v59 = vpop.permute.xlu1 %3729 }
 0x14c   : > { %2860 = vmatprep.mubr.bf16.mxu1 %v7476_v12 }
 0x14f   : > { %v6173_v60 = vpop.permute.xlu1 %3733 }
 0x152   : > { %5103 = vmatmul.mubr.msk.bf16.vlgmr.msra.gmra.mrb[120].mxu0 %vm363_vm1, %v5899_v0 }
 0x153   : > { %4836 = vmatmul.mubr.msk.bf16.vlgmr.msra.gmra.mrb[120].mxu1 %vm363_vm1, %v5878_v57  ;;  %5106 = vmatprep.mubr.msk.bf16.mxu0 %vm363_vm1, %v5893_v62  ;;  %v6171_v57 = vpop.permute.xlu0 %3727  ;;  %v6186_v23 = vpop.permute.xlu1 %3737 }
 0x154   : > { %2870 = vmatprep.mubr.bf16.mxu1 %v7476_v12  ;;  %3315 = vmatpush1.bf16.msra.mxu0 %v3306_v19 }
 0x155   : > { %5119 = vmatpush3.bf16.msra.mxu1 %v3312_v52  ;;  %5181 = vmatprep.subr.msk.bf16.mxu0 %vm388_vm0, %v6151_v58 }
 0x156   : > { %4885 = vmatprep.subr.msk.bf16.mxu1 %vm388_vm0, %v3766_v34 }
 0x157   : > { %v6177_v24 = vpop.permute.xlu0 %3731  ;;  %v6198_v39 = vpop.permute.xlu1 %4244 }
 0x15a   : > { %5107 = vmatmul.mubr.msk.bf16.gmra.mrb[124].mxu0 %vm363_vm1, %v5905_v1 }
 0x15b   : > { %4837 = vmatmul.mubr.msk.bf16.gmra.mrb[124].mxu1 %vm363_vm1, %v5899_v0  ;;  %5110 = vmatprep.mubr.msk.bf16.mxu0 %vm363_vm1, %v5909_v3  ;;  %v6184_v20 = vpop.permute.xlu0 %3735 }
 0x15c   : > { %2880 = vmatprep.mubr.bf16.mxu1 %v7476_v12 }
 0x15f   : > { %v6195_v0 = vpop.permute.xlu0 %3739 }
 0x160   : > { %7479 = vst [vmem:[#allocation2_spill] sm:$0xff] %v6195_v0 }
 0x162   : > { %5111 = vmatmul.mubr.msk.bf16.gmra.mrb[128].mxu0 %vm363_vm1, %v5932_v14 }
 0x163   : > { %4838 = vmatmul.mubr.msk.bf16.gmra.mrb[128].mxu1 %vm363_vm1, %v5893_v62  ;;  %5114 = vmatprep.mubr.msk.bf16.mxu0 %vm363_vm1, %v5936_v16 }
 0x164   : > { %2890 = vmatprep.mubr.bf16.mxu1 %v7476_v12 }
 0x165   : > { %v5032_v38 = vpop.f32.mrb[24].mxu0 }
 0x166   : > { %v918_v43 = vpop.f32.mrb[24].mxu1  ;;  %v1102_v22 = vadd.f32 %v5032_v38, %v729_v36  ;;  %v1031_v61 = vpop.f32.mrb[25].mxu0  ;;  %v726_v36 = vld [vmem:[%s5722_s4 + $0x28] sm:$0xff] }
 0x167   : > { %v6202_v62 = vadd.f32 %v918_v43, %v5907_v2  ;;  %v920_v27 = vpop.f32.mrb[25].mxu1  ;;  %v1096_v4 = vadd.f32 %v1031_v61, %v723_v56  ;;  %v5033_v51 = vpop.f32.mrb[26].mxu0 }
 0x168   : > { %v6206_v19 = vadd.f32 %v920_v27, %v5913_v6  ;;  %v922_v52 = vpop.f32.mrb[26].mxu1  ;;  %1150 = vst.msk [vmem:[%s5722_s4 + $0x40] sm:$0xff] %vm194_vm5, %v1102_v22  ;;  %v1105_v34 = vadd.f32 %v5033_v51, %v732_v9  ;;  %v1034_v38 = vpop.f32.mrb[27].mxu0  ;;  %v7480_v6 = vmov 0   ;;  %v735_v9 = vld [vmem:[%s5722_s4 + $0x70] sm:$0xff] }
 0x169   : > { %v6212_v12 = vadd.f32 %v922_v52, %v5919_v8  ;;  %v924_v2 = vpop.f32.mrb[27].mxu1  ;;  %1144 = vst.msk [vmem:[%s5722_s4 + $0x10] sm:$0xff] %vm194_vm5, %v1096_v4  ;;  %v1099_v43 = vadd.f32 %v1034_v38, %v726_v36  ;;  %v6229_v8 = vpop.permute.xlu0 %4246  ;;  %v744_v36 = vld [vmem:[%s5722_s4 + $0xb8] sm:$0xff] }
 0x16a   : > { %v6217_v56 = vadd.f32 %v924_v2, %v5925_v11  ;;  %5115 = vmatmul.mubr.msk.bf16.gmra.mrb[132].mxu0 %vm363_vm1, %v5960_v31  ;;  %1153 = vst.msk [vmem:[%s5722_s4 + $0x58] sm:$0xff] %vm194_vm5, %v1105_v34  ;;  %v741_v11 = vld [vmem:[%s5722_s4 + $0xa0] sm:$0xff]  ;;  %v6232_v61 = vpop.permute.xlu1 %4248 }
 0x16b   : > { %4839 = vmatmul.mubr.msk.bf16.gmra.mrb[132].mxu1 %vm363_vm1, %v5905_v1  ;;  %3346 = vmatprep.mubr.bf16.mxu0 %v7480_v6  ;;  %1147 = vst.msk [vmem:[%s5722_s4 + $0x28] sm:$0xff] %vm194_vm5, %v1099_v43 }
 0x16c   : > { %2900 = vmatprep.mubr.bf16.mxu1 %v7480_v6 }
 0x16d   : > { %v5036_v22 = vpop.f32.mrb[28].mxu0 }
 0x16e   : > { %v928_v27 = vpop.f32.mrb[28].mxu1  ;;  %v1114_v4 = vadd.f32 %v5036_v22, %v741_v11  ;;  %v1047_v51 = vpop.f32.mrb[29].mxu0  ;;  %v738_v22 = vld [vmem:[%s5722_s4 + $0x88] sm:$0xff] }
 0x16f   : > { %v6236_v1 = vadd.f32 %v928_v27, %v5934_v15  ;;  %v930_v52 = vpop.f32.mrb[29].mxu1  ;;  %v1108_v34 = vadd.f32 %v1047_v51, %v735_v9  ;;  %v5037_v38 = vpop.f32.mrb[30].mxu0 }
 0x170   : > { %v6240_v2 = vadd.f32 %v930_v52, %v5940_v18  ;;  %v932_v43 = vpop.f32.mrb[30].mxu1  ;;  %1162 = vst.msk [vmem:[%s5722_s4 + $0xa0] sm:$0xff] %vm194_vm5, %v1114_v4  ;;  %v1117_v11 = vadd.f32 %v5037_v38, %v744_v36  ;;  %v1050_v0 = vpop.f32.mrb[31].mxu0  ;;  %v3798_v18 = vsel %vm388_vm0, %v6151_v58, 0  ;;  %v747_v52 = vld [vmem:[%s5722_s4 + $0xd0] sm:$0xff] }
 0x171   : > { %v6246_v15 = vadd.f32 %v932_v43, %v5946_v21  ;;  %v934_v27 = vpop.f32.mrb[31].mxu1  ;;  %1156 = vst.msk [vmem:[%s5722_s4 + $0x70] sm:$0xff] %vm194_vm5, %v1108_v34  ;;  %v1111_v9 = vadd.f32 %v1050_v0, %v738_v22  ;;  %v4252_v21 = vsel %vm4250_vm10, %v6229_v8, %v6232_v61  ;;  %v756_v43 = vld [vmem:[%s5722_s4 + $0x118] sm:$0xff] }
 0x172   : > { %v6253_v51 = vadd.f32 %v934_v27, %v5949_v25  ;;  %4861 = vmatmul.mubr.msk.bf16.vlgmr.msra.gmra.mrb[136].mxu0 %vm363_vm1, %v6105_v28  ;;  %1165 = vst.msk [vmem:[%s5722_s4 + $0xb8] sm:$0xff] %vm194_vm5, %v1117_v11  ;;  %v753_v25 = vld [vmem:[%s5722_s4 + $0x100] sm:$0xff] }
 0x173   : > { %4840 = vmatmul.mubr.msk.bf16.gmra.mrb[136].mxu1 %vm363_vm1, %v5909_v3  ;;  %3356 = vmatprep.mubr.bf16.mxu0 %v7480_v6  ;;  %1159 = vst.msk [vmem:[%s5722_s4 + $0x88] sm:$0xff] %vm194_vm5, %v1111_v9 }
 0x174   : > { %2910 = vmatprep.mubr.bf16.mxu1 %v7480_v6  ;;  %5137 = vmatpush3.bf16.msra.mxu0 %v3798_v18  ;;  %v750_v18 = vld [vmem:[%s5722_s4 + $0xe8] sm:$0xff] }
 0x175   : > { %v5040_v58 = vpop.f32.mrb[32].mxu0  ;;  %4910 = vmatprep.subr.msk.bf16.mxu0 %vm388_vm0, %v4252_v21 }
 0x176   : > { %v938_v0 = vpop.f32.mrb[32].mxu1  ;;  %v1126_v4 = vadd.f32 %v5040_v58, %v753_v25  ;;  %v1063_v34 = vpop.f32.mrb[33].mxu0 }
 0x177   : > { %v6272_v3 = vadd.f32 %v938_v0, %v5963_v33  ;;  %v940_v36 = vpop.f32.mrb[33].mxu1  ;;  %v1120_v38 = vadd.f32 %v1063_v34, %v747_v52  ;;  %v5041_v11 = vpop.f32.mrb[34].mxu0  ;;  %v759_v52 = vld [vmem:[%s5722_s4 + $0x130] sm:$0xff] }
 0x178   : > { %v6276_v22 = vadd.f32 %v940_v36, %v5970_v37  ;;  %v942_v27 = vpop.f32.mrb[34].mxu1  ;;  %1174 = vst.msk [vmem:[%s5722_s4 + $0x100] sm:$0xff] %vm194_vm5, %v1126_v4  ;;  %v1129_v9 = vadd.f32 %v5041_v11, %v756_v43  ;;  %v1066_v21 = vpop.f32.mrb[35].mxu0  ;;  %v765_v37 = vld [vmem:[%s5722_s4 + $0x160] sm:$0xff]  ;;  %v768_v43 = vld [vmem:[%s5722_s4 + $0x178] sm:$0xff] }
 0x179   : > { %v6282_v33 = vadd.f32 %v942_v27, %v5976_v41  ;;  %v944_v25 = vpop.f32.mrb[35].mxu1  ;;  %1168 = vst.msk [vmem:[%s5722_s4 + $0xd0] sm:$0xff] %vm194_vm5, %v1120_v38  ;;  %v1123_v58 = vadd.f32 %v1066_v21, %v750_v18  ;;  %v762_v21 = vld [vmem:[%s5722_s4 + $0x148] sm:$0xff] }
 0x17a   : > { %v6287_v0 = vadd.f32 %v944_v25, %v5979_v46  ;;  %4862 = vmatmul.mubr.msk.bf16.gmra.mrb[140].mxu0 %vm363_vm1, %v6107_v44  ;;  %1177 = vst.msk [vmem:[%s5722_s4 + $0x118] sm:$0xff] %vm194_vm5, %v1129_v9 }
 0x17b   : > { %4841 = vmatmul.mubr.msk.bf16.gmra.mrb[140].mxu1 %vm363_vm1, %v5932_v14  ;;  %1171 = vst.msk [vmem:[%s5722_s4 + $0xe8] sm:$0xff] %vm194_vm5, %v1123_v58  ;;  %3366 = vmatprep.mubr.bf16.mxu0 %v7480_v6 }
 0x17c   : > { %2920 = vmatprep.mubr.bf16.mxu1 %v7480_v6 }
 0x17d   : > { %v5044_v41 = vpop.f32.mrb[36].mxu0 }
 0x17e   : > { %v948_v46 = vpop.f32.mrb[36].mxu1  ;;  %v1138_v4 = vadd.f32 %v5044_v41, %v765_v37  ;;  %v1079_v34 = vpop.f32.mrb[37].mxu0 }
 0x17f   : > { %v6302_v36 = vadd.f32 %v948_v46, %v6001_v7  ;;  %v950_v38 = vpop.f32.mrb[37].mxu1  ;;  %v1132_v14 = vadd.f32 %v1079_v34, %v759_v52  ;;  %v5045_v11 = vpop.f32.mrb[38].mxu0 }
 0x180   : > { %v6306_v27 = vadd.f32 %v950_v38, %v6006_v13  ;;  %v952_v9 = vpop.f32.mrb[38].mxu1  ;;  %1186 = vst.msk [vmem:[%s5722_s4 + $0x160] sm:$0xff] %vm194_vm5, %v1138_v4  ;;  %v1141_v18 = vadd.f32 %v5045_v11, %v768_v43  ;;  %v1082_v25 = vpop.f32.mrb[39].mxu0 }
 0x181   : > { %v6312_v58 = vadd.f32 %v952_v9, %v6015_v29  ;;  %v954_v7 = vpop.f32.mrb[39].mxu1  ;;  %1180 = vst.msk [vmem:[%s5722_s4 + $0x130] sm:$0xff] %vm194_vm5, %v1132_v14  ;;  %v1135_v37 = vadd.f32 %v1082_v25, %v762_v21 }
 0x182   : > { %v6317_v41 = vadd.f32 %v954_v7, %v6018_v32  ;;  %4863 = vmatmul.mubr.msk.bf16.gmra.mrb[144].mxu0 %vm363_vm1, %v6116_v45  ;;  %1189 = vst.msk [vmem:[%s5722_s4 + $0x178] sm:$0xff] %vm194_vm5, %v1141_v18 }
 0x183   : > { %4842 = vmatmul.mubr.msk.bf16.gmra.mrb[144].mxu1 %vm363_vm1, %v5936_v16  ;;  %1183 = vst.msk [vmem:[%s5722_s4 + $0x148] sm:$0xff] %vm194_vm5, %v1135_v37  ;;  %3376 = vmatprep.mubr.bf16.mxu0 %v7480_v6 }
 0x184   : > { %2930 = vmatprep.mubr.bf16.mxu1 %v7480_v6 }
 0x185   : > { %v1404_v13 = vpop.f32.mrb[40].mxu0 }
 0x186   : > { %v6330_v29 = vadd.f32 %v1404_v13, %v6202_v62  ;;  %v958_v32 = vpop.f32.mrb[40].mxu1  ;;  %v1406_v46 = vpop.f32.mrb[41].mxu0 }
 0x187   : > { %v6333_v4 = vadd.f32 %v958_v32, %v6035_v42  ;;  %v6336_v52 = vadd.f32 %v1406_v46, %v6206_v19  ;;  %v960_v34 = vpop.f32.mrb[41].mxu1  ;;  %v1408_v16 = vpop.f32.mrb[42].mxu0 }
 0x188   : > { %v6339_v38 = vadd.f32 %v960_v34, %v6040_v50  ;;  %v6342_v14 = vadd.f32 %v1408_v16, %v6212_v12  ;;  %v962_v43 = vpop.f32.mrb[42].mxu1  ;;  %v1410_v11 = vpop.f32.mrb[43].mxu0 }
 0x189   : > { %v6345_v62 = vadd.f32 %v962_v43, %v6046_v63  ;;  %v6348_v9 = vadd.f32 %v1410_v11, %v6217_v56  ;;  %v964_v42 = vpop.f32.mrb[43].mxu1 }
 0x18a   : > { %v6351_v19 = vadd.f32 %v964_v42, %v6049_v10  ;;  %4864 = vmatmul.mubr.msk.bf16.gmra.mrb[148].mxu0 %vm363_vm1, %v6118_v5  ;;  %v3765_v10 = vsel %vm3764_vm9, %v6137_v26, %v6143_v49 }
 0x18b   : > { %4843 = vmatmul.mubr.msk.bf16.gmra.mrb[148].mxu1 %vm363_vm1, %v5960_v31  ;;  %3386 = vmatprep.mubr.bf16.mxu0 %v7480_v6  ;;  %v3792_v49 = vsel %vm388_vm0, %v3765_v10, 0  ;;  %v1215_v10 = vld [vmem:[%s5722_s4 + $0x40] sm:$0xff] }
 0x18c   : > { %5120 = vmatprep.mubr.msk.bf16.mxu1 %vm363_vm1, %v6105_v28 }
 0x18d   : > { %v1414_v12 = vpop.f32.mrb[44].mxu0 }
 0x18e   : > { %v6361_v50 = vadd.f32 %v1414_v12, %v6236_v1  ;;  %v968_v63 = vpop.f32.mrb[44].mxu1  ;;  %v1416_v56 = vpop.f32.mrb[45].mxu0 }
 0x18f   : > { %v6367_v18 = vadd.f32 %v968_v63, %v6061_v30  ;;  %v6370_v31 = vadd.f32 %v1416_v56, %v6240_v2  ;;  %v970_v21 = vpop.f32.mrb[45].mxu1  ;;  %v1418_v25 = vpop.f32.mrb[46].mxu0 }
 0x190   : > { %v6373_v28 = vadd.f32 %v970_v21, %v6066_v35  ;;  %v6376_v1 = vadd.f32 %v1418_v25, %v6246_v15  ;;  %v972_v7 = vpop.f32.mrb[46].mxu1  ;;  %v1420_v37 = vpop.f32.mrb[47].mxu0 }
 0x191   : > { %v6379_v13 = vadd.f32 %v972_v7, %v6072_v40  ;;  %v6382_v26 = vadd.f32 %v1420_v37, %v6253_v51  ;;  %v974_v30 = vpop.f32.mrb[47].mxu1  ;;  %v1209_v37 = vld [vmem:[%s5722_s4 + $0x10] sm:$0xff] }
 0x192   : > { %v6386_v2 = vadd.f32 %v974_v30, %v6075_v55  ;;  %4865 = vmatmul.mubr.msk.bf16.gmra.mrb[152].mxu0 %vm363_vm1, %v6120_v53 }
 0x193   : > { %5121 = vmatmul.mubr.msk.bf16.vlgmr.msra.gmra.mrb[152].mxu1 %vm363_vm1, %v6107_v44  ;;  %3396 = vmatprep.mubr.bf16.mxu0 %v7480_v6 }
 0x194   : > { %5124 = vmatprep.mubr.msk.bf16.mxu1 %vm363_vm1, %v6116_v45  ;;  %3801 = vmatpush1.bf16.msra.mxu1 %v3792_v49 }
 0x195   : > { %v1424_v35 = vpop.f32.mrb[48].mxu0  ;;  %5182 = vmatprep.subr.msk.bf16.mxu1 %vm388_vm0, %v6232_v61 }
 0x196   : > { %v6398_v40 = vadd.f32 %v1424_v35, %v6272_v3  ;;  %v6400_v55 = vpop.f32.mrb[48].mxu1  ;;  %v1426_v15 = vpop.f32.mrb[49].mxu0  ;;  %v1218_v35 = vld [vmem:[%s5722_s4 + $0x58] sm:$0xff] }
 0x197   : > { %v6403_v51 = vadd.f32 %v1426_v15, %v6276_v22  ;;  %v6405_v44 = vpop.f32.mrb[49].mxu1  ;;  %v1428_v32 = vpop.f32.mrb[50].mxu0 }
 0x198   : > { %v6408_v46 = vadd.f32 %v1428_v32, %v6282_v33  ;;  %v6410_v45 = vpop.f32.mrb[50].mxu1  ;;  %v1430_v34 = vpop.f32.mrb[51].mxu0 }
 0x199   : > { %v6413_v16 = vadd.f32 %v1430_v34, %v6287_v0  ;;  %v6415_v3 = vpop.f32.mrb[51].mxu1  ;;  %v1212_v34 = vld [vmem:[%s5722_s4 + $0x28] sm:$0xff] }
 0x19a   : > { %4866 = vmatmul.mubr.msk.bf16.gmra.mrb[156].mxu0 %vm363_vm1, %v6122_v54 }
 0x19b   : > { %5125 = vmatmul.mubr.msk.bf16.gmra.mrb[156].mxu1 %vm363_vm1, %v6118_v5  ;;  %3406 = vmatprep.mubr.bf16.mxu0 %v7480_v6 }
 0x19c   : > { %5128 = vmatprep.mubr.msk.bf16.mxu1 %vm363_vm1, %v6120_v53 }
 0x19d   : > { %v1434_v22 = vpop.f32.mrb[52].mxu0 }
 0x19e   : > { %v6425_v33 = vadd.f32 %v1434_v22, %v6302_v36  ;;  %v6427_v43 = vpop.f32.mrb[52].mxu1  ;;  %v1436_v0 = vpop.f32.mrb[53].mxu0 }
 0x19f   : > { %v6430_v11 = vadd.f32 %v1436_v0, %v6306_v27  ;;  %v6432_v42 = vpop.f32.mrb[53].mxu1  ;;  %v1438_v12 = vpop.f32.mrb[54].mxu0 }
 0x1a0   : > { %v6435_v5 = vadd.f32 %v1438_v12, %v6312_v58  ;;  %v6437_v63 = vpop.f32.mrb[54].mxu1  ;;  %v1440_v53 = vpop.f32.mrb[55].mxu0 }
 0x1a1   : > { %v6440_v36 = vadd.f32 %v1440_v53, %v6317_v41  ;;  %v6442_v56 = vpop.f32.mrb[55].mxu1  ;;  %v1227_v53 = vld [vmem:[%s5722_s4 + $0xa0] sm:$0xff] }
 0x1a2   : > { %4867 = vmatmul.mubr.msk.bf16.gmra.mrb[160].mxu0 %vm363_vm1, %v6131_v47 }
 0x1a3   : > { %5129 = vmatmul.mubr.msk.bf16.gmra.mrb[160].mxu1 %vm363_vm1, %v6122_v54  ;;  %3416 = vmatprep.mubr.bf16.mxu0 %v7480_v6 }
 0x1a4   : > { %5132 = vmatprep.mubr.msk.bf16.mxu1 %vm363_vm1, %v6131_v47 }
 0x1a5   : > { %v1444_v27 = vpop.f32.mrb[56].mxu0 }
 0x1a6   : > { %v6452_v58 = vadd.f32 %v1444_v27, %v6333_v4  ;;  %v1446_v41 = vpop.f32.mrb[57].mxu0  ;;  %v5050_v21 = vpop.f32.mrb[56].mxu1 }
 0x1a7   : > { %v6456_v25 = vadd.f32 %v1446_v41, %v6339_v38  ;;  %v1588_v54 = vadd.f32 %v5050_v21, %v1215_v10  ;;  %v1448_v7 = vpop.f32.mrb[58].mxu0  ;;  %v1517_v30 = vpop.f32.mrb[57].mxu1 }
 0x1a8   : > { %v6460_v47 = vadd.f32 %v1448_v7, %v6345_v62  ;;  %v1582_v49 = vadd.f32 %v1517_v30, %v1209_v37  ;;  %v1450_v4 = vpop.f32.mrb[59].mxu0  ;;  %v5051_v15 = vpop.f32.mrb[58].mxu1 }
 0x1a9   : > { %1636 = vst.msk [vmem:[%s5722_s4 + $0x40] sm:$0xff] %vm194_vm5, %v1588_v54  ;;  %v6466_v32 = vadd.f32 %v1450_v4, %v6351_v19  ;;  %v1591_v38 = vadd.f32 %v5051_v15, %v1218_v35  ;;  %v1520_v22 = vpop.f32.mrb[59].mxu1  ;;  %v1221_v54 = vld [vmem:[%s5722_s4 + $0x70] sm:$0xff] }
 0x1aa   : > { %1630 = vst.msk [vmem:[%s5722_s4 + $0x10] sm:$0xff] %vm194_vm5, %v1582_v49  ;;  %v1585_v0 = vadd.f32 %v1520_v22, %v1212_v34  ;;  %4868 = vmatmul.mubr.msk.bf16.gmra.mrb[164].mxu0 %vm363_vm1, %v6133_v48  ;;  %v1230_v49 = vld [vmem:[%s5722_s4 + $0xb8] sm:$0xff]  ;;  %v757_v34 = vld [vmem:[%s5722_s4 + $0x120] sm:$0xff]  ;;  %v758_v22 = vld [vmem:[%s5722_s4 + $0x128] sm:$0xff] }
 0x1ab   : > { %1639 = vst.msk [vmem:[%s5722_s4 + $0x58] sm:$0xff] %vm194_vm5, %v1591_v38  ;;  %5133 = vmatmul.mubr.msk.bf16.gmra.mrb[164].mxu1 %vm363_vm1, %v6133_v48  ;;  %5138 = vmatprep.mubr.msk.bf16.mxu0 %vm363_vm1, %v6149_v17  ;;  %v4251_v48 = vsel %vm4250_vm10, %v6198_v39, %v6229_v8  ;;  %v4284_v38 = vsel %vm388_vm0, %v6232_v61, 0  ;;  %v1131_v61 = vadd.f32 %v6405_v44, %v758_v22 }
 0x1ac   : > { %1633 = vst.msk [vmem:[%s5722_s4 + $0x28] sm:$0xff] %vm194_vm5, %v1585_v0  ;;  %3832 = vmatprep.mubr.bf16.mxu1 %v7480_v6  ;;  %v4278_v15 = vsel %vm388_vm0, %v4251_v48, 0  ;;  %v760_v0 = vld [vmem:[%s5722_s4 + $0x138] sm:$0xff] }
 0x1ad   : > { %v1454_v62 = vpop.f32.mrb[60].mxu0 }
 0x1ae   : > { %v6483_v19 = vadd.f32 %v1454_v62, %v6367_v18  ;;  %v1456_v12 = vpop.f32.mrb[61].mxu0  ;;  %v5054_v27 = vpop.f32.mrb[60].mxu1 }
 0x1af   : > { %v6490_v41 = vadd.f32 %v1456_v12, %v6373_v28  ;;  %v1600_v10 = vadd.f32 %v5054_v27, %v1227_v53  ;;  %v1458_v21 = vpop.f32.mrb[62].mxu0  ;;  %v1533_v7 = vpop.f32.mrb[61].mxu1  ;;  %v1224_v28 = vld [vmem:[%s5722_s4 + $0x88] sm:$0xff]  ;;  %v761_v12 = vld [vmem:[%s5722_s4 + $0x140] sm:$0xff] }
 0x1b0   : > { %v6494_v18 = vadd.f32 %v1458_v21, %v6379_v13  ;;  %v1594_v37 = vadd.f32 %v1533_v7, %v1221_v54  ;;  %v1460_v30 = vpop.f32.mrb[63].mxu0  ;;  %v5055_v4 = vpop.f32.mrb[62].mxu1  ;;  %v1239_v27 = vld [vmem:[%s5722_s4 + $0x100] sm:$0xff]  ;;  %v1233_v7 = vld [vmem:[%s5722_s4 + $0xd0] sm:$0xff] }
 0x1b1   : > { %1648 = vst.msk [vmem:[%s5722_s4 + $0xa0] sm:$0xff] %vm194_vm5, %v1600_v10  ;;  %v6500_v39 = vadd.f32 %v1460_v30, %v6386_v2  ;;  %v1603_v8 = vadd.f32 %v5055_v4, %v1230_v49  ;;  %v1536_v35 = vpop.f32.mrb[63].mxu1  ;;  %v1130_v2 = vadd.f32 %v6400_v55, %v757_v34  ;;  %v1134_v10 = vadd.f32 %v6415_v3, %v761_v12  ;;  %v1242_v4 = vld [vmem:[%s5722_s4 + $0x118] sm:$0xff] }
 0x1b2   : > { %1642 = vst.msk [vmem:[%s5722_s4 + $0x70] sm:$0xff] %vm194_vm5, %v1594_v37  ;;  %v1597_v13 = vadd.f32 %v1536_v35, %v1224_v28  ;;  %5139 = vmatmul.mubr.msk.bf16.vlgmr.msra.gmra.mrb[168].mxu0 %vm363_vm1, %v6171_v57  ;;  %v1236_v35 = vld [vmem:[%s5722_s4 + $0xe8] sm:$0xff] }
 0x1b3   : > { %1651 = vst.msk [vmem:[%s5722_s4 + $0xb8] sm:$0xff] %vm194_vm5, %v1603_v8  ;;  %4886 = vmatmul.mubr.msk.bf16.vlgmr.msra.gmra.mrb[168].mxu1 %vm363_vm1, %v6149_v17  ;;  %5142 = vmatprep.mubr.msk.bf16.mxu0 %vm363_vm1, %v6165_v59  ;;  %v1133_v17 = vadd.f32 %v6410_v45, %v760_v0 }
 0x1b4   : > { %1645 = vst.msk [vmem:[%s5722_s4 + $0x88] sm:$0xff] %vm194_vm5, %v1597_v13  ;;  %3842 = vmatprep.mubr.bf16.mxu1 %v7480_v6  ;;  %4287 = vmatpush1.bf16.msra.mxu0 %v4278_v15 }
 0x1b5   : > { %v1464_v62 = vpop.f32.mrb[64].mxu0  ;;  %5155 = vmatpush3.bf16.msra.mxu1 %v4284_v38  ;;  %v763_v38 = vld [vmem:[%s5722_s4 + $0x150] sm:$0xff] }
 0x1b6   : > { %v6526_v53 = vadd.f32 %v1464_v62, %v1130_v2  ;;  %v1466_v55 = vpop.f32.mrb[65].mxu0  ;;  %v5058_v48 = vpop.f32.mrb[64].mxu1  ;;  %v1136_v34 = vadd.f32 %v6427_v43, %v763_v38  ;;  %v764_v2 = vld [vmem:[%s5722_s4 + $0x158] sm:$0xff] }
 0x1b7   : > { %v6530_v21 = vadd.f32 %v1466_v55, %v1131_v61  ;;  %v1612_v44 = vadd.f32 %v5058_v48, %v1239_v27  ;;  %v1468_v54 = vpop.f32.mrb[66].mxu0  ;;  %v1549_v37 = vpop.f32.mrb[65].mxu1  ;;  %v1137_v22 = vadd.f32 %v6432_v42, %v764_v2  ;;  %v766_v61 = vld [vmem:[%s5722_s4 + $0x168] sm:$0xff]  ;;  %v1251_v55 = vld [vmem:[%s5722_s4 + $0x160] sm:$0xff]  ;;  %v1695_v2 = vld [vmem:[%s5722_s4 + $0x10] sm:$0xff] }
 0x1b8   : > { %v6533_v45 = vadd.f32 %v1468_v54, %v1133_v17  ;;  %v1606_v30 = vadd.f32 %v1549_v37, %v1233_v7  ;;  %v1470_v49 = vpop.f32.mrb[67].mxu0  ;;  %v5059_v8 = vpop.f32.mrb[66].mxu1  ;;  %v1139_v62 = vadd.f32 %v6437_v63, %v766_v61  ;;  %v767_v17 = vld [vmem:[%s5722_s4 + $0x170] sm:$0xff] }
 0x1b9   : > { %1660 = vst.msk [vmem:[%s5722_s4 + $0x100] sm:$0xff] %vm194_vm5, %v1612_v44  ;;  %v6538_v3 = vadd.f32 %v1470_v49, %v1134_v10  ;;  %v1615_v28 = vadd.f32 %v5059_v8, %v1242_v4  ;;  %v1552_v15 = vpop.f32.mrb[67].mxu1  ;;  %v1140_v27 = vadd.f32 %v6442_v56, %v767_v17  ;;  %v1245_v44 = vld [vmem:[%s5722_s4 + $0x130] sm:$0xff]  ;;  %v1248_v8 = vld [vmem:[%s5722_s4 + $0x148] sm:$0xff] }
 0x1ba   : > { %1654 = vst.msk [vmem:[%s5722_s4 + $0xd0] sm:$0xff] %vm194_vm5, %v1606_v30  ;;  %v1609_v13 = vadd.f32 %v1552_v15, %v1236_v35  ;;  %5143 = vmatmul.mubr.msk.bf16.gmra.mrb[172].mxu0 %vm363_vm1, %v6177_v24  ;;  %v1254_v30 = vld [vmem:[%s5722_s4 + $0x178] sm:$0xff]  ;;  %v1701_v15 = vld [vmem:[%s5722_s4 + $0x40] sm:$0xff] }
 0x1bb   : > { %1663 = vst.msk [vmem:[%s5722_s4 + $0x118] sm:$0xff] %vm194_vm5, %v1615_v28  ;;  %4887 = vmatmul.mubr.msk.bf16.gmra.mrb[172].mxu1 %vm363_vm1, %v6171_v57  ;;  %5146 = vmatprep.mubr.msk.bf16.mxu0 %vm363_vm1, %v6173_v60 }
 0x1bc   : > { %1657 = vst.msk [vmem:[%s5722_s4 + $0xe8] sm:$0xff] %vm194_vm5, %v1609_v13  ;;  %3852 = vmatprep.mubr.bf16.mxu1 %v7480_v6 }
 0x1bd   : > { %v1474_v0 = vpop.f32.mrb[68].mxu0 }
 0x1be   : > { %v6561_v57 = vadd.f32 %v1474_v0, %v1136_v34  ;;  %v1476_v12 = vpop.f32.mrb[69].mxu0  ;;  %v5062_v43 = vpop.f32.mrb[68].mxu1 }
 0x1bf   : > { %v6565_v48 = vadd.f32 %v1476_v12, %v1137_v22  ;;  %v1624_v10 = vadd.f32 %v5062_v43, %v1251_v55  ;;  %v1478_v42 = vpop.f32.mrb[70].mxu0  ;;  %v1565_v54 = vpop.f32.mrb[69].mxu1 }
 0x1c0   : > { %v6568_v7 = vadd.f32 %v1478_v42, %v1139_v62  ;;  %v1618_v63 = vadd.f32 %v1565_v54, %v1245_v44  ;;  %v1480_v37 = vpop.f32.mrb[71].mxu0  ;;  %v5063_v49 = vpop.f32.mrb[70].mxu1  ;;  %v1704_v62 = vld [vmem:[%s5722_s4 + $0x58] sm:$0xff] }
 0x1c1   : > { %1672 = vst.msk [vmem:[%s5722_s4 + $0x160] sm:$0xff] %vm194_vm5, %v1624_v10  ;;  %v6573_v4 = vadd.f32 %v1480_v37, %v1140_v27  ;;  %v1627_v56 = vadd.f32 %v5063_v49, %v1254_v30  ;;  %v1568_v28 = vpop.f32.mrb[71].mxu1  ;;  %v1698_v27 = vld [vmem:[%s5722_s4 + $0x28] sm:$0xff]  ;;  %v6620_v37 = vpop.permute.xlu0 %4211  ;;  %v1707_v49 = vld [vmem:[%s5722_s4 + $0x70] sm:$0xff] }
 0x1c2   : > { %1666 = vst.msk [vmem:[%s5722_s4 + $0x130] sm:$0xff] %vm194_vm5, %v1618_v63  ;;  %v1621_v35 = vadd.f32 %v1568_v28, %v1248_v8  ;;  %5147 = vmatmul.mubr.msk.bf16.gmra.mrb[176].mxu0 %vm363_vm1, %v6184_v20 }
 0x1c3   : > { %1675 = vst.msk [vmem:[%s5722_s4 + $0x178] sm:$0xff] %vm194_vm5, %v1627_v56  ;;  %4888 = vmatmul.mubr.msk.bf16.gmra.mrb[176].mxu1 %vm363_vm1, %v6165_v59  ;;  %5150 = vmatprep.mubr.msk.bf16.mxu0 %vm363_vm1, %v6186_v23 }
 0x1c4   : > { %1669 = vst.msk [vmem:[%s5722_s4 + $0x148] sm:$0xff] %vm194_vm5, %v1621_v35  ;;  %3862 = vmatprep.mubr.bf16.mxu1 %v7480_v6  ;;  %v1716_v35 = vld [vmem:[%s5722_s4 + $0xb8] sm:$0xff] }
 0x1c5   : > { %v5068_v13 = vpop.f32.mrb[72].mxu0 }
 0x1c6   : > { %v2074_v38 = vadd.f32 %v5068_v13, %v1701_v15  ;;  %v1890_v34 = vpop.f32.mrb[72].mxu1  ;;  %v2003_v22 = vpop.f32.mrb[73].mxu0 }
 0x1c7   : > { %v6592_v61 = vadd.f32 %v1890_v34, %v6330_v29  ;;  %v2068_v59 = vadd.f32 %v2003_v22, %v1695_v2  ;;  %v1892_v0 = vpop.f32.mrb[73].mxu1  ;;  %v5069_v17 = vpop.f32.mrb[74].mxu0  ;;  %v1710_v2 = vld [vmem:[%s5722_s4 + $0x88] sm:$0xff] }
 0x1c8   : > { %2122 = vst.msk [vmem:[%s5722_s4 + $0x40] sm:$0xff] %vm194_vm5, %v2074_v38  ;;  %v6598_v12 = vadd.f32 %v1892_v0, %v6336_v52  ;;  %v2077_v55 = vadd.f32 %v5069_v17, %v1704_v62  ;;  %v1894_v43 = vpop.f32.mrb[74].mxu1  ;;  %v2006_v10 = vpop.f32.mrb[75].mxu0  ;;  %v7481_v52 = vld [vmem:[#allocation2_spill] sm:$0xff] }
 0x1c9   : > { %2116 = vst.msk [vmem:[%s5722_s4 + $0x10] sm:$0xff] %vm194_vm5, %v2068_v59  ;;  %v6604_v29 = vadd.f32 %v1894_v43, %v6342_v14  ;;  %v2071_v42 = vadd.f32 %v2006_v10, %v1698_v27  ;;  %v1896_v44 = vpop.f32.mrb[75].mxu1  ;;  %v1713_v14 = vld [vmem:[%s5722_s4 + $0xa0] sm:$0xff]  ;;  %v6652_v17 = vpop.permute.xlu1 %4213  ;;  %v1719_v43 = vld [vmem:[%s5722_s4 + $0xd0] sm:$0xff] }
 0x1ca   : > { %2125 = vst.msk [vmem:[%s5722_s4 + $0x58] sm:$0xff] %vm194_vm5, %v2077_v55  ;;  %v6609_v54 = vadd.f32 %v1896_v44, %v6348_v9  ;;  %5151 = vmatmul.mubr.msk.bf16.gmra.mrb[180].mxu0 %vm363_vm1, %v7481_v52  ;;  %v1728_v44 = vld [vmem:[%s5722_s4 + $0x118] sm:$0xff] }
 0x1cb   : > { %2119 = vst.msk [vmem:[%s5722_s4 + $0x28] sm:$0xff] %vm194_vm5, %v2071_v42  ;;  %4889 = vmatmul.mubr.msk.bf16.gmra.mrb[180].mxu1 %vm363_vm1, %v6177_v24  ;;  %4318 = vmatprep.mubr.bf16.mxu0 %v7480_v6 }
 0x1cc   : > { %3872 = vmatprep.mubr.bf16.mxu1 %v7480_v6 }
 0x1cd   : > { %v5072_v63 = vpop.f32.mrb[76].mxu0 }
 0x1ce   : > { %v2086_v9 = vadd.f32 %v5072_v63, %v1713_v14  ;;  %v1900_v30 = vpop.f32.mrb[76].mxu1  ;;  %v2019_v56 = vpop.f32.mrb[77].mxu0 }
 0x1cf   : > { %v6624_v8 = vadd.f32 %v1900_v30, %v6361_v50  ;;  %v2080_v28 = vadd.f32 %v2019_v56, %v1707_v49  ;;  %v1902_v24 = vpop.f32.mrb[77].mxu1  ;;  %v5073_v15 = vpop.f32.mrb[78].mxu0  ;;  %v1722_v49 = vld [vmem:[%s5722_s4 + $0xe8] sm:$0xff] }
 0x1d0   : > { %2134 = vst.msk [vmem:[%s5722_s4 + $0xa0] sm:$0xff] %vm194_vm5, %v2086_v9  ;;  %v6630_v13 = vadd.f32 %v1902_v24, %v6370_v31  ;;  %v2089_v38 = vadd.f32 %v5073_v15, %v1716_v35  ;;  %v1904_v34 = vpop.f32.mrb[78].mxu1  ;;  %v2022_v22 = vpop.f32.mrb[79].mxu0  ;;  %v1725_v31 = vld [vmem:[%s5722_s4 + $0x100] sm:$0xff] }
 0x1d1   : > { %2128 = vst.msk [vmem:[%s5722_s4 + $0x70] sm:$0xff] %vm194_vm5, %v2080_v28  ;;  %v6636_v50 = vadd.f32 %v1904_v34, %v6376_v1  ;;  %v2083_v59 = vadd.f32 %v2022_v22, %v1710_v2  ;;  %v1906_v0 = vpop.f32.mrb[79].mxu1  ;;  %v6684_v15 = vpop.permute.xlu0 %4215  ;;  %v1731_v34 = vld [vmem:[%s5722_s4 + $0x130] sm:$0xff] }
 0x1d2   : > { %2137 = vst.msk [vmem:[%s5722_s4 + $0xb8] sm:$0xff] %vm194_vm5, %v2089_v38  ;;  %v6641_v62 = vadd.f32 %v1906_v0, %v6382_v26  ;;  %4911 = vmatmul.mubr.msk.bf16.vlgmr.msra.gmra.mrb[184].mxu0 %vm363_vm1, %v6620_v37  ;;  %v1740_v0 = vld [vmem:[%s5722_s4 + $0x178] sm:$0xff] }
 0x1d3   : > { %2131 = vst.msk [vmem:[%s5722_s4 + $0x88] sm:$0xff] %vm194_vm5, %v2083_v59  ;;  %4890 = vmatmul.mubr.msk.bf16.gmra.mrb[184].mxu1 %vm363_vm1, %v6173_v60  ;;  %4328 = vmatprep.mubr.bf16.mxu0 %v7480_v6 }
 0x1d4   : > { %3882 = vmatprep.mubr.bf16.mxu1 %v7480_v6 }
 0x1d5   : > { %v5076_v1 = vpop.f32.mrb[80].mxu0 }
 0x1d6   : > { %v2098_v26 = vadd.f32 %v5076_v1, %v1725_v31  ;;  %v1910_v55 = vpop.f32.mrb[80].mxu1  ;;  %v2035_v27 = vpop.f32.mrb[81].mxu0 }
 0x1d7   : > { %v6656_v10 = vadd.f32 %v1910_v55, %v6398_v40  ;;  %v2092_v42 = vadd.f32 %v2035_v27, %v1719_v43  ;;  %v1912_v60 = vpop.f32.mrb[81].mxu1  ;;  %v5077_v14 = vpop.f32.mrb[82].mxu0  ;;  %v1734_v43 = vld [vmem:[%s5722_s4 + $0x148] sm:$0xff] }
 0x1d8   : > { %2146 = vst.msk [vmem:[%s5722_s4 + $0x100] sm:$0xff] %vm194_vm5, %v2098_v26  ;;  %v6662_v63 = vadd.f32 %v1912_v60, %v6403_v51  ;;  %v2101_v9 = vadd.f32 %v5077_v14, %v1728_v44  ;;  %v1914_v30 = vpop.f32.mrb[82].mxu1  ;;  %v2038_v56 = vpop.f32.mrb[83].mxu0  ;;  %v1737_v51 = vld [vmem:[%s5722_s4 + $0x160] sm:$0xff] }
 0x1d9   : > { %2140 = vst.msk [vmem:[%s5722_s4 + $0xd0] sm:$0xff] %vm194_vm5, %v2092_v42  ;;  %v6668_v40 = vadd.f32 %v1914_v30, %v6408_v46  ;;  %v2095_v28 = vadd.f32 %v2038_v56, %v1722_v49  ;;  %v1916_v24 = vpop.f32.mrb[83].mxu1 }
 0x1da   : > { %2149 = vst.msk [vmem:[%s5722_s4 + $0x118] sm:$0xff] %vm194_vm5, %v2101_v9  ;;  %v6673_v35 = vadd.f32 %v1916_v24, %v6413_v16  ;;  %4912 = vmatmul.mubr.msk.bf16.gmra.mrb[188].mxu0 %vm363_vm1, %v6652_v17 }
 0x1db   : > { %2143 = vst.msk [vmem:[%s5722_s4 + $0xe8] sm:$0xff] %vm194_vm5, %v2095_v28  ;;  %4891 = vmatmul.mubr.msk.bf16.gmra.mrb[188].mxu1 %vm363_vm1, %v6184_v20  ;;  %4338 = vmatprep.mubr.bf16.mxu0 %v7480_v6 }
 0x1dc   : > { %3892 = vmatprep.mubr.bf16.mxu1 %v7480_v6 }
 0x1dd   : > { %v5080_v46 = vpop.f32.mrb[84].mxu0 }
 0x1de   : > { %v2110_v16 = vadd.f32 %v5080_v46, %v1737_v51  ;;  %v1920_v38 = vpop.f32.mrb[84].mxu1  ;;  %v2051_v2 = vpop.f32.mrb[85].mxu0 }
 0x1df   : > { %v6688_v22 = vadd.f32 %v1920_v38, %v6425_v33  ;;  %v2104_v59 = vadd.f32 %v2051_v2, %v1731_v34  ;;  %v1922_v20 = vpop.f32.mrb[85].mxu1  ;;  %v5081_v31 = vpop.f32.mrb[86].mxu0 }
 0x1e0   : > { %2158 = vst.msk [vmem:[%s5722_s4 + $0x160] sm:$0xff] %vm194_vm5, %v2110_v16  ;;  %v6694_v1 = vadd.f32 %v1922_v20, %v6430_v11  ;;  %v2113_v26 = vadd.f32 %v5081_v31, %v1740_v0  ;;  %v1924_v55 = vpop.f32.mrb[86].mxu1  ;;  %v2054_v27 = vpop.f32.mrb[87].mxu0 }
 0x1e1   : > { %2152 = vst.msk [vmem:[%s5722_s4 + $0x130] sm:$0xff] %vm194_vm5, %v2104_v59  ;;  %v6700_v42 = vadd.f32 %v1924_v55, %v6435_v5  ;;  %v2107_v33 = vadd.f32 %v2054_v27, %v1734_v43  ;;  %v1926_v60 = vpop.f32.mrb[87].mxu1  ;;  %v4218_v5 = vpop.permute.xlu1 %4217 }
 0x1e2   : > { %2161 = vst.msk [vmem:[%s5722_s4 + $0x178] sm:$0xff] %vm194_vm5, %v2113_v26  ;;  %v6705_v44 = vadd.f32 %v1926_v60, %v6440_v36  ;;  %4913 = vmatmul.mubr.msk.bf16.gmra.mrb[192].mxu0 %vm363_vm1, %v6684_v15 }
 0x1e3   : > { %2155 = vst.msk [vmem:[%s5722_s4 + $0x148] sm:$0xff] %vm194_vm5, %v2107_v33  ;;  %4892 = vmatmul.mubr.msk.bf16.gmra.mrb[192].mxu1 %vm363_vm1, %v6186_v23  ;;  %4348 = vmatprep.mubr.bf16.mxu0 %v7480_v6 }
 0x1e4   : > { %3902 = vmatprep.mubr.bf16.mxu1 %v7480_v6 }
 0x1e5   : > { %v2376_v11 = vpop.f32.mrb[88].mxu0 }
 0x1e6   : > { %v6716_v14 = vadd.f32 %v2376_v11, %v6592_v61  ;;  %v1930_v9 = vpop.f32.mrb[88].mxu1  ;;  %v2378_v36 = vpop.f32.mrb[89].mxu0 }
 0x1e7   : > { %v6719_v30 = vadd.f32 %v1930_v9, %v6452_v58  ;;  %v6722_v49 = vadd.f32 %v2378_v36, %v6598_v12  ;;  %v1932_v56 = vpop.f32.mrb[89].mxu1  ;;  %v2380_v28 = vpop.f32.mrb[90].mxu0 }
 0x1e8   : > { %v6725_v23 = vadd.f32 %v1932_v56, %v6456_v25  ;;  %v6728_v24 = vadd.f32 %v2380_v28, %v6604_v29  ;;  %v1934_v51 = vpop.f32.mrb[90].mxu1  ;;  %v2382_v46 = vpop.f32.mrb[91].mxu0 }
 0x1e9   : > { %v6731_v61 = vadd.f32 %v1934_v51, %v6460_v47  ;;  %v6734_v16 = vadd.f32 %v2382_v46, %v6609_v54  ;;  %v1936_v58 = vpop.f32.mrb[91].mxu1  ;;  %v4220_v47 = vpop.permute.xlu0 %4219 }
 0x1ea   : > { %v6737_v12 = vadd.f32 %v1936_v58, %v6466_v32  ;;  %4914 = vmatmul.mubr.msk.bf16.gmra.mrb[196].mxu0 %vm363_vm1, %v4218_v5 }
 0x1eb   : > { %4893 = vmatmul.mubr.msk.bf16.gmra.mrb[196].mxu1 %vm363_vm1, %v7481_v52  ;;  %4358 = vmatprep.mubr.bf16.mxu0 %v7480_v6 }
 0x1ec   : > { %5156 = vmatprep.mubr.msk.bf16.mxu1 %vm363_vm1, %v6620_v37 }
 0x1ed   : > { %v2386_v25 = vpop.f32.mrb[92].mxu0 }
 0x1ee   : > { %v6746_v29 = vadd.f32 %v2386_v25, %v6624_v8  ;;  %v1940_v54 = vpop.f32.mrb[92].mxu1  ;;  %v2388_v38 = vpop.f32.mrb[93].mxu0 }
 0x1ef   : > { %v6749_v32 = vadd.f32 %v1940_v54, %v6483_v19  ;;  %v6752_v34 = vadd.f32 %v2388_v38, %v6630_v13  ;;  %v1942_v2 = vpop.f32.mrb[93].mxu1  ;;  %v2390_v52 = vpop.f32.mrb[94].mxu0 }
 0x1f0   : > { %v6755_v59 = vadd.f32 %v1942_v2, %v6490_v41  ;;  %v6758_v37 = vadd.f32 %v2390_v52, %v6636_v50  ;;  %v1944_v20 = vpop.f32.mrb[94].mxu1  ;;  %v2392_v0 = vpop.f32.mrb[95].mxu0 }
 0x1f1   : > { %v6761_v8 = vadd.f32 %v1944_v20, %v6494_v18  ;;  %v6764_v31 = vadd.f32 %v2392_v0, %v6641_v62  ;;  %v1946_v19 = vpop.f32.mrb[95].mxu1  ;;  %v4222_v18 = vpop.permute.xlu1 %4221 }
 0x1f2   : > { %v6767_v13 = vadd.f32 %v1946_v19, %v6500_v39  ;;  %4915 = vmatmul.mubr.msk.bf16.gmra.mrb[200].mxu0 %vm363_vm1, %v4220_v47  ;;  %v2190_v19 = vld [vmem:[%s5722_s4 + $0x58] sm:$0xff] }
 0x1f3   : > { %5157 = vmatmul.mubr.msk.bf16.vlgmr.msra.gmra.mrb[200].mxu1 %vm363_vm1, %v6652_v17  ;;  %4368 = vmatprep.mubr.bf16.mxu0 %v7480_v6 }
 0x1f4   : > { %5160 = vmatprep.mubr.msk.bf16.mxu1 %vm363_vm1, %v6684_v15 }
 0x1f5   : > { %v2396_v41 = vpop.f32.mrb[96].mxu0 }
 0x1f6   : > { %v6776_v50 = vadd.f32 %v2396_v41, %v6656_v10  ;;  %v1950_v62 = vpop.f32.mrb[96].mxu1  ;;  %v2398_v26 = vpop.f32.mrb[97].mxu0 }
 0x1f7   : > { %v6779_v39 = vadd.f32 %v1950_v62, %v6526_v53  ;;  %v6782_v55 = vadd.f32 %v2398_v26, %v6662_v63  ;;  %v1952_v43 = vpop.f32.mrb[97].mxu1  ;;  %v2400_v17 = vpop.f32.mrb[98].mxu0  ;;  %v2184_v62 = vld [vmem:[%s5722_s4 + $0x28] sm:$0xff] }
 0x1f8   : > { %v6785_v27 = vadd.f32 %v1952_v43, %v6530_v21  ;;  %v6788_v15 = vadd.f32 %v2400_v17, %v6668_v40  ;;  %v1954_v33 = vpop.f32.mrb[98].mxu1  ;;  %v2402_v60 = vpop.f32.mrb[99].mxu0 }
 0x1f9   : > { %v6791_v10 = vadd.f32 %v1954_v33, %v6533_v45  ;;  %v6794_v11 = vadd.f32 %v2402_v60, %v6673_v35  ;;  %v1956_v53 = vpop.f32.mrb[99].mxu1  ;;  %v4224_v40 = vpop.permute.xlu0 %4223  ;;  %v2199_v33 = vld [vmem:[%s5722_s4 + $0xa0] sm:$0xff] }
 0x1fa   : > { %v6797_v63 = vadd.f32 %v1956_v53, %v6538_v3  ;;  %4916 = vmatmul.mubr.msk.bf16.gmra.mrb[204].mxu0 %vm363_vm1, %v4222_v18 }
 0x1fb   : > { %5161 = vmatmul.mubr.msk.bf16.gmra.mrb[204].mxu1 %vm363_vm1, %v4218_v5  ;;  %4378 = vmatprep.mubr.bf16.mxu0 %v7480_v6 }
 0x1fc   : > { %5164 = vmatprep.mubr.msk.bf16.mxu1 %vm363_vm1, %v4220_v47  ;;  %v2187_v47 = vld [vmem:[%s5722_s4 + $0x40] sm:$0xff] }
 0x1fd   : > { %v2406_v21 = vpop.f32.mrb[100].mxu0 }
 0x1fe   : > { %v6804_v45 = vadd.f32 %v2406_v21, %v6688_v22  ;;  %v1960_v9 = vpop.f32.mrb[100].mxu1  ;;  %v2408_v35 = vpop.f32.mrb[101].mxu0 }
 0x1ff   : > { %v6807_v36 = vadd.f32 %v1960_v9, %v6561_v57  ;;  %v6810_v3 = vadd.f32 %v2408_v35, %v6694_v1  ;;  %v1962_v56 = vpop.f32.mrb[101].mxu1  ;;  %v2410_v28 = vpop.f32.mrb[102].mxu0  ;;  %v2193_v9 = vld [vmem:[%s5722_s4 + $0x70] sm:$0xff] }
 0x200   : > { %v6813_v5 = vadd.f32 %v1962_v56, %v6565_v48  ;;  %v6816_v51 = vadd.f32 %v2410_v28, %v6700_v42  ;;  %v1964_v46 = vpop.f32.mrb[102].mxu1  ;;  %v2412_v22 = vpop.f32.mrb[103].mxu0 }
 0x201   : > { %v6819_v58 = vadd.f32 %v1964_v46, %v6568_v7  ;;  %v6822_v57 = vadd.f32 %v2412_v22, %v6705_v44  ;;  %v1966_v1 = vpop.f32.mrb[103].mxu1  ;;  %v4226_v7 = vpop.permute.xlu1 %4225  ;;  %v2202_v46 = vld [vmem:[%s5722_s4 + $0xb8] sm:$0xff] }
 0x202   : > { %v6825_v25 = vadd.f32 %v1966_v1, %v6573_v4  ;;  %4917 = vmatmul.mubr.msk.bf16.gmra.mrb[208].mxu0 %vm363_vm1, %v4224_v40 }
 0x203   : > { %5165 = vmatmul.mubr.msk.bf16.gmra.mrb[208].mxu1 %vm363_vm1, %v4222_v18  ;;  %4388 = vmatprep.mubr.bf16.mxu0 %v7480_v6  ;;  %v2181_v6 = vld [vmem:[%s5722_s4 + $0x10] sm:$0xff] }
 0x204   : > { %5168 = vmatprep.mubr.msk.bf16.mxu1 %vm363_vm1, %v4224_v40 }
 0x205   : > { %v2416_v48 = vpop.f32.mrb[104].mxu0 }
 0x206   : > { %v6832_v42 = vadd.f32 %v2416_v48, %v6719_v30  ;;  %v2418_v44 = vpop.f32.mrb[105].mxu0  ;;  %v5086_v4 = vpop.f32.mrb[104].mxu1  ;;  %v2196_v48 = vld [vmem:[%s5722_s4 + $0x88] sm:$0xff] }
 0x207   : > { %v6836_v54 = vadd.f32 %v2418_v44, %v6725_v23  ;;  %v2560_v38 = vadd.f32 %v5086_v4, %v2187_v47  ;;  %v2420_v2 = vpop.f32.mrb[106].mxu0  ;;  %v2489_v52 = vpop.f32.mrb[105].mxu1 }
 0x208   : > { %v6840_v20 = vadd.f32 %v2420_v2, %v6731_v61  ;;  %v2554_v0 = vadd.f32 %v2489_v52, %v2181_v6  ;;  %v2422_v30 = vpop.f32.mrb[107].mxu0  ;;  %v5087_v41 = vpop.f32.mrb[106].mxu1 }
 0x209   : > { %2608 = vst.msk [vmem:[%s5722_s4 + $0x40] sm:$0xff] %vm194_vm5, %v2560_v38  ;;  %v6846_v18 = vadd.f32 %v2422_v30, %v6737_v12  ;;  %v2563_v23 = vadd.f32 %v5087_v41, %v2190_v19  ;;  %v2492_v26 = vpop.f32.mrb[107].mxu1 }
 0x20a   : > { %2602 = vst.msk [vmem:[%s5722_s4 + $0x10] sm:$0xff] %vm194_vm5, %v2554_v0  ;;  %v2557_v43 = vadd.f32 %v2492_v26, %v2184_v62  ;;  %4918 = vmatmul.mubr.msk.bf16.gmra.mrb[212].mxu0 %vm363_vm1, %v4226_v7  ;;  %v2205_v0 = vld [vmem:[%s5722_s4 + $0xd0] sm:$0xff] }
 0x20b   : > { %2611 = vst.msk [vmem:[%s5722_s4 + $0x58] sm:$0xff] %vm194_vm5, %v2563_v23  ;;  %5169 = vmatmul.mubr.msk.bf16.gmra.mrb[212].mxu1 %vm363_vm1, %v4226_v7  ;;  %v2214_v23 = vld [vmem:[%s5722_s4 + $0x118] sm:$0xff] }
 0x20c   : > { %2605 = vst.msk [vmem:[%s5722_s4 + $0x28] sm:$0xff] %vm194_vm5, %v2557_v43  ;;  %v2208_v43 = vld [vmem:[%s5722_s4 + $0xe8] sm:$0xff] }
 0x20d   : > { %v2426_v61 = vpop.f32.mrb[108].mxu0 }
 0x20e   : > { %v6858_v12 = vadd.f32 %v2426_v61, %v6749_v32  ;;  %v2428_v17 = vpop.f32.mrb[109].mxu0  ;;  %v5090_v60 = vpop.f32.mrb[108].mxu1 }
 0x20f   : > { %v6862_v53 = vadd.f32 %v2428_v17, %v6755_v59  ;;  %v2572_v21 = vadd.f32 %v5090_v60, %v2199_v33  ;;  %v2430_v40 = vpop.f32.mrb[110].mxu0  ;;  %v2505_v35 = vpop.f32.mrb[109].mxu1 }
 0x210   : > { %v6866_v56 = vadd.f32 %v2430_v40, %v6761_v8  ;;  %v2566_v28 = vadd.f32 %v2505_v35, %v2193_v9  ;;  %v2432_v32 = vpop.f32.mrb[111].mxu0  ;;  %v5091_v22 = vpop.f32.mrb[110].mxu1 }
 0x211   : > { %2620 = vst.msk [vmem:[%s5722_s4 + $0xa0] sm:$0xff] %vm194_vm5, %v2572_v21  ;;  %v6872_v1 = vadd.f32 %v2432_v32, %v6767_v13  ;;  %v2575_v59 = vadd.f32 %v5091_v22, %v2202_v46  ;;  %v2508_v7 = vpop.f32.mrb[111].mxu1  ;;  %v2211_v13 = vld [vmem:[%s5722_s4 + $0x100] sm:$0xff] }
 0x212   : > { %2614 = vst.msk [vmem:[%s5722_s4 + $0x70] sm:$0xff] %vm194_vm5, %v2566_v28  ;;  %v2569_v44 = vadd.f32 %v2508_v7, %v2196_v48  ;;  %v2217_v28 = vld [vmem:[%s5722_s4 + $0x130] sm:$0xff] }
 0x213   : > { %2623 = vst.msk [vmem:[%s5722_s4 + $0xb8] sm:$0xff] %vm194_vm5, %v2575_v59  ;;  %v2226_v59 = vld [vmem:[%s5722_s4 + $0x178] sm:$0xff] }
 0x214   : > { %2617 = vst.msk [vmem:[%s5722_s4 + $0x88] sm:$0xff] %vm194_vm5, %v2569_v44  ;;  %v2220_v44 = vld [vmem:[%s5722_s4 + $0x148] sm:$0xff] }
 0x215   : > { %v2436_v8 = vpop.f32.mrb[112].mxu0 }
 0x216   : > { %v6882_v47 = vadd.f32 %v2436_v8, %v6779_v39  ;;  %v2438_v4 = vpop.f32.mrb[113].mxu0  ;;  %v5094_v38 = vpop.f32.mrb[112].mxu1 }
 0x217   : > { %v6886_v2 = vadd.f32 %v2438_v4, %v6785_v27  ;;  %v2584_v6 = vadd.f32 %v5094_v38, %v2211_v13  ;;  %v2440_v52 = vpop.f32.mrb[114].mxu0  ;;  %v2521_v30 = vpop.f32.mrb[113].mxu1 }
 0x218   : > { %v6890_v19 = vadd.f32 %v2440_v52, %v6791_v10  ;;  %v2578_v41 = vadd.f32 %v2521_v30, %v2205_v0  ;;  %v2442_v39 = vpop.f32.mrb[115].mxu0  ;;  %v5095_v62 = vpop.f32.mrb[114].mxu1 }
 0x219   : > { %2632 = vst.msk [vmem:[%s5722_s4 + $0x100] sm:$0xff] %vm194_vm5, %v2584_v6  ;;  %v6896_v26 = vadd.f32 %v2442_v39, %v6797_v63  ;;  %v2587_v27 = vadd.f32 %v5095_v62, %v2214_v23  ;;  %v2524_v61 = vpop.f32.mrb[115].mxu1  ;;  %v2223_v63 = vld [vmem:[%s5722_s4 + $0x160] sm:$0xff]  ;;  %v2676_v39 = vld [vmem:[%s5722_s4 + $0x58] sm:$0xff] }
 0x21a   : > { %2626 = vst.msk [vmem:[%s5722_s4 + $0xd0] sm:$0xff] %vm194_vm5, %v2578_v41  ;;  %v2581_v17 = vadd.f32 %v2524_v61, %v2208_v43  ;;  %v2670_v61 = vld [vmem:[%s5722_s4 + $0x28] sm:$0xff] }
 0x21b   : > { %2635 = vst.msk [vmem:[%s5722_s4 + $0x118] sm:$0xff] %vm194_vm5, %v2587_v27 }
 0x21c   : > { %2629 = vst.msk [vmem:[%s5722_s4 + $0xe8] sm:$0xff] %vm194_vm5, %v2581_v17 }
 0x21d   : > { %v2446_v10 = vpop.f32.mrb[116].mxu0 }
 0x21e   : > { %v6906_v33 = vadd.f32 %v2446_v10, %v6807_v36  ;;  %v2448_v60 = vpop.f32.mrb[117].mxu0  ;;  %v5098_v21 = vpop.f32.mrb[116].mxu1 }
 0x21f   : > { %v6910_v40 = vadd.f32 %v2448_v60, %v6813_v5  ;;  %v2596_v9 = vadd.f32 %v5098_v21, %v2223_v63  ;;  %v2450_v35 = vpop.f32.mrb[118].mxu0  ;;  %v2537_v32 = vpop.f32.mrb[117].mxu1 }
 0x220   : > { %v6914_v46 = vadd.f32 %v2450_v35, %v6819_v58  ;;  %v2590_v36 = vadd.f32 %v2537_v32, %v2217_v28  ;;  %v2452_v22 = vpop.f32.mrb[119].mxu0  ;;  %v5099_v48 = vpop.f32.mrb[118].mxu1  ;;  %v2673_v58 = vld [vmem:[%s5722_s4 + $0x40] sm:$0xff]  ;;  %v2679_v28 = vld [vmem:[%s5722_s4 + $0x70] sm:$0xff] }
 0x221   : > { %2644 = vst.msk [vmem:[%s5722_s4 + $0x160] sm:$0xff] %vm194_vm5, %v2596_v9  ;;  %v6920_v5 = vadd.f32 %v2452_v22, %v6825_v25  ;;  %v2599_v7 = vadd.f32 %v5099_v48, %v2226_v59  ;;  %v2540_v8 = vpop.f32.mrb[119].mxu1  ;;  %v2667_v25 = vld [vmem:[%s5722_s4 + $0x10] sm:$0xff] }
 0x222   : > { %2638 = vst.msk [vmem:[%s5722_s4 + $0x130] sm:$0xff] %vm194_vm5, %v2590_v36  ;;  %v2593_v4 = vadd.f32 %v2540_v8, %v2220_v44  ;;  %v2682_v8 = vld [vmem:[%s5722_s4 + $0x88] sm:$0xff] }
 0x223   : > { %2647 = vst.msk [vmem:[%s5722_s4 + $0x178] sm:$0xff] %vm194_vm5, %v2599_v7 }
 0x224   : > { %2641 = vst.msk [vmem:[%s5722_s4 + $0x148] sm:$0xff] %vm194_vm5, %v2593_v4 }
 0x225   : > { %v5104_v13 = vpop.f32.mrb[120].mxu0 }
 0x226   : > { %v3046_v38 = vadd.f32 %v5104_v13, %v2673_v58  ;;  %v2862_v6 = vpop.f32.mrb[120].mxu1  ;;  %v2975_v52 = vpop.f32.mrb[121].mxu0 }
 0x227   : > { %v6932_v0 = vadd.f32 %v2862_v6, %v6716_v14  ;;  %v3040_v30 = vadd.f32 %v2975_v52, %v2667_v25  ;;  %v2864_v41 = vpop.f32.mrb[121].mxu1  ;;  %v5105_v23 = vpop.f32.mrb[122].mxu0 }
 0x228   : > { %3094 = vst.msk [vmem:[%s5722_s4 + $0x40] sm:$0xff] %vm194_vm5, %v3046_v38  ;;  %v6938_v62 = vadd.f32 %v2864_v41, %v6722_v49  ;;  %v3049_v27 = vadd.f32 %v5105_v23, %v2676_v39  ;;  %v2866_v43 = vpop.f32.mrb[122].mxu1  ;;  %v2978_v17 = vpop.f32.mrb[123].mxu0  ;;  %v2685_v49 = vld [vmem:[%s5722_s4 + $0xa0] sm:$0xff] }
 0x229   : > { %3088 = vst.msk [vmem:[%s5722_s4 + $0x10] sm:$0xff] %vm194_vm5, %v3040_v30  ;;  %v6944_v14 = vadd.f32 %v2866_v43, %v6728_v24  ;;  %v3043_v10 = vadd.f32 %v2978_v17, %v2670_v61  ;;  %v2868_v60 = vpop.f32.mrb[123].mxu1  ;;  %v2691_v30 = vld [vmem:[%s5722_s4 + $0xd0] sm:$0xff] }
 0x22a   : > { %3097 = vst.msk [vmem:[%s5722_s4 + $0x58] sm:$0xff] %vm194_vm5, %v3049_v27  ;;  %v6949_v63 = vadd.f32 %v2868_v60, %v6734_v16  ;;  %v2688_v16 = vld [vmem:[%s5722_s4 + $0xb8] sm:$0xff] }
 0x22b   : > { %3091 = vst.msk [vmem:[%s5722_s4 + $0x28] sm:$0xff] %vm194_vm5, %v3043_v10  ;;  %v2694_v10 = vld [vmem:[%s5722_s4 + $0xe8] sm:$0xff] }
 0x22d   : > { %v5108_v21 = vpop.f32.mrb[124].mxu0 }
 0x22e   : > { %v3058_v9 = vadd.f32 %v5108_v21, %v2685_v49  ;;  %v2872_v35 = vpop.f32.mrb[124].mxu1  ;;  %v2991_v32 = vpop.f32.mrb[125].mxu0 }
 0x22f   : > { %v6956_v24 = vadd.f32 %v2872_v35, %v6746_v29  ;;  %v3052_v36 = vadd.f32 %v2991_v32, %v2679_v28  ;;  %v2874_v22 = vpop.f32.mrb[125].mxu1  ;;  %v5109_v59 = vpop.f32.mrb[126].mxu0 }
 0x230   : > { %3106 = vst.msk [vmem:[%s5722_s4 + $0xa0] sm:$0xff] %vm194_vm5, %v3058_v9  ;;  %v6962_v48 = vadd.f32 %v2874_v22, %v6752_v34  ;;  %v3061_v7 = vadd.f32 %v5109_v59, %v2688_v16  ;;  %v2876_v44 = vpop.f32.mrb[126].mxu1  ;;  %v2994_v4 = vpop.f32.mrb[127].mxu0  ;;  %v2697_v34 = vld [vmem:[%s5722_s4 + $0x100] sm:$0xff] }
 0x231   : > { %3100 = vst.msk [vmem:[%s5722_s4 + $0x70] sm:$0xff] %vm194_vm5, %v3052_v36  ;;  %v6968_v29 = vadd.f32 %v2876_v44, %v6758_v37  ;;  %v3055_v58 = vadd.f32 %v2994_v4, %v2682_v8  ;;  %v2878_v13 = vpop.f32.mrb[127].mxu1  ;;  %v2703_v36 = vld [vmem:[%s5722_s4 + $0x130] sm:$0xff] }
 0x232   : > { %3109 = vst.msk [vmem:[%s5722_s4 + $0xb8] sm:$0xff] %vm194_vm5, %v3061_v7  ;;  %v6973_v38 = vadd.f32 %v2878_v13, %v6764_v31  ;;  %v2700_v31 = vld [vmem:[%s5722_s4 + $0x118] sm:$0xff] }
 0x233   : > { %3103 = vst.msk [vmem:[%s5722_s4 + $0x88] sm:$0xff] %vm194_vm5, %v3055_v58  ;;  %v2712_v7 = vld [vmem:[%s5722_s4 + $0x178] sm:$0xff]  ;;  %v2706_v58 = vld [vmem:[%s5722_s4 + $0x148] sm:$0xff] }
 0x235   : > { %v5112_v6 = vpop.f32.mrb[128].mxu0 }
 0x236   : > { %v3070_v25 = vadd.f32 %v5112_v6, %v2697_v34  ;;  %v2882_v52 = vpop.f32.mrb[128].mxu1  ;;  %v3007_v41 = vpop.f32.mrb[129].mxu0 }
 0x237   : > { %v6980_v37 = vadd.f32 %v2882_v52, %v6776_v50  ;;  %v3064_v39 = vadd.f32 %v3007_v41, %v2691_v30  ;;  %v2884_v23 = vpop.f32.mrb[129].mxu1  ;;  %v5113_v27 = vpop.f32.mrb[130].mxu0 }
 0x238   : > { %3118 = vst.msk [vmem:[%s5722_s4 + $0x100] sm:$0xff] %vm194_vm5, %v3070_v25  ;;  %v6986_v43 = vadd.f32 %v2884_v23, %v6782_v55  ;;  %v3073_v61 = vadd.f32 %v5113_v27, %v2700_v31  ;;  %v2886_v17 = vpop.f32.mrb[130].mxu1  ;;  %v3010_v60 = vpop.f32.mrb[131].mxu0  ;;  %v2709_v55 = vld [vmem:[%s5722_s4 + $0x160] sm:$0xff] }
 0x239   : > { %3112 = vst.msk [vmem:[%s5722_s4 + $0xd0] sm:$0xff] %vm194_vm5, %v3064_v39  ;;  %v6992_v50 = vadd.f32 %v2886_v17, %v6788_v15  ;;  %v3067_v49 = vadd.f32 %v3010_v60, %v2694_v10  ;;  %v2888_v21 = vpop.f32.mrb[131].mxu1 }
 0x23a   : > { %3121 = vst.msk [vmem:[%s5722_s4 + $0x118] sm:$0xff] %vm194_vm5, %v3073_v61  ;;  %v6997_v9 = vadd.f32 %v2888_v21, %v6794_v11 }
 0x23b   : > { %3115 = vst.msk [vmem:[%s5722_s4 + $0xe8] sm:$0xff] %vm194_vm5, %v3067_v49 }
 0x23d   : > { %v5116_v35 = vpop.f32.mrb[132].mxu0 }
 0x23e   : > { %v3082_v28 = vadd.f32 %v5116_v35, %v2709_v55  ;;  %v2892_v32 = vpop.f32.mrb[132].mxu1  ;;  %v3023_v22 = vpop.f32.mrb[133].mxu0 }
 0x23f   : > { %v7004_v15 = vadd.f32 %v2892_v32, %v6804_v45  ;;  %v3076_v16 = vadd.f32 %v3023_v22, %v2703_v36  ;;  %v2894_v59 = vpop.f32.mrb[133].mxu1  ;;  %v5117_v11 = vpop.f32.mrb[134].mxu0 }
 0x240   : > { %3130 = vst.msk [vmem:[%s5722_s4 + $0x160] sm:$0xff] %vm194_vm5, %v3082_v28  ;;  %v7010_v44 = vadd.f32 %v2894_v59, %v6810_v3  ;;  %v3085_v8 = vadd.f32 %v5117_v11, %v2712_v7  ;;  %v2896_v4 = vpop.f32.mrb[134].mxu1  ;;  %v3026_v13 = vpop.f32.mrb[135].mxu0 }
 0x241   : > { %3124 = vst.msk [vmem:[%s5722_s4 + $0x130] sm:$0xff] %vm194_vm5, %v3076_v16  ;;  %v7016_v34 = vadd.f32 %v2896_v4, %v6816_v51  ;;  %v3079_v45 = vadd.f32 %v3026_v13, %v2706_v58  ;;  %v2898_v6 = vpop.f32.mrb[135].mxu1 }
 0x242   : > { %3133 = vst.msk [vmem:[%s5722_s4 + $0x178] sm:$0xff] %vm194_vm5, %v3085_v8  ;;  %v7021_v25 = vadd.f32 %v2898_v6, %v6822_v57 }
 0x243   : > { %3127 = vst.msk [vmem:[%s5722_s4 + $0x148] sm:$0xff] %vm194_vm5, %v3079_v45 }
 0x245   : > { %v3348_v3 = vpop.f32.mrb[136].mxu0 }
 0x246   : > { %v7026_v52 = vadd.f32 %v3348_v3, %v6932_v0  ;;  %v2902_v30 = vpop.f32.mrb[136].mxu1  ;;  %v3350_v41 = vpop.f32.mrb[137].mxu0 }
 0x247   : > { %v3062_v39 = vadd.f32 %v2902_v30, %v6832_v42  ;;  %v7030_v51 = vadd.f32 %v3350_v41, %v6938_v62  ;;  %v2904_v23 = vpop.f32.mrb[137].mxu1  ;;  %v3352_v31 = vpop.f32.mrb[138].mxu0 }
 0x248   : > { %v3063_v27 = vadd.f32 %v2904_v23, %v6836_v54  ;;  %v7034_v57 = vadd.f32 %v3352_v31, %v6944_v14  ;;  %v2906_v61 = vpop.f32.mrb[138].mxu1  ;;  %v3354_v17 = vpop.f32.mrb[139].mxu0 }
 0x249   : > { %v3065_v10 = vadd.f32 %v2906_v61, %v6840_v20  ;;  %v7038_v0 = vadd.f32 %v3354_v17, %v6949_v63  ;;  %v2908_v60 = vpop.f32.mrb[139].mxu1 }
 0x24a   : > { %v7041_v42 = vadd.f32 %v2908_v60, %v6846_v18 }
 0x24d   : > { %v3358_v62 = vpop.f32.mrb[140].mxu0 }
 0x24e   : > { %v7044_v49 = vadd.f32 %v3358_v62, %v6956_v24  ;;  %v2912_v21 = vpop.f32.mrb[140].mxu1  ;;  %v3360_v54 = vpop.f32.mrb[141].mxu0 }
 0x24f   : > { %v7047_v14 = vadd.f32 %v2912_v21, %v6858_v12  ;;  %v7050_v55 = vadd.f32 %v3360_v54, %v6962_v48  ;;  %v2914_v20 = vpop.f32.mrb[141].mxu1  ;;  %v3362_v35 = vpop.f32.mrb[142].mxu0  ;;  %v3153_v21 = vld [vmem:[%s5722_s4 + $0x10] sm:$0xff] }
 0x250   : > { %v7053_v63 = vadd.f32 %v2914_v20, %v6862_v53  ;;  %v7056_v18 = vadd.f32 %v3362_v35, %v6968_v29  ;;  %v2916_v28 = vpop.f32.mrb[142].mxu1  ;;  %v3364_v32 = vpop.f32.mrb[143].mxu0 }
 0x251   : > { %v7059_v24 = vadd.f32 %v2916_v28, %v6866_v56  ;;  %v7062_v36 = vadd.f32 %v3364_v32, %v6973_v38  ;;  %v2918_v12 = vpop.f32.mrb[143].mxu1 }
 0x252   : > { %v7065_v48 = vadd.f32 %v2918_v12, %v6872_v1  ;;  %v3156_v12 = vld [vmem:[%s5722_s4 + $0x28] sm:$0xff] }
 0x255   : > { %v3368_v22 = vpop.f32.mrb[144].mxu0 }
 0x256   : > { %v7068_v16 = vadd.f32 %v3368_v22, %v6980_v37  ;;  %v2922_v53 = vpop.f32.mrb[144].mxu1  ;;  %v3370_v59 = vpop.f32.mrb[145].mxu0 }
 0x257   : > { %v7071_v29 = vadd.f32 %v2922_v53, %v6882_v47  ;;  %v7074_v7 = vadd.f32 %v3370_v59, %v6986_v43  ;;  %v2924_v56 = vpop.f32.mrb[145].mxu1  ;;  %v3372_v11 = vpop.f32.mrb[146].mxu0 }
 0x258   : > { %v7077_v38 = vadd.f32 %v2924_v56, %v6886_v2  ;;  %v7080_v1 = vadd.f32 %v3372_v11, %v6992_v50  ;;  %v2926_v8 = vpop.f32.mrb[146].mxu1  ;;  %v3374_v4 = vpop.f32.mrb[147].mxu0 }
 0x259   : > { %v7083_v37 = vadd.f32 %v2926_v8, %v6890_v19  ;;  %v7086_v58 = vadd.f32 %v3374_v4, %v6997_v9  ;;  %v2928_v47 = vpop.f32.mrb[147].mxu1 }
 0x25a   : > { %v7089_v43 = vadd.f32 %v2928_v47, %v6896_v26 }
 0x25d   : > { %v3378_v13 = vpop.f32.mrb[148].mxu0 }
 0x25e   : > { %v7092_v45 = vadd.f32 %v3378_v13, %v7004_v15  ;;  %v2932_v2 = vpop.f32.mrb[148].mxu1  ;;  %v3380_v6 = vpop.f32.mrb[149].mxu0  ;;  %v3165_v13 = vld [vmem:[%s5722_s4 + $0x70] sm:$0xff] }
 0x25f   : > { %v7095_v50 = vadd.f32 %v2932_v2, %v6906_v33  ;;  %v7098_v19 = vadd.f32 %v3380_v6, %v7010_v44  ;;  %v2934_v3 = vpop.f32.mrb[149].mxu1  ;;  %v3382_v9 = vpop.f32.mrb[150].mxu0 }
 0x260   : > { %v7101_v30 = vadd.f32 %v2934_v3, %v6910_v40  ;;  %v7104_v26 = vadd.f32 %v3382_v9, %v7016_v34  ;;  %v2936_v15 = vpop.f32.mrb[150].mxu1  ;;  %v3384_v41 = vpop.f32.mrb[151].mxu0  ;;  %v3159_v34 = vld [vmem:[%s5722_s4 + $0x40] sm:$0xff]  ;;  %v3174_v9 = vld [vmem:[%s5722_s4 + $0xb8] sm:$0xff] }
 0x261   : > { %v7107_v23 = vadd.f32 %v2936_v15, %v6914_v46  ;;  %v7110_v33 = vadd.f32 %v3384_v41, %v7021_v25  ;;  %v2938_v44 = vpop.f32.mrb[151].mxu1 }
 0x262   : > { %v7113_v31 = vadd.f32 %v2938_v44, %v6920_v5  ;;  %v3168_v44 = vld [vmem:[%s5722_s4 + $0x88] sm:$0xff] }
 0x265   : > { %v3388_v40 = vpop.f32.mrb[152].mxu0 }
 0x266   : > { %v7115_v61 = vadd.f32 %v3388_v40, %v3062_v39  ;;  %v3390_v17 = vpop.f32.mrb[153].mxu0  ;;  %v5122_v60 = vpop.f32.mrb[152].mxu1  ;;  %v3162_v39 = vld [vmem:[%s5722_s4 + $0x58] sm:$0xff] }
 0x267   : > { %v7118_v62 = vadd.f32 %v3390_v17, %v3063_v27  ;;  %v3532_v46 = vadd.f32 %v5122_v60, %v3159_v34  ;;  %v3392_v25 = vpop.f32.mrb[154].mxu0  ;;  %v3461_v54 = vpop.f32.mrb[153].mxu1 }
 0x268   : > { %v7121_v20 = vadd.f32 %v3392_v25, %v3065_v10  ;;  %v3526_v5 = vadd.f32 %v3461_v54, %v3153_v21  ;;  %v3394_v35 = vpop.f32.mrb[155].mxu0  ;;  %v5123_v28 = vpop.f32.mrb[154].mxu1 }
 0x269   : > { %3580 = vst.msk [vmem:[%s5722_s4 + $0x40] sm:$0xff] %vm194_vm5, %v3532_v46  ;;  %v7127_v32 = vadd.f32 %v3394_v35, %v7041_v42  ;;  %v3535_v27 = vadd.f32 %v5123_v28, %v3162_v39  ;;  %v3464_v22 = vpop.f32.mrb[155].mxu1  ;;  %v3171_v42 = vld [vmem:[%s5722_s4 + $0xa0] sm:$0xff] }
 0x26a   : > { %3574 = vst.msk [vmem:[%s5722_s4 + $0x10] sm:$0xff] %vm194_vm5, %v3526_v5  ;;  %v3529_v53 = vadd.f32 %v3464_v22, %v3156_v12  ;;  %v3177_v5 = vld [vmem:[%s5722_s4 + $0xd0] sm:$0xff] }
 0x26b   : > { %3583 = vst.msk [vmem:[%s5722_s4 + $0x58] sm:$0xff] %vm194_vm5, %v3535_v27  ;;  %v3186_v27 = vld [vmem:[%s5722_s4 + $0x118] sm:$0xff] }
 0x26c   : > { %3577 = vst.msk [vmem:[%s5722_s4 + $0x28] sm:$0xff] %vm194_vm5, %v3529_v53  ;;  %v3180_v53 = vld [vmem:[%s5722_s4 + $0xe8] sm:$0xff] }
 0x26d   : > { %v3398_v10 = vpop.f32.mrb[156].mxu0 }
 0x26e   : > { %v7137_v59 = vadd.f32 %v3398_v10, %v7047_v14  ;;  %v3400_v56 = vpop.f32.mrb[157].mxu0  ;;  %v5126_v11 = vpop.f32.mrb[156].mxu1 }
 0x26f   : > { %v7141_v8 = vadd.f32 %v3400_v56, %v7053_v63  ;;  %v3544_v4 = vadd.f32 %v5126_v11, %v3171_v42  ;;  %v3402_v47 = vpop.f32.mrb[158].mxu0  ;;  %v3477_v2 = vpop.f32.mrb[157].mxu1 }
 0x270   : > { %v7145_v6 = vadd.f32 %v3402_v47, %v7059_v24  ;;  %v3538_v3 = vadd.f32 %v3477_v2, %v3165_v13  ;;  %v3404_v14 = vpop.f32.mrb[159].mxu0  ;;  %v5127_v15 = vpop.f32.mrb[158].mxu1 }
 0x271   : > { %3592 = vst.msk [vmem:[%s5722_s4 + $0xa0] sm:$0xff] %vm194_vm5, %v3544_v4  ;;  %v7151_v41 = vadd.f32 %v3404_v14, %v7065_v48  ;;  %v3547_v63 = vadd.f32 %v5127_v15, %v3174_v9  ;;  %v3480_v40 = vpop.f32.mrb[159].mxu1  ;;  %v3183_v48 = vld [vmem:[%s5722_s4 + $0x100] sm:$0xff] }
 0x272   : > { %3586 = vst.msk [vmem:[%s5722_s4 + $0x70] sm:$0xff] %vm194_vm5, %v3538_v3  ;;  %v3541_v17 = vadd.f32 %v3480_v40, %v3168_v44  ;;  %v3189_v3 = vld [vmem:[%s5722_s4 + $0x130] sm:$0xff] }
 0x273   : > { %3595 = vst.msk [vmem:[%s5722_s4 + $0xb8] sm:$0xff] %vm194_vm5, %v3547_v63  ;;  %v3198_v63 = vld [vmem:[%s5722_s4 + $0x178] sm:$0xff] }
 0x274   : > { %3589 = vst.msk [vmem:[%s5722_s4 + $0x88] sm:$0xff] %vm194_vm5, %v3541_v17  ;;  %v3192_v17 = vld [vmem:[%s5722_s4 + $0x148] sm:$0xff] }
 0x275   : > { %v3408_v24 = vpop.f32.mrb[160].mxu0 }
 0x276   : > { %v7161_v34 = vadd.f32 %v3408_v24, %v7071_v29  ;;  %v3410_v60 = vpop.f32.mrb[161].mxu0  ;;  %v5130_v46 = vpop.f32.mrb[160].mxu1 }
 0x277   : > { %v7165_v25 = vadd.f32 %v3410_v60, %v7077_v38  ;;  %v3556_v21 = vadd.f32 %v5130_v46, %v3183_v48  ;;  %v3412_v54 = vpop.f32.mrb[162].mxu0  ;;  %v3493_v35 = vpop.f32.mrb[161].mxu1 }
 0x278   : > { %v7169_v39 = vadd.f32 %v3412_v54, %v7083_v37  ;;  %v3550_v28 = vadd.f32 %v3493_v35, %v3177_v5  ;;  %v3414_v29 = vpop.f32.mrb[163].mxu0  ;;  %v5131_v12 = vpop.f32.mrb[162].mxu1 }
 0x279   : > { %3604 = vst.msk [vmem:[%s5722_s4 + $0x100] sm:$0xff] %vm194_vm5, %v3556_v21  ;;  %v7175_v22 = vadd.f32 %v3414_v29, %v7089_v43  ;;  %v3559_v38 = vadd.f32 %v5131_v12, %v3186_v27  ;;  %v3496_v10 = vpop.f32.mrb[163].mxu1  ;;  %v3195_v43 = vld [vmem:[%s5722_s4 + $0x160] sm:$0xff]  ;;  %v3648_v29 = vld [vmem:[%s5722_s4 + $0x58] sm:$0xff] }
 0x27a   : > { %3598 = vst.msk [vmem:[%s5722_s4 + $0xd0] sm:$0xff] %vm194_vm5, %v3550_v28  ;;  %v3553_v56 = vadd.f32 %v3496_v10, %v3180_v53  ;;  %v3642_v10 = vld [vmem:[%s5722_s4 + $0x28] sm:$0xff] }
 0x27b   : > { %3607 = vst.msk [vmem:[%s5722_s4 + $0x118] sm:$0xff] %vm194_vm5, %v3559_v38 }
 0x27c   : > { %3601 = vst.msk [vmem:[%s5722_s4 + $0xe8] sm:$0xff] %vm194_vm5, %v3553_v56 }
 0x27d   : > { %v3418_v37 = vpop.f32.mrb[164].mxu0 }
 0x27e   : > { %v7185_v42 = vadd.f32 %v3418_v37, %v7095_v50  ;;  %v3420_v11 = vpop.f32.mrb[165].mxu0  ;;  %v5134_v4 = vpop.f32.mrb[164].mxu1 }
 0x27f   : > { %v7189_v47 = vadd.f32 %v3420_v11, %v7101_v30  ;;  %v3568_v13 = vadd.f32 %v5134_v4, %v3195_v43  ;;  %v3422_v2 = vpop.f32.mrb[166].mxu0  ;;  %v3509_v14 = vpop.f32.mrb[165].mxu1 }
 0x280   : > { %v7193_v9 = vadd.f32 %v3422_v2, %v7107_v23  ;;  %v3562_v50 = vadd.f32 %v3509_v14, %v3189_v3  ;;  %v3424_v15 = vpop.f32.mrb[167].mxu0  ;;  %v5135_v44 = vpop.f32.mrb[166].mxu1  ;;  %v3645_v23 = vld [vmem:[%s5722_s4 + $0x40] sm:$0xff]  ;;  %v3651_v3 = vld [vmem:[%s5722_s4 + $0x70] sm:$0xff] }
 0x281   : > { %3616 = vst.msk [vmem:[%s5722_s4 + $0x160] sm:$0xff] %vm194_vm5, %v3568_v13  ;;  %v7199_v30 = vadd.f32 %v3424_v15, %v7113_v31  ;;  %v3571_v40 = vadd.f32 %v5135_v44, %v3198_v63  ;;  %v3512_v24 = vpop.f32.mrb[167].mxu1  ;;  %v3639_v31 = vld [vmem:[%s5722_s4 + $0x10] sm:$0xff] }
 0x282   : > { %3610 = vst.msk [vmem:[%s5722_s4 + $0x130] sm:$0xff] %vm194_vm5, %v3562_v50  ;;  %v3565_v60 = vadd.f32 %v3512_v24, %v3192_v17  ;;  %v3654_v24 = vld [vmem:[%s5722_s4 + $0x88] sm:$0xff] }
 0x283   : > { %3619 = vst.msk [vmem:[%s5722_s4 + $0x178] sm:$0xff] %vm194_vm5, %v3571_v40 }
 0x284   : > { %3613 = vst.msk [vmem:[%s5722_s4 + $0x148] sm:$0xff] %vm194_vm5, %v3565_v60 }
 0x285   : > { %v5140_v48 = vpop.f32.mrb[168].mxu0 }
 0x286   : > { %v4018_v46 = vadd.f32 %v5140_v48, %v3645_v23  ;;  %v3834_v21 = vpop.f32.mrb[168].mxu1  ;;  %v3947_v54 = vpop.f32.mrb[169].mxu0 }
 0x287   : > { %v7211_v5 = vadd.f32 %v3834_v21, %v7026_v52  ;;  %v4012_v35 = vadd.f32 %v3947_v54, %v3639_v31  ;;  %v3836_v28 = vpop.f32.mrb[169].mxu1  ;;  %v5141_v27 = vpop.f32.mrb[170].mxu0 }
 0x288   : > { %4066 = vst.msk [vmem:[%s5722_s4 + $0x40] sm:$0xff] %vm194_vm5, %v4018_v46  ;;  %v7217_v12 = vadd.f32 %v3836_v28, %v7030_v51  ;;  %v4021_v38 = vadd.f32 %v5141_v27, %v3648_v29  ;;  %v3838_v53 = vpop.f32.mrb[170].mxu1  ;;  %v3950_v56 = vpop.f32.mrb[171].mxu0  ;;  %v3657_v51 = vld [vmem:[%s5722_s4 + $0xa0] sm:$0xff] }
 0x289   : > { %4060 = vst.msk [vmem:[%s5722_s4 + $0x10] sm:$0xff] %vm194_vm5, %v4012_v35  ;;  %v7223_v52 = vadd.f32 %v3838_v53, %v7034_v57  ;;  %v4015_v37 = vadd.f32 %v3950_v56, %v3642_v10  ;;  %v3840_v11 = vpop.f32.mrb[171].mxu1  ;;  %v3663_v35 = vld [vmem:[%s5722_s4 + $0xd0] sm:$0xff] }
 0x28a   : > { %4069 = vst.msk [vmem:[%s5722_s4 + $0x58] sm:$0xff] %vm194_vm5, %v4021_v38  ;;  %v7228_v43 = vadd.f32 %v3840_v11, %v7038_v0  ;;  %v3660_v0 = vld [vmem:[%s5722_s4 + $0xb8] sm:$0xff] }
 0x28b   : > { %4063 = vst.msk [vmem:[%s5722_s4 + $0x28] sm:$0xff] %vm194_vm5, %v4015_v37  ;;  %v3666_v37 = vld [vmem:[%s5722_s4 + $0xe8] sm:$0xff] }
 0x28d   : > { %v5144_v4 = vpop.f32.mrb[172].mxu0 }
 0x28e   : > { %v4030_v13 = vadd.f32 %v5144_v4, %v3657_v51  ;;  %v3844_v2 = vpop.f32.mrb[172].mxu1  ;;  %v3963_v14 = vpop.f32.mrb[173].mxu0 }
 0x28f   : > { %v7235_v57 = vadd.f32 %v3844_v2, %v7044_v49  ;;  %v4024_v50 = vadd.f32 %v3963_v14, %v3651_v3  ;;  %v3846_v15 = vpop.f32.mrb[173].mxu1  ;;  %v5145_v63 = vpop.f32.mrb[174].mxu0 }
 0x290   : > { %4078 = vst.msk [vmem:[%s5722_s4 + $0xa0] sm:$0xff] %vm194_vm5, %v4030_v13  ;;  %v7241_v44 = vadd.f32 %v3846_v15, %v7050_v55  ;;  %v4033_v40 = vadd.f32 %v5145_v63, %v3660_v0  ;;  %v3848_v17 = vpop.f32.mrb[174].mxu1  ;;  %v3966_v60 = vpop.f32.mrb[175].mxu0  ;;  %v3669_v55 = vld [vmem:[%s5722_s4 + $0x100] sm:$0xff] }
 0x291   : > { %4072 = vst.msk [vmem:[%s5722_s4 + $0x70] sm:$0xff] %vm194_vm5, %v4024_v50  ;;  %v7247_v49 = vadd.f32 %v3848_v17, %v7056_v18  ;;  %v4027_v23 = vadd.f32 %v3966_v60, %v3654_v24  ;;  %v3850_v48 = vpop.f32.mrb[175].mxu1  ;;  %v3675_v50 = vld [vmem:[%s5722_s4 + $0x130] sm:$0xff] }
 0x292   : > { %4081 = vst.msk [vmem:[%s5722_s4 + $0xb8] sm:$0xff] %vm194_vm5, %v4033_v40  ;;  %v7252_v46 = vadd.f32 %v3850_v48, %v7062_v36  ;;  %v3672_v36 = vld [vmem:[%s5722_s4 + $0x118] sm:$0xff] }
 0x293   : > { %4075 = vst.msk [vmem:[%s5722_s4 + $0x88] sm:$0xff] %vm194_vm5, %v4027_v23  ;;  %v3684_v40 = vld [vmem:[%s5722_s4 + $0x178] sm:$0xff]  ;;  %v3678_v23 = vld [vmem:[%s5722_s4 + $0x148] sm:$0xff] }
 0x295   : > { %v5148_v21 = vpop.f32.mrb[176].mxu0 }
 0x296   : > { %v4042_v31 = vadd.f32 %v5148_v21, %v3669_v55  ;;  %v3854_v54 = vpop.f32.mrb[176].mxu1  ;;  %v3979_v28 = vpop.f32.mrb[177].mxu0 }
 0x297   : > { %v7259_v18 = vadd.f32 %v3854_v54, %v7068_v16  ;;  %v4036_v29 = vadd.f32 %v3979_v28, %v3663_v35  ;;  %v3856_v27 = vpop.f32.mrb[177].mxu1  ;;  %v5149_v38 = vpop.f32.mrb[178].mxu0 }
 0x298   : > { %4090 = vst.msk [vmem:[%s5722_s4 + $0x100] sm:$0xff] %vm194_vm5, %v4042_v31  ;;  %v7265_v53 = vadd.f32 %v3856_v27, %v7074_v7  ;;  %v4045_v10 = vadd.f32 %v5149_v38, %v3672_v36  ;;  %v3858_v56 = vpop.f32.mrb[178].mxu1  ;;  %v3982_v11 = vpop.f32.mrb[179].mxu0  ;;  %v3681_v7 = vld [vmem:[%s5722_s4 + $0x160] sm:$0xff] }
 0x299   : > { %4084 = vst.msk [vmem:[%s5722_s4 + $0xd0] sm:$0xff] %vm194_vm5, %v4036_v29  ;;  %v7271_v16 = vadd.f32 %v3858_v56, %v7080_v1  ;;  %v4039_v51 = vadd.f32 %v3982_v11, %v3666_v37  ;;  %v3860_v4 = vpop.f32.mrb[179].mxu1 }
 0x29a   : > { %4093 = vst.msk [vmem:[%s5722_s4 + $0x118] sm:$0xff] %vm194_vm5, %v4045_v10  ;;  %v7276_v13 = vadd.f32 %v3860_v4, %v7086_v58 }
 0x29b   : > { %4087 = vst.msk [vmem:[%s5722_s4 + $0xe8] sm:$0xff] %vm194_vm5, %v4039_v51 }
 0x29d   : > { %v5152_v2 = vpop.f32.mrb[180].mxu0 }
 0x29e   : > { %v4054_v3 = vadd.f32 %v5152_v2, %v3681_v7  ;;  %v3864_v14 = vpop.f32.mrb[180].mxu1  ;;  %v3995_v15 = vpop.f32.mrb[181].mxu0 }
 0x29f   : > { %v7283_v1 = vadd.f32 %v3864_v14, %v7092_v45  ;;  %v4048_v0 = vadd.f32 %v3995_v15, %v3675_v50  ;;  %v3866_v63 = vpop.f32.mrb[181].mxu1  ;;  %v5153_v58 = vpop.f32.mrb[182].mxu0 }
 0x2a0   : > { %4102 = vst.msk [vmem:[%s5722_s4 + $0x160] sm:$0xff] %vm194_vm5, %v4054_v3  ;;  %v7289_v17 = vadd.f32 %v3866_v63, %v7098_v19  ;;  %v4057_v24 = vadd.f32 %v5153_v58, %v3684_v40  ;;  %v3868_v60 = vpop.f32.mrb[182].mxu1  ;;  %v3998_v48 = vpop.f32.mrb[183].mxu0 }
 0x2a1   : > { %4096 = vst.msk [vmem:[%s5722_s4 + $0x130] sm:$0xff] %vm194_vm5, %v4048_v0  ;;  %v7295_v45 = vadd.f32 %v3868_v60, %v7104_v26  ;;  %v4051_v55 = vadd.f32 %v3998_v48, %v3678_v23  ;;  %v3870_v21 = vpop.f32.mrb[183].mxu1 }
 0x2a2   : > { %4105 = vst.msk [vmem:[%s5722_s4 + $0x178] sm:$0xff] %vm194_vm5, %v4057_v24  ;;  %v7300_v31 = vadd.f32 %v3870_v21, %v7110_v33 }
 0x2a3   : > { %4099 = vst.msk [vmem:[%s5722_s4 + $0x148] sm:$0xff] %vm194_vm5, %v4051_v55 }
 0x2a5   : > { %v4320_v19 = vpop.f32.mrb[184].mxu0 }
 0x2a6   : > { %v4496_v54 = vadd.f32 %v4320_v19, %v7211_v5  ;;  %v3874_v35 = vpop.f32.mrb[184].mxu1  ;;  %v4322_v28 = vpop.f32.mrb[185].mxu0 }
 0x2a7   : > { %v7306_v26 = vadd.f32 %v3874_v35, %v7115_v61  ;;  %v4497_v29 = vadd.f32 %v4322_v28, %v7217_v12  ;;  %v3876_v27 = vpop.f32.mrb[185].mxu1  ;;  %v4324_v36 = vpop.f32.mrb[186].mxu0 }
 0x2a8   : > { %4544 = vst [vmem:[%s5722_s4] sm:$0xff] %v4496_v54  ;;  %v7311_v33 = vadd.f32 %v3876_v27, %v7118_v62  ;;  %v4499_v38 = vadd.f32 %v4324_v36, %v7223_v52  ;;  %v3878_v10 = vpop.f32.mrb[186].mxu1  ;;  %v4326_v56 = vpop.f32.mrb[187].mxu0  ;;  %v4131_v36 = vld [vmem:[%s5722_s4 + $0x40] sm:$0xff] }
 0x2a9   : > { %4545 = vst [vmem:[%s5722_s4 + $0x8] sm:$0xff] %v4497_v29  ;;  %v7316_v5 = vadd.f32 %v3878_v10, %v7121_v20  ;;  %v4500_v61 = vadd.f32 %v4326_v56, %v7228_v43  ;;  %v3880_v37 = vpop.f32.mrb[187].mxu1  ;;  %v4125_v56 = vld [vmem:[%s5722_s4 + $0x10] sm:$0xff] }
 0x2aa   : > { %4547 = vst [vmem:[%s5722_s4 + $0x18] sm:$0xff] %v4499_v38  ;;  %v7321_v12 = vadd.f32 %v3880_v37, %v7127_v32 }
 0x2ab   : > { %4548 = vst [vmem:[%s5722_s4 + $0x20] sm:$0xff] %v4500_v61 }
 0x2ad   : > { %v4330_v62 = vpop.f32.mrb[188].mxu0 }
 0x2ae   : > { %v4502_v11 = vadd.f32 %v4330_v62, %v7235_v57  ;;  %v3884_v52 = vpop.f32.mrb[188].mxu1  ;;  %v4332_v51 = vpop.f32.mrb[189].mxu0  ;;  %v4134_v62 = vld [vmem:[%s5722_s4 + $0x58] sm:$0xff] }
 0x2af   : > { %v7326_v4 = vadd.f32 %v3884_v52, %v7137_v59  ;;  %v4503_v20 = vadd.f32 %v4332_v51, %v7241_v44  ;;  %v3886_v43 = vpop.f32.mrb[189].mxu1  ;;  %v4334_v7 = vpop.f32.mrb[190].mxu0  ;;  %v4128_v51 = vld [vmem:[%s5722_s4 + $0x28] sm:$0xff] }
 0x2b0   : > { %4550 = vst [vmem:[%s5722_s4 + $0x30] sm:$0xff] %v4502_v11  ;;  %v7331_v2 = vadd.f32 %v3886_v43, %v7141_v8  ;;  %v4505_v32 = vadd.f32 %v4334_v7, %v7247_v49  ;;  %v3888_v3 = vpop.f32.mrb[190].mxu1  ;;  %v4336_v14 = vpop.f32.mrb[191].mxu0 }
 0x2b1   : > { %4551 = vst [vmem:[%s5722_s4 + $0x38] sm:$0xff] %v4503_v20  ;;  %v7336_v57 = vadd.f32 %v3888_v3, %v7145_v6  ;;  %v4506_v59 = vadd.f32 %v4336_v14, %v7252_v46  ;;  %v3890_v50 = vpop.f32.mrb[191].mxu1 }
 0x2b2   : > { %4553 = vst [vmem:[%s5722_s4 + $0x48] sm:$0xff] %v4505_v32  ;;  %v7341_v44 = vadd.f32 %v3890_v50, %v7151_v41  ;;  %v4143_v32 = vld [vmem:[%s5722_s4 + $0xa0] sm:$0xff] }
 0x2b3   : > { %4554 = vst [vmem:[%s5722_s4 + $0x50] sm:$0xff] %v4506_v59 }
 0x2b5   : > { %v4340_v8 = vpop.f32.mrb[192].mxu0 }
 0x2b6   : > { %v4508_v15 = vadd.f32 %v4340_v8, %v7259_v18  ;;  %v3894_v49 = vpop.f32.mrb[192].mxu1  ;;  %v4342_v0 = vpop.f32.mrb[193].mxu0  ;;  %v4137_v8 = vld [vmem:[%s5722_s4 + $0x70] sm:$0xff] }
 0x2b7   : > { %v7346_v63 = vadd.f32 %v3894_v49, %v7161_v34  ;;  %v4509_v6 = vadd.f32 %v4342_v0, %v7265_v53  ;;  %v3896_v46 = vpop.f32.mrb[193].mxu1  ;;  %v4344_v40 = vpop.f32.mrb[194].mxu0 }
 0x2b8   : > { %4556 = vst [vmem:[%s5722_s4 + $0x60] sm:$0xff] %v4508_v15  ;;  %v7351_v58 = vadd.f32 %v3896_v46, %v7165_v25  ;;  %v4511_v41 = vadd.f32 %v4344_v40, %v7271_v16  ;;  %v3898_v24 = vpop.f32.mrb[194].mxu1  ;;  %v4346_v60 = vpop.f32.mrb[195].mxu0 }
 0x2b9   : > { %4557 = vst [vmem:[%s5722_s4 + $0x68] sm:$0xff] %v4509_v6  ;;  %v7356_v18 = vadd.f32 %v3898_v24, %v7169_v39  ;;  %v4512_v34 = vadd.f32 %v4346_v60, %v7276_v13  ;;  %v3900_v23 = vpop.f32.mrb[195].mxu1  ;;  %v4146_v6 = vld [vmem:[%s5722_s4 + $0xb8] sm:$0xff] }
 0x2ba   : > { %4559 = vst [vmem:[%s5722_s4 + $0x78] sm:$0xff] %v4511_v41  ;;  %v7361_v53 = vadd.f32 %v3900_v23, %v7175_v22  ;;  %v4140_v41 = vld [vmem:[%s5722_s4 + $0x88] sm:$0xff]  ;;  %v4155_v23 = vld [vmem:[%s5722_s4 + $0x100] sm:$0xff] }
 0x2bb   : > { %4560 = vst [vmem:[%s5722_s4 + $0x80] sm:$0xff] %v4512_v34 }
 0x2bd   : > { %v4350_v25 = vpop.f32.mrb[196].mxu0 }
 0x2be   : > { %v4514_v48 = vadd.f32 %v4350_v25, %v7283_v1  ;;  %v3904_v16 = vpop.f32.mrb[196].mxu1  ;;  %v4352_v55 = vpop.f32.mrb[197].mxu0 }
 0x2bf   : > { %v7366_v21 = vadd.f32 %v3904_v16, %v7185_v42  ;;  %v4515_v39 = vadd.f32 %v4352_v55, %v7289_v17  ;;  %v3906_v13 = vpop.f32.mrb[197].mxu1  ;;  %v4354_v19 = vpop.f32.mrb[198].mxu0 }
 0x2c0   : > { %4562 = vst [vmem:[%s5722_s4 + $0x90] sm:$0xff] %v4514_v48  ;;  %v7371_v22 = vadd.f32 %v3906_v13, %v7189_v47  ;;  %v4517_v54 = vadd.f32 %v4354_v19, %v7295_v45  ;;  %v3908_v35 = vpop.f32.mrb[198].mxu1  ;;  %v4356_v1 = vpop.f32.mrb[199].mxu0 }
 0x2c1   : > { %4563 = vst [vmem:[%s5722_s4 + $0x98] sm:$0xff] %v4515_v39  ;;  %v7376_v28 = vadd.f32 %v3908_v35, %v7193_v9  ;;  %v4518_v42 = vadd.f32 %v4356_v1, %v7300_v31  ;;  %v3910_v17 = vpop.f32.mrb[199].mxu1  ;;  %v4149_v39 = vld [vmem:[%s5722_s4 + $0xd0] sm:$0xff]  ;;  %v4158_v35 = vld [vmem:[%s5722_s4 + $0x118] sm:$0xff] }
 0x2c2   : > { %4565 = vst [vmem:[%s5722_s4 + $0xa8] sm:$0xff] %v4517_v54  ;;  %v7381_v29 = vadd.f32 %v3910_v17, %v7199_v30  ;;  %v4152_v17 = vld [vmem:[%s5722_s4 + $0xe8] sm:$0xff] }
 0x2c3   : > { %4566 = vst [vmem:[%s5722_s4 + $0xb0] sm:$0xff] %v4518_v42 }
 0x2c5   : > { %v4360_v47 = vpop.f32.mrb[200].mxu0 }
 0x2c6   : > { %v4520_v45 = vadd.f32 %v4360_v47, %v7306_v26  ;;  %v4362_v27 = vpop.f32.mrb[201].mxu0  ;;  %v5158_v38 = vpop.f32.mrb[200].mxu1 }
 0x2c7   : > { %v4521_v9 = vadd.f32 %v4362_v27, %v7311_v33  ;;  %v4504_v10 = vadd.f32 %v5158_v38, %v4131_v36  ;;  %v4364_v31 = vpop.f32.mrb[202].mxu0  ;;  %v4433_v30 = vpop.f32.mrb[201].mxu1  ;;  %v4167_v36 = vld [vmem:[%s5722_s4 + $0x160] sm:$0xff] }
 0x2c8   : > { %4568 = vst [vmem:[%s5722_s4 + $0xc0] sm:$0xff] %v4520_v45  ;;  %v4523_v61 = vadd.f32 %v4364_v31, %v7316_v5  ;;  %v4498_v26 = vadd.f32 %v4433_v30, %v4125_v56  ;;  %v4366_v37 = vpop.f32.mrb[203].mxu0  ;;  %v5159_v11 = vpop.f32.mrb[202].mxu1  ;;  %v4161_v56 = vld [vmem:[%s5722_s4 + $0x130] sm:$0xff] }
 0x2c9   : > { %4569 = vst [vmem:[%s5722_s4 + $0xc8] sm:$0xff] %v4521_v9  ;;  %4552 = vst.msk [vmem:[%s5722_s4 + $0x40] sm:$0xff] %vm194_vm5, %v4504_v10  ;;  %v4524_v33 = vadd.f32 %v4366_v37, %v7321_v12  ;;  %v4507_v52 = vadd.f32 %v5159_v11, %v4134_v62  ;;  %v4436_v20 = vpop.f32.mrb[203].mxu1  ;;  %v4170_v37 = vld [vmem:[%s5722_s4 + $0x178] sm:$0xff] }
 0x2ca   : > { %4571 = vst [vmem:[%s5722_s4 + $0xd8] sm:$0xff] %v4523_v61  ;;  %4546 = vst.msk [vmem:[%s5722_s4 + $0x10] sm:$0xff] %vm194_vm5, %v4498_v26  ;;  %v4501_v5 = vadd.f32 %v4436_v20, %v4128_v51 }
 0x2cb   : > { %4572 = vst [vmem:[%s5722_s4 + $0xe0] sm:$0xff] %v4524_v33  ;;  %4555 = vst.msk [vmem:[%s5722_s4 + $0x58] sm:$0xff] %vm194_vm5, %v4507_v52  ;;  %v4164_v33 = vld [vmem:[%s5722_s4 + $0x148] sm:$0xff] }
 0x2cc   : > { %4549 = vst.msk [vmem:[%s5722_s4 + $0x28] sm:$0xff] %vm194_vm5, %v4501_v5 }
 0x2cd   : > { %v4370_v43 = vpop.f32.mrb[204].mxu0 }
 0x2ce   : > { %v4526_v7 = vadd.f32 %v4370_v43, %v7326_v4  ;;  %v4372_v12 = vpop.f32.mrb[205].mxu0  ;;  %v5162_v3 = vpop.f32.mrb[204].mxu1 }
 0x2cf   : > { %v4527_v14 = vadd.f32 %v4372_v12, %v7331_v2  ;;  %v4516_v59 = vadd.f32 %v5162_v3, %v4143_v32  ;;  %v4374_v50 = vpop.f32.mrb[206].mxu0  ;;  %v4449_v15 = vpop.f32.mrb[205].mxu1 }
 0x2d0   : > { %4574 = vst [vmem:[%s5722_s4 + $0xf0] sm:$0xff] %v4526_v7  ;;  %v4529_v49 = vadd.f32 %v4374_v50, %v7336_v57  ;;  %v4510_v4 = vadd.f32 %v4449_v15, %v4137_v8  ;;  %v4376_v0 = vpop.f32.mrb[207].mxu0  ;;  %v5163_v46 = vpop.f32.mrb[206].mxu1 }
 0x2d1   : > { %4575 = vst [vmem:[%s5722_s4 + $0xf8] sm:$0xff] %v4527_v14  ;;  %4564 = vst.msk [vmem:[%s5722_s4 + $0xa0] sm:$0xff] %vm194_vm5, %v4516_v59  ;;  %v4530_v2 = vadd.f32 %v4376_v0, %v7341_v44  ;;  %v4519_v40 = vadd.f32 %v5163_v46, %v4146_v6  ;;  %v4452_v24 = vpop.f32.mrb[207].mxu1 }
 0x2d2   : > { %4577 = vst [vmem:[%s5722_s4 + $0x108] sm:$0xff] %v4529_v49  ;;  %4558 = vst.msk [vmem:[%s5722_s4 + $0x70] sm:$0xff] %vm194_vm5, %v4510_v4  ;;  %v4513_v57 = vadd.f32 %v4452_v24, %v4140_v41 }
 0x2d3   : > { %4578 = vst [vmem:[%s5722_s4 + $0x110] sm:$0xff] %v4530_v2  ;;  %4567 = vst.msk [vmem:[%s5722_s4 + $0xb8] sm:$0xff] %vm194_vm5, %v4519_v40 }
 0x2d4   : > { %4561 = vst.msk [vmem:[%s5722_s4 + $0x88] sm:$0xff] %vm194_vm5, %v4513_v57 }
 0x2d5   : > { %v4380_v60 = vpop.f32.mrb[208].mxu0 }
 0x2d6   : > { %v4532_v34 = vadd.f32 %v4380_v60, %v7346_v63  ;;  %v4382_v44 = vpop.f32.mrb[209].mxu0  ;;  %v5166_v25 = vpop.f32.mrb[208].mxu1 }
 0x2d7   : > { %v4533_v48 = vadd.f32 %v4382_v44, %v7351_v58  ;;  %v4528_v16 = vadd.f32 %v5166_v25, %v4155_v23  ;;  %v4384_v55 = vpop.f32.mrb[210].mxu0  ;;  %v4465_v13 = vpop.f32.mrb[209].mxu1 }
 0x2d8   : > { %4580 = vst [vmem:[%s5722_s4 + $0x120] sm:$0xff] %v4532_v34  ;;  %v4535_v19 = vadd.f32 %v4384_v55, %v7356_v18  ;;  %v4522_v63 = vadd.f32 %v4465_v13, %v4149_v39  ;;  %v4386_v54 = vpop.f32.mrb[211].mxu0  ;;  %v5167_v1 = vpop.f32.mrb[210].mxu1 }
 0x2d9   : > { %4581 = vst [vmem:[%s5722_s4 + $0x128] sm:$0xff] %v4533_v48  ;;  %4576 = vst.msk [vmem:[%s5722_s4 + $0x100] sm:$0xff] %vm194_vm5, %v4528_v16  ;;  %v4536_v58 = vadd.f32 %v4386_v54, %v7361_v53  ;;  %v4531_v42 = vadd.f32 %v5167_v1, %v4158_v35  ;;  %v4468_v47 = vpop.f32.mrb[211].mxu1 }
 0x2da   : > { %4583 = vst [vmem:[%s5722_s4 + $0x138] sm:$0xff] %v4535_v19  ;;  %4570 = vst.msk [vmem:[%s5722_s4 + $0xd0] sm:$0xff] %vm194_vm5, %v4522_v63  ;;  %v4525_v18 = vadd.f32 %v4468_v47, %v4152_v17 }
 0x2db   : > { %4584 = vst [vmem:[%s5722_s4 + $0x140] sm:$0xff] %v4536_v58  ;;  %4579 = vst.msk [vmem:[%s5722_s4 + $0x118] sm:$0xff] %vm194_vm5, %v4531_v42 }
 0x2dc   : > { %4573 = vst.msk [vmem:[%s5722_s4 + $0xe8] sm:$0xff] %vm194_vm5, %v4525_v18 }
 0x2dd   : > { %v4390_v45 = vpop.f32.mrb[212].mxu0 }
 0x2de   : > { %v4538_v27 = vadd.f32 %v4390_v45, %v7366_v21  ;;  %v4392_v53 = vpop.f32.mrb[213].mxu0  ;;  %v5170_v38 = vpop.f32.mrb[212].mxu1 }
 0x2df   : > { %v4539_v9 = vadd.f32 %v4392_v53, %v7371_v22  ;;  %v4540_v10 = vadd.f32 %v5170_v38, %v4167_v36  ;;  %v4394_v31 = vpop.f32.mrb[214].mxu0  ;;  %v4481_v30 = vpop.f32.mrb[213].mxu1 }
 0x2e0   : > { %4586 = vst [vmem:[%s5722_s4 + $0x150] sm:$0xff] %v4538_v27  ;;  %v4541_v61 = vadd.f32 %v4394_v31, %v7376_v28  ;;  %v4534_v21 = vadd.f32 %v4481_v30, %v4161_v56  ;;  %v4396_v26 = vpop.f32.mrb[215].mxu0  ;;  %v5171_v62 = vpop.f32.mrb[214].mxu1 }
 0x2e1   : > { %4587 = vst [vmem:[%s5722_s4 + $0x158] sm:$0xff] %v4539_v9  ;;  %4588 = vst.msk [vmem:[%s5722_s4 + $0x160] sm:$0xff] %vm194_vm5, %v4540_v10  ;;  %v4542_v22 = vadd.f32 %v4396_v26, %v7381_v29  ;;  %v4543_v11 = vadd.f32 %v5171_v62, %v4170_v37  ;;  %v4484_v52 = vpop.f32.mrb[215].mxu1 }
 0x2e2   : > { %4589 = vst [vmem:[%s5722_s4 + $0x168] sm:$0xff] %v4541_v61  ;;  %4582 = vst.msk [vmem:[%s5722_s4 + $0x130] sm:$0xff] %vm194_vm5, %v4534_v21  ;;  %v4537_v51 = vadd.f32 %v4484_v52, %v4164_v33 }
 0x2e3   : > { %4590 = vst [vmem:[%s5722_s4 + $0x170] sm:$0xff] %v4542_v22  ;;  %4591 = vst.msk [vmem:[%s5722_s4 + $0x178] sm:$0xff] %vm194_vm5, %v4543_v11 }
 0x2e4   : > { %4585 = vst.msk [vmem:[%s5722_s4 + $0x148] sm:$0xff] %vm194_vm5, %v4537_v51 }
 0x2e5 PF: > { %s12_s11 = sadd.s32 1, %s5329_s11   ;;  %s7482_s9 = smov %s5325_s10 }
 0x2e6   : > { %p9_p5 = scmp.ge.s32.totalorder %s12_s11, 4   ;;  %s7483_s10 = smov %s7485_s12 }
 0x2e8   :  { %11 = sbr.rel (!%p9_p5) target bundleno = 2 (0x2), region = 61 }

</bundles_post_ra>
